<compile_context>
chip_gen: v7x
topology: tpu7x:2x2x1
jax: 0.10.0
libtpu: 0.0.40
codegen_flags: <defaults>
</compile_context>

<pallas_src>
import jax
import jax.numpy as jnp
from jax.experimental import pallas as pl
from jax.experimental.pallas import tpu as pltpu

# ------------------------- sizes: ILCE(c_in, c_h, c_h_2, c_out) -------------------------
# The module leaves these free; chosen 128/256-aligned per the performance review.
B     = 512          # batch rows (amortizes per-call Pallas overhead)
C_IN  = 512
C_H   = 256
C_H2  = 256
C_OUT = 256
TM    = 256          # batch rows per grid step (matches the 256-wide MXU)
NB    = B // TM      # grid size (2 -> one step per v7x TensorCore)


def _swish(z):
    # z * sigmoid(z); sigmoid(z) = 0.5*(tanh(z/2) + 1)  -> single EUP op per element.
    return z * (0.5 * jnp.tanh(0.5 * z) + 0.5)


# ----------------------------------- kernel --------------------------------------------
def ilce_kernel(x_ref, w1_ref, b1_ref, w2_hbm, b2_ref, w3_hbm, b3_ref,   # inputs
                out_ref,                                                  # output
                w2_vmem, w3_vmem, sem):                                   # scratch
    # Start the layer-2/3 weight DMAs immediately; they overlap matmul1 + swish.
    cp2 = pltpu.make_async_copy(w2_hbm, w2_vmem, sem.at[0])
    cp3 = pltpu.make_async_copy(w3_hbm, w3_vmem, sem.at[1])
    cp2.start()
    cp3.start()

    # Layer 1: bf16 MXU inputs, f32 accumulation / bias / activation.
    h1 = _swish(jnp.dot(x_ref[...], w1_ref[...],
                        preferred_element_type=jnp.float32) + b1_ref[...])

    # Layer 2: wait only when w2 is actually needed.
    cp2.wait()
    h2 = _swish(jnp.dot(h1.astype(jnp.bfloat16), w2_vmem[...],
                        preferred_element_type=jnp.float32) + b2_ref[...])

    # Layer 3.
    cp3.wait()
    out = jnp.dot(h2.astype(jnp.bfloat16), w3_vmem[...],
                  preferred_element_type=jnp.float32) + b3_ref[...]
    out_ref[...] = out.astype(out_ref.dtype)


# ----------------------------------- wrapper --------------------------------------------
def ilce_forward(x, params):
    w1, b1, w2, b2, w3, b3 = params

    # Pre-cast MXU operands to bf16 once, outside the kernel (halves HBM bytes).
    x_bf  = x.astype(jnp.bfloat16)
    w1_bf = w1.astype(jnp.bfloat16)
    w2_bf = w2.astype(jnp.bfloat16)
    w3_bf = w3.astype(jnp.bfloat16)

    cost = pl.CostEstimate(
        flops=2 * B * (C_IN * C_H + C_H * C_H2 + C_H2 * C_OUT),
        transcendentals=B * (C_H + C_H2),
        bytes_accessed=(2 * (B * C_IN + C_IN * C_H + C_H * C_H2 + C_H2 * C_OUT)   # bf16
                        + 4 * (C_H + C_H2 + C_OUT + B * C_OUT)),                  # f32
    )

    return pl.pallas_call(
        ilce_kernel,
        out_shape=jax.ShapeDtypeStruct((B, C_OUT), jnp.float32),
        grid=(NB,),
        in_specs=[
            pl.BlockSpec((TM, C_IN),  lambda i: (i, 0)),   # x: 256-row bf16 tile per step
            pl.BlockSpec((C_IN, C_H), lambda i: (0, 0)),   # w1 (grid-resident, bf16)
            pl.BlockSpec((1, C_H),    lambda i: (0, 0)),   # b1 (f32)
            pl.BlockSpec(memory_space=pl.ANY),             # w2: raw HBM ref, manual DMA
            pl.BlockSpec((1, C_H2),   lambda i: (0, 0)),   # b2 (f32)
            pl.BlockSpec(memory_space=pl.ANY),             # w3: raw HBM ref, manual DMA
            pl.BlockSpec((1, C_OUT),  lambda i: (0, 0)),   # b3 (f32)
        ],
        out_specs=pl.BlockSpec((TM, C_OUT), lambda i: (i, 0)),   # lane-dense (256) output
        scratch_shapes=[
            pltpu.VMEM((C_H, C_H2), jnp.bfloat16),    # w2 landing buffer
            pltpu.VMEM((C_H2, C_OUT), jnp.bfloat16),  # w3 landing buffer
            pltpu.SemaphoreType.DMA((2,)),
        ],
        compiler_params=pltpu.CompilerParams(dimension_semantics=("parallel",)),
        cost_estimate=cost,
    )(x_bf, w1_bf, b1, w2_bf, b2, w3_bf, b3)


# ------------------------------ params / reference --------------------------------------
def init_params(key):
    ks = jax.random.split(key, 6)

    def xavier_uniform(k, fan_in, fan_out):
        bound = jnp.sqrt(6.0 / (fan_in + fan_out))
        return jax.random.uniform(k, (fan_in, fan_out), jnp.float32, -bound, bound)

    def bias(k, fan_in, fan_out):
        bound = 1.0 / jnp.sqrt(fan_in)
        return jax.random.uniform(k, (1, fan_out), jnp.float32, -bound, bound)

    w1 = xavier_uniform(ks[0], C_IN, C_H);   b1 = bias(ks[1], C_IN, C_H)
    w2 = xavier_uniform(ks[2], C_H, C_H2);   b2 = bias(ks[3], C_H, C_H2)
    w3 = xavier_uniform(ks[4], C_H2, C_OUT); b3 = bias(ks[5], C_H2, C_OUT)
    return (w1, b1, w2, b2, w3, b3)


def reference_forward(x, params):
    w1, b1, w2, b2, w3, b3 = params
    swish = lambda z: z * jax.nn.sigmoid(z)
    h1 = swish(x @ w1 + b1)
    h2 = swish(h1 @ w2 + b2)
    return h2 @ w3 + b3


# ------------------------------------- main ----------------------------------------------
if __name__ == "__main__":
    key = jax.random.PRNGKey(0)
    kx, kp = jax.random.split(key)
    x = jax.random.normal(kx, (B, C_IN), jnp.float32)
    params = init_params(kp)

    out = ilce_forward(x, params)
    out = jax.block_until_ready(out)

    ref = reference_forward(x, params)
    assert out.shape == ref.shape, (out.shape, ref.shape)
    # Tolerance relaxed per review: MXU inputs are bf16 (accumulation stays f32), so the
    # error is bounded by input rounding (~0.4% per layer), well under 5e-2 here.
    err = float(jnp.max(jnp.abs(out - ref)))
    assert jnp.allclose(out, ref, atol=5e-2, rtol=5e-2), err

    print("KERNEL_OK")
</pallas_src>

<mosaic_0001>
module attributes {stable_mosaic.version = 11 : i64} {
  func.func @ilce_kernel(%arg0: i32, %arg1: memref<256x512xbf16, #tpu.memory_space<vmem>>, %arg2: memref<512x256xbf16, #tpu.memory_space<vmem>>, %arg3: memref<1x256xf32, #tpu.memory_space<vmem>>, %arg4: memref<256x256xbf16, #tpu.memory_space<any>>, %arg5: memref<1x256xf32, #tpu.memory_space<vmem>>, %arg6: memref<256x256xbf16, #tpu.memory_space<any>>, %arg7: memref<1x256xf32, #tpu.memory_space<vmem>>, %arg8: memref<256x256xf32, #tpu.memory_space<vmem>>, %arg9: memref<256x256xbf16, #tpu.memory_space<vmem>>, %arg10: memref<256x256xbf16, #tpu.memory_space<vmem>>, %arg11: memref<2x!tpu.dma_semaphore, #tpu.memory_space<semaphore_mem>>) attributes {dimension_semantics = [#tpu.dimension_semantics<parallel>], iteration_bounds = array<i64: 2>, scalar_prefetch = 0 : i64, scratch_operands = 3 : i64, tpu.core_type = #tpu.core_type<tc>, window_params = [{transform_indices = @transform_0, window_bounds = array<i64: 256, 512>}, {pipeline_mode = #tpu.pipeline_mode<synchronous>, transform_indices = @transform_1, window_bounds = array<i64: 512, 256>}, {pipeline_mode = #tpu.pipeline_mode<synchronous>, transform_indices = @transform_2, window_bounds = array<i64: 1, 256>}, {}, {pipeline_mode = #tpu.pipeline_mode<synchronous>, transform_indices = @transform_4, window_bounds = array<i64: 1, 256>}, {}, {pipeline_mode = #tpu.pipeline_mode<synchronous>, transform_indices = @transform_6, window_bounds = array<i64: 1, 256>}, {transform_indices = @transform_7, window_bounds = array<i64: 256, 256>}]} {
    %c0_i32 = arith.constant 0 : i32
    %0 = tpu.memref_slice %arg11[%c0_i32] : memref<2x!tpu.dma_semaphore, #tpu.memory_space<semaphore_mem>> -> memref<1x!tpu.dma_semaphore, #tpu.memory_space<semaphore_mem>>
    %1 = tpu.memref_squeeze %0 : memref<1x!tpu.dma_semaphore, #tpu.memory_space<semaphore_mem>> -> memref<!tpu.dma_semaphore, #tpu.memory_space<semaphore_mem>>
    tpu.enqueue_dma source(%arg4 : memref<256x256xbf16, #tpu.memory_space<any>>) target(%arg9 : memref<256x256xbf16, #tpu.memory_space<vmem>>) target_semaphore(%1 : memref<!tpu.dma_semaphore, #tpu.memory_space<semaphore_mem>>)
    %c1_i32 = arith.constant 1 : i32
    %2 = tpu.memref_slice %arg11[%c1_i32] : memref<2x!tpu.dma_semaphore, #tpu.memory_space<semaphore_mem>> -> memref<1x!tpu.dma_semaphore, #tpu.memory_space<semaphore_mem>>
    %3 = tpu.memref_squeeze %2 : memref<1x!tpu.dma_semaphore, #tpu.memory_space<semaphore_mem>> -> memref<!tpu.dma_semaphore, #tpu.memory_space<semaphore_mem>>
    tpu.enqueue_dma source(%arg6 : memref<256x256xbf16, #tpu.memory_space<any>>) target(%arg10 : memref<256x256xbf16, #tpu.memory_space<vmem>>) target_semaphore(%3 : memref<!tpu.dma_semaphore, #tpu.memory_space<semaphore_mem>>)
    %c0 = arith.constant 0 : index
    %c0_0 = arith.constant 0 : index
    %4 = vector.load %arg1[%c0, %c0_0] : memref<256x512xbf16, #tpu.memory_space<vmem>>, vector<256x512xbf16>
    %c0_1 = arith.constant 0 : index
    %c0_2 = arith.constant 0 : index
    %5 = vector.load %arg2[%c0_1, %c0_2] : memref<512x256xbf16, #tpu.memory_space<vmem>>, vector<512x256xbf16>
    %cst = arith.constant dense<0.000000e+00> : vector<256x256xf32>
    %6 = tpu.matmul %4, %5, %cst {dimension_numbers = #tpu.dot_dimension_numbers<[1], [0], [0], [1], [0, 0, 1, 1], [], []>} : vector<256x512xbf16>, vector<512x256xbf16>, vector<256x256xf32> -> vector<256x256xf32>
    %c0_3 = arith.constant 0 : index
    %c0_4 = arith.constant 0 : index
    %7 = vector.load %arg3[%c0_3, %c0_4] : memref<1x256xf32, #tpu.memory_space<vmem>>, vector<1x256xf32>
    %8 = vector.broadcast %7 : vector<1x256xf32> to vector<256x256xf32>
    %9 = arith.addf %6, %8 : vector<256x256xf32>
    %cst_5 = arith.constant 5.000000e-01 : f32
    %10 = vector.broadcast %cst_5 : f32 to vector<256x256xf32>
    %11 = arith.mulf %10, %9 : vector<256x256xf32>
    %12 = math.tanh %11 : vector<256x256xf32>
    %cst_6 = arith.constant 5.000000e-01 : f32
    %13 = vector.broadcast %cst_6 : f32 to vector<256x256xf32>
    %14 = arith.mulf %13, %12 : vector<256x256xf32>
    %cst_7 = arith.constant 5.000000e-01 : f32
    %15 = vector.broadcast %cst_7 : f32 to vector<256x256xf32>
    %16 = arith.addf %14, %15 : vector<256x256xf32>
    %17 = arith.mulf %9, %16 : vector<256x256xf32>
    %c0_i32_8 = arith.constant 0 : i32
    %18 = tpu.memref_slice %arg11[%c0_i32_8] : memref<2x!tpu.dma_semaphore, #tpu.memory_space<semaphore_mem>> -> memref<1x!tpu.dma_semaphore, #tpu.memory_space<semaphore_mem>>
    %19 = tpu.memref_squeeze %18 : memref<1x!tpu.dma_semaphore, #tpu.memory_space<semaphore_mem>> -> memref<!tpu.dma_semaphore, #tpu.memory_space<semaphore_mem>>
    tpu.wait_dma2 semaphore(%19 : memref<!tpu.dma_semaphore, #tpu.memory_space<semaphore_mem>>) src(%arg4 : memref<256x256xbf16, #tpu.memory_space<any>>) dst(%arg9 : memref<256x256xbf16, #tpu.memory_space<vmem>>)
    %20 = arith.truncf %17 : vector<256x256xf32> to vector<256x256xbf16>
    %c0_9 = arith.constant 0 : index
    %c0_10 = arith.constant 0 : index
    %21 = vector.load %arg9[%c0_9, %c0_10] : memref<256x256xbf16, #tpu.memory_space<vmem>>, vector<256x256xbf16>
    %cst_11 = arith.constant dense<0.000000e+00> : vector<256x256xf32>
    %22 = tpu.matmul %20, %21, %cst_11 {dimension_numbers = #tpu.dot_dimension_numbers<[1], [0], [0], [1], [0, 0, 1, 1], [], []>} : vector<256x256xbf16>, vector<256x256xbf16>, vector<256x256xf32> -> vector<256x256xf32>
    %c0_12 = arith.constant 0 : index
    %c0_13 = arith.constant 0 : index
    %23 = vector.load %arg5[%c0_12, %c0_13] : memref<1x256xf32, #tpu.memory_space<vmem>>, vector<1x256xf32>
    %24 = vector.broadcast %23 : vector<1x256xf32> to vector<256x256xf32>
    %25 = arith.addf %22, %24 : vector<256x256xf32>
    %cst_14 = arith.constant 5.000000e-01 : f32
    %26 = vector.broadcast %cst_14 : f32 to vector<256x256xf32>
    %27 = arith.mulf %26, %25 : vector<256x256xf32>
    %28 = math.tanh %27 : vector<256x256xf32>
    %cst_15 = arith.constant 5.000000e-01 : f32
    %29 = vector.broadcast %cst_15 : f32 to vector<256x256xf32>
    %30 = arith.mulf %29, %28 : vector<256x256xf32>
    %cst_16 = arith.constant 5.000000e-01 : f32
    %31 = vector.broadcast %cst_16 : f32 to vector<256x256xf32>
    %32 = arith.addf %30, %31 : vector<256x256xf32>
    %33 = arith.mulf %25, %32 : vector<256x256xf32>
    %c1_i32_17 = arith.constant 1 : i32
    %34 = tpu.memref_slice %arg11[%c1_i32_17] : memref<2x!tpu.dma_semaphore, #tpu.memory_space<semaphore_mem>> -> memref<1x!tpu.dma_semaphore, #tpu.memory_space<semaphore_mem>>
    %35 = tpu.memref_squeeze %34 : memref<1x!tpu.dma_semaphore, #tpu.memory_space<semaphore_mem>> -> memref<!tpu.dma_semaphore, #tpu.memory_space<semaphore_mem>>
    tpu.wait_dma2 semaphore(%35 : memref<!tpu.dma_semaphore, #tpu.memory_space<semaphore_mem>>) src(%arg6 : memref<256x256xbf16, #tpu.memory_space<any>>) dst(%arg10 : memref<256x256xbf16, #tpu.memory_space<vmem>>)
    %36 = arith.truncf %33 : vector<256x256xf32> to vector<256x256xbf16>
    %c0_18 = arith.constant 0 : index
    %c0_19 = arith.constant 0 : index
    %37 = vector.load %arg10[%c0_18, %c0_19] : memref<256x256xbf16, #tpu.memory_space<vmem>>, vector<256x256xbf16>
    %cst_20 = arith.constant dense<0.000000e+00> : vector<256x256xf32>
    %38 = tpu.matmul %36, %37, %cst_20 {dimension_numbers = #tpu.dot_dimension_numbers<[1], [0], [0], [1], [0, 0, 1, 1], [], []>} : vector<256x256xbf16>, vector<256x256xbf16>, vector<256x256xf32> -> vector<256x256xf32>
    %c0_21 = arith.constant 0 : index
    %c0_22 = arith.constant 0 : index
    %39 = vector.load %arg7[%c0_21, %c0_22] : memref<1x256xf32, #tpu.memory_space<vmem>>, vector<1x256xf32>
    %40 = vector.broadcast %39 : vector<1x256xf32> to vector<256x256xf32>
    %41 = arith.addf %38, %40 : vector<256x256xf32>
    %c0_23 = arith.constant 0 : index
    %c0_24 = arith.constant 0 : index
    %42 = vector.load %arg8[%c0_23, %c0_24] : memref<256x256xf32, #tpu.memory_space<vmem>>, vector<256x256xf32>
    tpu.vector_store %arg8[%c0_23, %c0_24], %41 {strides = array<i32>} : memref<256x256xf32, #tpu.memory_space<vmem>>, vector<256x256xf32>,
    return
  }
  func.func @transform_0(%arg0: i32) -> (i32, i32) {
    %c0_i32 = arith.constant 0 : i32
    %c0_i32_0 = arith.constant 0 : i32
    return %arg0, %c0_i32 : i32, i32
  }
  func.func @transform_1(%arg0: i32) -> (i32, i32) {
    %c0_i32 = arith.constant 0 : i32
    %c0_i32_0 = arith.constant 0 : i32
    %c0_i32_1 = arith.constant 0 : i32
    return %c0_i32, %c0_i32_0 : i32, i32
  }
  func.func @transform_2(%arg0: i32) -> (i32, i32) {
    %c0_i32 = arith.constant 0 : i32
    %c0_i32_0 = arith.constant 0 : i32
    %c0_i32_1 = arith.constant 0 : i32
    return %c0_i32, %c0_i32_0 : i32, i32
  }
  func.func @transform_4(%arg0: i32) -> (i32, i32) {
    %c0_i32 = arith.constant 0 : i32
    %c0_i32_0 = arith.constant 0 : i32
    %c0_i32_1 = arith.constant 0 : i32
    return %c0_i32, %c0_i32_0 : i32, i32
  }
  func.func @transform_6(%arg0: i32) -> (i32, i32) {
    %c0_i32 = arith.constant 0 : i32
    %c0_i32_0 = arith.constant 0 : i32
    %c0_i32_1 = arith.constant 0 : i32
    return %c0_i32, %c0_i32_0 : i32, i32
  }
  func.func @transform_7(%arg0: i32) -> (i32, i32) {
    %c0_i32 = arith.constant 0 : i32
    %c0_i32_0 = arith.constant 0 : i32
    return %arg0, %c0_i32 : i32, i32
  }
}

</mosaic_0001>

<bundles_post_ra>
// kernel: tpu_custom_call.1
= control target key start
LH: loop header
LB: loop body
LE: loop exit
PB: predicated region body
PF: predicated region fallthrough
CT: control target
= control target key end

     0   :  { %s5245_s0 = inlined_call_operand.hbm [shape: bf16[512,512], index: 0, kind: input, shape index: {}]   ;;  %s5246_s1 = inlined_call_operand.hbm [shape: bf16[512,256], index: 1, kind: input, shape index: {}]   ;;  %s5247_s2 = inlined_call_operand.vmem [shape: f32[1,256], index: 2, kind: input, shape index: {}]   ;;  %s5248_s3 = inlined_call_operand.hbm [shape: bf16[256,256], index: 3, kind: input, shape index: {}]   ;;  %s5249_s4 = inlined_call_operand.vmem [shape: f32[1,256], index: 4, kind: input, shape index: {}]   ;;  %s5250_s5 = inlined_call_operand.hbm [shape: bf16[256,256], index: 5, kind: input, shape index: {}]   ;;  %s5251_s6 = inlined_call_operand.vmem [shape: f32[1,256], index: 6, kind: input, shape index: {}]   ;;  %s5252_s7 = inlined_call_operand.hbm [shape: f32[512,256], index: 7, kind: output, shape index: {}]  }
   0x1   :  { %5263 = sst [smem:[#allocation44_spill]] %s5245_s0 }
   0x2   :  { %5264 = sst [smem:[#allocation45_spill]] %s5246_s1 }
   0x3   :  { %12 = vsyncpa [#allocation6], 0 }
   0x4   :  { %14 = vsyncpa [#allocation6 + $0x1], 0 }
   0x5   :  { %15 = vsyncpa [#allocation9], 0 }
   0x6   :  { %16 = vsyncpa [#allocation7], 0 }
   0x7   :  { %18 = vsyncpa [#allocation7 + $0x1], 0  ;;  %s3856_s24 = smov 0   ;;  %s3858_s25 = smov 0  }
   0x8   :  { %s3860_s26 = smov 0   ;;  %s3862_s27 = smov 0  }
   0x9 LB: > { %5265 = sst [smem:[#allocation20_spill]] %s3787_s25  ;;  %s3877_s28 = sadd.s32 4294967295, %s3795_s27   ;;  %s3795_s27 = sphi %s3862_s27, %s5367_s27   ;;  %s3791_s26 = sphi %s3860_s26, %s5366_s26   ;;  %s3787_s25 = sphi %s3858_s25, %s5365_s25   ;;  %s3783_s24 = sphi %s3856_s24, %s5364_s24  }
   0xa   : > { %5266 = sst [smem:[#allocation21_spill]] %s3791_s26  ;;  %s2858_s29 = sadd.s32 4294967294, %s3795_s27  }
   0xb   : > { %p44_p0 = scmp.ne.s32.totalorder %s3787_s25, %s3783_s24  ;;  %p5253_p1 = scmp.eq.s32.totalorder %s3877_s28, 0 }
   0xc   : > { %p158_p3 = scmp.eq.s32.totalorder %s2858_s29, 1  ;;  %p2859_p5 = scmp.ge.s32.totalorder %s3795_s27, 1 }
   0xd   : > { %p3886_p4 = por %p5253_p1, %p44_p0  ;;  %p165_p7 = scmp.lt.s32.totalorder %s3795_s27, 3 }
   0xe   : > { %p3891_p6 = por %p158_p3, %p44_p0  ;;  %s3797_s10 = smov [#allocation8]  }
   0xf   : > { %s5267_s30 = scalar_select %p3886_p4, 1, 0 }
  0x10   : > { %s5268_s8 = scalar_select %p3891_p6, 1, 0 }
  0x11   : > { %p3896_p8 = pnand %p2859_p5, %p165_p7  ;;  %s177_s11 = sshll.u32 %s3797_s10, 4  ;;  %s3900_s11 = int_to_ptr.vmem [resolvable:$true] %s177_s11 }
  0x12   : > { %s3912_s13 = sadd.s32 1, %s3795_s27   ;;  %s31_s14 = sadd.s32 1, %s3791_s26 }
  0x13   : > { %s5269_s9 = scalar_select %p3896_p8, 1, 0 }
  0x14   : > { %p3150_p9 = pneg %p3896_p8  ;;  %s28_s15 = ssub.s32 %s3795_s27, %s3912_s13 }
  0x15   : > { %s5271_s1 = sld [smem:[#allocation45_spill]] }
  0x16   : > { %p3907_p11 = pnand %p3150_p9, %p5253_p1 }
  0x18   : > { %p3665_p13 = pneg %p3907_p11 }
  0x1b   : > { %s3663_s18 = scalar_lea.hbm %s5271_s1, 8192 }
  0x1c   : > { %p3664_p12 = scmp.ne.s32.totalorder %s5271_s1, %s3663_s18  ;;  %p3670_p5 = scmp.lt.u32.totalorder %s3663_s18, %s5271_s1 }
  0x1e   : > { %p3666_p0 = pnand %p3665_p13, %p3664_p12 }
  0x20   : > { %p3667_p3 = pneg %p3666_p0 }
  0x22   : > { %p3672_p7 = pnand %p3670_p5, %p3667_p3 }
  0x24   : > { %3675 = shalt.err (!%p3672_p7)
}
  0x25   : > { %s3676_s23 = scalar_lea.vmem %s3900_s11, 8192  ;;  %p3684_p2 = scmp.lt.s32.totalorder %s3900_s11, %s3900_s11 }
  0x26   : > { %p3677_p9 = scmp.ne.s32.totalorder %s3900_s11, %s3676_s23  ;;  %p3685_p6 = scmp.lt.s32.totalorder %s3676_s23, %s3676_s23 }
  0x28   : > { %p3679_p10 = pnand %p3677_p9, %p3665_p13  ;;  %p3686_p4 = por %p3685_p6, %p3684_p2 }
  0x2a   : > { %p3680_p1 = pneg %p3679_p10 }
  0x2c   : > { %p3687_p8 = pnand %p3686_p4, %p3680_p1 }
  0x2e   : > { %3690 = shalt.err (!%p3687_p8)
}
  0x2f   : > { %s3798_s29 = smov 128   ;;  %s3799_s10 = smov 8  }
  0x30   : > { %3153 = dma.hbm_to_vmem [thread:$0]  (!%p3907_p11), %s5271_s1, 8192, %s3900_s11, [#allocation9], %s3798_s29, %s3798_s29, %s3799_s10  }
  0x31   : > { %p29_p2 = scmp.eq.s32.totalorder %s28_s15, 0  ;;  %p38_p1 = scmp.ne.s32.totalorder %s3791_s26, %s3787_s25 }
  0x32   : > { %p39_p4 = scmp.eq.s32.totalorder %s3795_s27, 0  ;;  %p3163_p6 = scmp.lt.s32.totalorder %s3795_s27, 2 }
  0x33   : > { %s3943_s18 = scalar_select %p29_p2, %s3791_s26, %s31_s14  }
  0x34   : > { %p40_p8 = por %p39_p4, %p38_p1  ;;  %p5273_p10 = scmp.eq.s32.totalorder %s3877_s28, 1 }
  0x35   : > { %5272 = sst [smem:[#allocation22_spill]] %s3943_s18  ;;  %s200_s20 = sand.u32 1, %s3791_s26  }
  0x36   : > { %p3947_p12 = por %p5273_p10, %p38_p1  ;;  %s3011_s21 = sshll.u32 %s3795_s27, 13 }
  0x37   : > { %s2862_s22 = sshll.u32 %s200_s20, 9  ;;  %s5275_s0 = sld [smem:[#allocation44_spill]] }
  0x38   : > { %s204_s11 = scalar_lea.vmem [#allocation5], %s2862_s22  ;;  %p3958_p11 = pnand %p3163_p6, %p40_p8 }
  0x39   : > { %s212_s14 = sshll.u32 %s204_s11, 4  ;;  %s3964_s29 = scalar_lea.sflag [#allocation6], %s200_s20  ;;  %s3962_s14 = int_to_ptr.vmem [resolvable:$true] %s212_s14 }
  0x3a   : > { %p3693_p0 = pneg %p3958_p11 }
  0x3d   : > { %s3956_s16 = scalar_lea.hbm %s5275_s0, %s3011_s21  ;;  %s3696_s22 = scalar_lea.hbm %s5275_s0, 16384 }
  0x3e   : > { %s3691_s10 = scalar_lea.hbm %s3956_s16, 8192  ;;  %p3697_p7 = scmp.lt.u32.totalorder %s3956_s16, %s5275_s0 }
  0x3f   : > { %p3692_p13 = scmp.ne.s32.totalorder %s3956_s16, %s3691_s10  ;;  %p3698_p9 = scmp.lt.u32.totalorder %s3696_s22, %s3691_s10 }
  0x40   : > { %p3700_p1 = scmp.lt.u32.totalorder %s3691_s10, %s3956_s16 }
  0x41   : > { %p3694_p3 = pnand %p3693_p0, %p3692_p13  ;;  %p3699_p2 = por %p3698_p9, %p3697_p7 }
  0x43   : > { %p3695_p5 = pneg %p3694_p3  ;;  %p3701_p4 = por %p3700_p1, %p3699_p2 }
  0x45   : > { %p3702_p6 = pnand %p3701_p4, %p3695_p5 }
  0x47   : > { %3705 = shalt.err (!%p3702_p6)
}
  0x48   : > { %s3706_s20 = scalar_lea.vmem %s3962_s14, 8192  ;;  %s3800_s11 = smov [#allocation5]  }
  0x49   : > { %p3707_p8 = scmp.ne.s32.totalorder %s3962_s14, %s3706_s20  ;;  %s3711_s17 = sshll.u32 %s3800_s11, 4  ;;  %s3712_s17 = int_to_ptr.vmem [resolvable:$false] %s3711_s17 }
  0x4a   : > { %s3713_s21 = scalar_lea.vmem %s3712_s17, 16384  ;;  %p3714_p3 = scmp.lt.s32.totalorder %s3962_s14, %s3712_s17 }
  0x4b   : > { %p3709_p10 = pnand %p3707_p8, %p3693_p0  ;;  %p3715_p7 = scmp.lt.s32.totalorder %s3713_s21, %s3706_s20 }
  0x4d   : > { %p3710_p13 = pneg %p3709_p10  ;;  %p3716_p9 = por %p3715_p7, %p3714_p3 }
  0x4f   : > { %p3717_p2 = pnand %p3716_p9, %p3710_p13 }
  0x51   : > { %3720 = shalt.err (!%p3717_p2)
}
  0x52   : > { %s3801_s10 = smov 256   ;;  %s3802_s22 = smov 16  }
  0x53   : > { %3157 = dma.hbm_to_vmem [thread:$0]  (!%p3958_p11), %s3956_s16, 8192, %s3962_s14, %s3964_s29, %s3801_s10, %s3801_s10, %s3802_s22  }
  0x54   : > { %p5277_p0 = scmp.ne.s32.totalorder %s5269_s9, 0 }
  0x56   : > { %224 = sbr.rel (%p5277_p0) target bundleno = 1509 (0x5e5), region = 40 }
  0x5d   : > { %s3995_s12 = sand.u32 1, %s3787_s25   ;;  %p5278_p5 = scmp.ne.s32.totalorder %s5267_s30, 0 }
  0x5e   : > { %s5256_s23 = sshll.u32 %s3995_s12, 9  ;;  %s227_s20 = scalar_lea.sflag [#allocation6], %s3995_s12 }
  0x5f   : > { %s4001_s11 = scalar_lea.vmem [#allocation5], %s5256_s23 }
  0x60   : > { %3766 = dma.done.wait (%p5278_p5), %s227_s20, 8192  }
  0x61   : > { %3768 = vsyncadd (%p5278_p5), %s227_s20, 4294959104  ;;  %p5279_p11 = scmp.eq.s32.totalorder %s3877_s28, 0 }
  0x63   : > { %3770 = dma.done.wait (%p5279_p11), [#allocation9], 8192   ;;  %p5280_p1 = pmov %p5279_p11 }
  0x64   : > { %s267_s9 = sld [smem:[#allocation0]]   ;;  %s3803_s16 = smov [#allocation2]  }
  0x65   : > { %3772 = vsyncadd (%p5280_p1), [#allocation9], 4294959104  ;;  %s275_s14 = sshll.u32 %s3803_s16, 4  ;;  %s3804_s15 = smov 256   ;;  %s276_s14 = int_to_ptr.vmem [resolvable:$true] %s275_s14 }
  0x66   : > { %279 = sst [smem:[#allocation12]] %s3804_s15  ;;  %s3805_s29 = smov 2  }
  0x67   : > { %281 = sst [smem:[#allocation12 + $0x1]] %s3804_s15  ;;  %s3806_s17 = smov 64  }
  0x68   : > { %283 = sst [smem:[#allocation12 + $0x2]] %s3805_s29  ;;  %s3807_s21 = smov 128  }
  0x69   : > { %285 = sst [smem:[#allocation12 + $0x3]] %s3806_s17  ;;  %s3808_s22 = smov 4  }
  0x6a   : > { %s2870_s30 = sshll.u32 %s267_s9, 26  ;;  %287 = sst [smem:[#allocation12 + $0x4]] %s3807_s21 }
  0x6b   : > { %s2871_s10 = sadd.s32 134217728, %s2870_s30  ;;  %289 = sst [smem:[#allocation12 + $0x5]] %s3805_s29 }
  0x6c   : > { %291 = sst [smem:[#allocation12 + $0x6]] %s3807_s21  ;;  %s3809_s20 = smov [#allocation4]  }
  0x6d   : > { %293 = sst [smem:[#allocation12 + $0x7]] %s3806_s17  ;;  %s3810_s16 = smov [#allocation11]  }
  0x6e   : > { %295 = sst [smem:[#allocation12 + $0x8]] %s3808_s22  ;;  %s3811_s1 = smov [#allocation3]  }
  0x6f   : > { %297 = dma.general %s5248_s3, 4096, %s276_s14, %s3809_s20, %s3810_s16, [#allocation12], %s2871_s10, 0  }
  0x70   : > { %314 = sst [smem:[#allocation14]] %s3804_s15  ;;  %s310_s9 = sshll.u32 %s3811_s1, 4  ;;  %s311_s9 = int_to_ptr.vmem [resolvable:$true] %s310_s9 }
  0x71   : > { %316 = sst [smem:[#allocation14 + $0x1]] %s3804_s15  ;;  %s3812_s30 = smov [#allocation4 + $0x1]  }
  0x72   : > { %318 = sst [smem:[#allocation14 + $0x2]] %s3805_s29  ;;  %s3813_s18 = smov [#allocation13]  }
  0x73   : > { %320 = sst [smem:[#allocation14 + $0x3]] %s3806_s17  ;;  %s5301_s25 = sshll.u32 %s3995_s12, 9 }
  0x74   : > { %322 = sst [smem:[#allocation14 + $0x4]] %s3807_s21  ;;  %s4508_s26 = scalar_lea.vmem [#allocation10], %s5301_s25 }
  0x75   : > { %324 = sst [smem:[#allocation14 + $0x5]] %s3805_s29 }
  0x76   : > { %326 = sst [smem:[#allocation14 + $0x6]] %s3807_s21 }
  0x77   : > { %328 = sst [smem:[#allocation14 + $0x7]] %s3806_s17 }
  0x78   : > { %330 = sst [smem:[#allocation14 + $0x8]] %s3808_s22 }
  0x79   : > { %332 = dma.general %s5250_s5, 4096, %s311_s9, %s3812_s30, %s3813_s18, [#allocation14], %s2871_s10, 0  }
  0x7a   : > { %v3215_v0 = vld [vmem:[#allocation8 + $0x4] ss:$8 sps:$4 sm:$0xff]   ;;  %v3217_v1 = vld [vmem:[#allocation8] ss:$8 sps:$4 sm:$0xff]   ;;  %v3218_v2 = vld [vmem:[#allocation8 + $0x14] ss:$8 sps:$4 sm:$0xff]  }
  0x7b   : > { %1113 = vmatprep.subr.bf16.mxu0 %v3215_v0  ;;  %v3220_v3 = vld [vmem:[#allocation8 + $0x10] ss:$8 sps:$4 sm:$0xff]   ;;  %v3221_v4 = vld [vmem:[#allocation8 + $0x24] ss:$8 sps:$4 sm:$0xff]   ;;  %v3223_v5 = vld [vmem:[#allocation8 + $0x20] ss:$8 sps:$4 sm:$0xff]  }
  0x7c   : > { %1114 = vmatpush1.bf16.msra.mxu0 %v3217_v1  ;;  %v3224_v6 = vld [vmem:[#allocation8 + $0x34] ss:$8 sps:$4 sm:$0xff]   ;;  %v3226_v7 = vld [vmem:[#allocation8 + $0x30] ss:$8 sps:$4 sm:$0xff]   ;;  %v3227_v8 = vld [vmem:[#allocation8 + $0x44] ss:$8 sps:$4 sm:$0xff]  }
  0x7d   : > { %1115 = vmatprep.subr.bf16.mxu0 %v3218_v2  ;;  %v3229_v9 = vld [vmem:[#allocation8 + $0x40] ss:$8 sps:$4 sm:$0xff]   ;;  %v3230_v10 = vld [vmem:[#allocation8 + $0x54] ss:$8 sps:$4 sm:$0xff]   ;;  %v3232_v11 = vld [vmem:[#allocation8 + $0x50] ss:$8 sps:$4 sm:$0xff]  }
  0x7e   : > { %v3233_v12 = vld [vmem:[#allocation8 + $0x64] ss:$8 sps:$4 sm:$0xff]   ;;  %v3235_v14 = vld [vmem:[#allocation8 + $0x60] ss:$8 sps:$4 sm:$0xff]   ;;  %v3236_v15 = vld [vmem:[#allocation8 + $0x74] ss:$8 sps:$4 sm:$0xff]  }
  0x7f   : > { %v3265_v13 = vld [vmem:[%s4001_s11 + $0x4] ss:$16 sps:$4 sm:$0xff]   ;;  %v3238_v16 = vld [vmem:[#allocation8 + $0x70] ss:$8 sps:$4 sm:$0xff]   ;;  %v3241_v18 = vld [vmem:[#allocation8 + $0x80] ss:$8 sps:$4 sm:$0xff]  }
  0x80   : > { %1116 = vmatpush1.bf16.msra.mxu0 %v3220_v3  ;;  %1145 = vmatprep.mubr.bf16.mxu0 %v3265_v13  ;;  %v3239_v17 = vld [vmem:[#allocation8 + $0x84] ss:$8 sps:$4 sm:$0xff]   ;;  %v3242_v19 = vld [vmem:[#allocation8 + $0x94] ss:$8 sps:$4 sm:$0xff]   ;;  %v3244_v20 = vld [vmem:[#allocation8 + $0x90] ss:$8 sps:$4 sm:$0xff]  }
  0x81   : > { %1117 = vmatprep.subr.bf16.mxu0 %v3221_v4  ;;  %v3245_v21 = vld [vmem:[#allocation8 + $0xa4] ss:$8 sps:$4 sm:$0xff]   ;;  %v3247_v22 = vld [vmem:[#allocation8 + $0xa0] ss:$8 sps:$4 sm:$0xff]   ;;  %v3248_v23 = vld [vmem:[#allocation8 + $0xb4] ss:$8 sps:$4 sm:$0xff]  }
  0x82   : > { %v3250_v24 = vld [vmem:[#allocation8 + $0xb0] ss:$8 sps:$4 sm:$0xff]   ;;  %v3251_v25 = vld [vmem:[#allocation8 + $0xc4] ss:$8 sps:$4 sm:$0xff]   ;;  %v3253_v26 = vld [vmem:[#allocation8 + $0xc0] ss:$8 sps:$4 sm:$0xff]  }
  0x83   : > { %v3254_v27 = vld [vmem:[#allocation8 + $0xd4] ss:$8 sps:$4 sm:$0xff]   ;;  %v3256_v28 = vld [vmem:[#allocation8 + $0xd0] ss:$8 sps:$4 sm:$0xff]   ;;  %v3257_v29 = vld [vmem:[#allocation8 + $0xe4] ss:$8 sps:$4 sm:$0xff]  }
  0x84   : > { %1118 = vmatpush1.bf16.msra.mxu0 %v3223_v5  ;;  %v3259_v30 = vld [vmem:[#allocation8 + $0xe0] ss:$8 sps:$4 sm:$0xff]   ;;  %v3260_v31 = vld [vmem:[#allocation8 + $0xf4] ss:$8 sps:$4 sm:$0xff]   ;;  %v3262_v32 = vld [vmem:[#allocation8 + $0xf0] ss:$8 sps:$4 sm:$0xff]  }
  0x85   : > { %1119 = vmatprep.subr.bf16.mxu0 %v3224_v6  ;;  %v3268_v33 = vld [vmem:[#allocation8 + $0x104] ss:$8 sps:$4 sm:$0xff]   ;;  %v3263_v34 = vld [vmem:[%s4001_s11] ss:$16 sps:$4 sm:$0xff]   ;;  %v3274_v37 = vld [vmem:[#allocation8 + $0x114] ss:$8 sps:$4 sm:$0xff]  }
  0x86   : > { %v3266_v35 = vld [vmem:[#allocation8 + $0x100] ss:$8 sps:$4 sm:$0xff]   ;;  %v3269_v36 = vld [vmem:[%s4001_s11 + $0x24] ss:$16 sps:$4 sm:$0xff]   ;;  %v3272_v38 = vld [vmem:[#allocation8 + $0x110] ss:$8 sps:$4 sm:$0xff]  }
  0x87   : > { %v3280_v39 = vld [vmem:[#allocation8 + $0x124] ss:$8 sps:$4 sm:$0xff]   ;;  %v3271_v40 = vld [vmem:[%s4001_s11 + $0x20] ss:$16 sps:$4 sm:$0xff]   ;;  %v3286_v43 = vld [vmem:[#allocation8 + $0x134] ss:$8 sps:$4 sm:$0xff]  }
  0x88   : > { %1120 = vmatpush1.bf16.msra.mxu0 %v3226_v7  ;;  %v3275_v41 = vld [vmem:[%s4001_s11 + $0x44] ss:$16 sps:$4 sm:$0xff]   ;;  %v3278_v42 = vld [vmem:[#allocation8 + $0x120] ss:$8 sps:$4 sm:$0xff]   ;;  %v3284_v44 = vld [vmem:[#allocation8 + $0x130] ss:$8 sps:$4 sm:$0xff]  }
  0x89   : > { %1121 = vmatprep.subr.bf16.mxu0 %v3227_v8  ;;  %v3292_v45 = vld [vmem:[#allocation8 + $0x144] ss:$8 sps:$4 sm:$0xff]   ;;  %v3277_v46 = vld [vmem:[%s4001_s11 + $0x40] ss:$16 sps:$4 sm:$0xff]   ;;  %v3298_v49 = vld [vmem:[#allocation8 + $0x154] ss:$8 sps:$4 sm:$0xff]  }
  0x8a   : > { %v3281_v47 = vld [vmem:[%s4001_s11 + $0x64] ss:$16 sps:$4 sm:$0xff]   ;;  %v3290_v48 = vld [vmem:[#allocation8 + $0x140] ss:$8 sps:$4 sm:$0xff]   ;;  %v3296_v50 = vld [vmem:[#allocation8 + $0x150] ss:$8 sps:$4 sm:$0xff]  }
  0x8b   : > { %v3304_v51 = vld [vmem:[#allocation8 + $0x164] ss:$8 sps:$4 sm:$0xff]   ;;  %v3283_v52 = vld [vmem:[%s4001_s11 + $0x60] ss:$16 sps:$4 sm:$0xff]   ;;  %v3310_v55 = vld [vmem:[#allocation8 + $0x174] ss:$8 sps:$4 sm:$0xff]  }
  0x8c   : > { %1122 = vmatpush1.bf16.msra.mxu0 %v3229_v9  ;;  %v3287_v53 = vld [vmem:[%s4001_s11 + $0x84] ss:$16 sps:$4 sm:$0xff]   ;;  %v3302_v54 = vld [vmem:[#allocation8 + $0x160] ss:$8 sps:$4 sm:$0xff]   ;;  %v3308_v56 = vld [vmem:[#allocation8 + $0x170] ss:$8 sps:$4 sm:$0xff]  }
  0x8d   : > { %1123 = vmatprep.subr.bf16.mxu0 %v3230_v10  ;;  %v3316_v57 = vld [vmem:[#allocation8 + $0x184] ss:$8 sps:$4 sm:$0xff]   ;;  %v3289_v58 = vld [vmem:[%s4001_s11 + $0x80] ss:$16 sps:$4 sm:$0xff]   ;;  %v3322_v61 = vld [vmem:[#allocation8 + $0x194] ss:$8 sps:$4 sm:$0xff]  }
  0x8e   : > { %v3293_v59 = vld [vmem:[%s4001_s11 + $0xa4] ss:$16 sps:$4 sm:$0xff]   ;;  %v3314_v60 = vld [vmem:[#allocation8 + $0x180] ss:$8 sps:$4 sm:$0xff]   ;;  %v3320_v62 = vld [vmem:[#allocation8 + $0x190] ss:$8 sps:$4 sm:$0xff]  }
  0x8f   : > { %v3328_v63 = vld [vmem:[#allocation8 + $0x1a4] ss:$8 sps:$4 sm:$0xff]   ;;  %v3295_v0 = vld [vmem:[%s4001_s11 + $0xa0] ss:$16 sps:$4 sm:$0xff]   ;;  %v3334_v3 = vld [vmem:[#allocation8 + $0x1b4] ss:$8 sps:$4 sm:$0xff]  }
  0x90   : > { %1124 = vmatpush1.bf16.msra.mxu0 %v3232_v11  ;;  %v3299_v1 = vld [vmem:[%s4001_s11 + $0xc4] ss:$16 sps:$4 sm:$0xff]   ;;  %v3326_v2 = vld [vmem:[#allocation8 + $0x1a0] ss:$8 sps:$4 sm:$0xff]   ;;  %v3332_v4 = vld [vmem:[#allocation8 + $0x1b0] ss:$8 sps:$4 sm:$0xff]  }
  0x91   : > { %1125 = vmatprep.subr.bf16.mxu0 %v3233_v12  ;;  %v3340_v5 = vld [vmem:[#allocation8 + $0x1c4] ss:$8 sps:$4 sm:$0xff]   ;;  %v3301_v6 = vld [vmem:[%s4001_s11 + $0xc0] ss:$16 sps:$4 sm:$0xff]   ;;  %v3346_v9 = vld [vmem:[#allocation8 + $0x1d4] ss:$8 sps:$4 sm:$0xff]  }
  0x92   : > { %v3305_v7 = vld [vmem:[%s4001_s11 + $0xe4] ss:$16 sps:$4 sm:$0xff]   ;;  %v3338_v8 = vld [vmem:[#allocation8 + $0x1c0] ss:$8 sps:$4 sm:$0xff]   ;;  %v3344_v10 = vld [vmem:[#allocation8 + $0x1d0] ss:$8 sps:$4 sm:$0xff]  }
  0x93   : > { %v3352_v11 = vld [vmem:[#allocation8 + $0x1e4] ss:$8 sps:$4 sm:$0xff]   ;;  %v3307_v12 = vld [vmem:[%s4001_s11 + $0xe0] ss:$16 sps:$4 sm:$0xff]  }
  0x94   : > { %1126 = vmatpush1.bf16.msra.mxu0 %v3235_v14  ;;  %v3311_v13 = vld [vmem:[%s4001_s11 + $0x104] ss:$16 sps:$4 sm:$0xff]   ;;  %v3350_v14 = vld [vmem:[#allocation8 + $0x1e0] ss:$8 sps:$4 sm:$0xff]  }
  0x95   : > { %1127 = vmatprep.subr.bf16.mxu0 %v3236_v15  ;;  %v3358_v15 = vld [vmem:[#allocation8 + $0x1f4] ss:$8 sps:$4 sm:$0xff]  }
  0x98   : > { %1128 = vmatpush1.bf16.msra.mxu0 %v3238_v16  ;;  %v3356_v16 = vld [vmem:[#allocation8 + $0x1f0] ss:$8 sps:$4 sm:$0xff]  }
  0x99   : > { %1129 = vmatprep.subr.bf16.mxu0 %v3239_v17  ;;  %v3313_v17 = vld [vmem:[%s4001_s11 + $0x100] ss:$16 sps:$4 sm:$0xff]  }
  0x9c   : > { %1130 = vmatpush1.bf16.msra.mxu0 %v3241_v18  ;;  %v3317_v18 = vld [vmem:[%s4001_s11 + $0x124] ss:$16 sps:$4 sm:$0xff]  }
  0x9d   : > { %1131 = vmatprep.subr.bf16.mxu0 %v3242_v19  ;;  %v3319_v19 = vld [vmem:[%s4001_s11 + $0x120] ss:$16 sps:$4 sm:$0xff]  }
  0xa0   : > { %1132 = vmatpush1.bf16.msra.mxu0 %v3244_v20  ;;  %v3323_v20 = vld [vmem:[%s4001_s11 + $0x144] ss:$16 sps:$4 sm:$0xff]  }
  0xa1   : > { %1133 = vmatprep.subr.bf16.mxu0 %v3245_v21  ;;  %v3325_v21 = vld [vmem:[%s4001_s11 + $0x140] ss:$16 sps:$4 sm:$0xff]  }
  0xa4   : > { %1134 = vmatpush1.bf16.msra.mxu0 %v3247_v22  ;;  %v3329_v22 = vld [vmem:[%s4001_s11 + $0x164] ss:$16 sps:$4 sm:$0xff]  }
  0xa5   : > { %1135 = vmatprep.subr.bf16.mxu0 %v3248_v23  ;;  %v3331_v23 = vld [vmem:[%s4001_s11 + $0x160] ss:$16 sps:$4 sm:$0xff]  }
  0xa8   : > { %1136 = vmatpush1.bf16.msra.mxu0 %v3250_v24  ;;  %v3335_v24 = vld [vmem:[%s4001_s11 + $0x184] ss:$16 sps:$4 sm:$0xff]  }
  0xa9   : > { %1137 = vmatprep.subr.bf16.mxu0 %v3251_v25  ;;  %v3337_v25 = vld [vmem:[%s4001_s11 + $0x180] ss:$16 sps:$4 sm:$0xff]  }
  0xac   : > { %1138 = vmatpush1.bf16.msra.mxu0 %v3253_v26  ;;  %v3341_v26 = vld [vmem:[%s4001_s11 + $0x1a4] ss:$16 sps:$4 sm:$0xff]  }
  0xad   : > { %1139 = vmatprep.subr.bf16.mxu0 %v3254_v27  ;;  %v3343_v27 = vld [vmem:[%s4001_s11 + $0x1a0] ss:$16 sps:$4 sm:$0xff]  }
  0xb0   : > { %1140 = vmatpush1.bf16.msra.mxu0 %v3256_v28  ;;  %v3347_v28 = vld [vmem:[%s4001_s11 + $0x1c4] ss:$16 sps:$4 sm:$0xff]  }
  0xb1   : > { %1141 = vmatprep.subr.bf16.mxu0 %v3257_v29  ;;  %v3349_v29 = vld [vmem:[%s4001_s11 + $0x1c0] ss:$16 sps:$4 sm:$0xff]  }
  0xb4   : > { %1142 = vmatpush1.bf16.msra.mxu0 %v3259_v30  ;;  %v3353_v30 = vld [vmem:[%s4001_s11 + $0x1e4] ss:$16 sps:$4 sm:$0xff]  }
  0xb5   : > { %1143 = vmatprep.subr.bf16.mxu0 %v3260_v31  ;;  %v3355_v31 = vld [vmem:[%s4001_s11 + $0x1e0] ss:$16 sps:$4 sm:$0xff]  }
  0xb8   : > { %1144 = vmatpush1.bf16.msra.mxu0 %v3262_v32  ;;  %v3361_v32 = vld [vmem:[%s4001_s11 + $0xc] ss:$16 sps:$4 sm:$0xff]  }
  0xb9   : > { %1306 = vmatprep.subr.bf16.mxu0 %v3268_v33  ;;  %v3359_v33 = vld [vmem:[%s4001_s11 + $0x8] ss:$16 sps:$4 sm:$0xff]  }
  0xbb   : > { %1146 = vmatmul.mubr.bf16.vlgmr.msra.gmra.mrb[0].mxu0 %v3263_v34  ;;  %v3362_v34 = vld [vmem:[%s4001_s11 + $0x2c] ss:$16 sps:$4 sm:$0xff]  }
  0xbc   : > { %1307 = vmatpush1.bf16.msra.mxu0 %v3266_v35  ;;  %1155 = vmatprep.mubr.bf16.mxu0 %v3269_v36  ;;  %v3364_v35 = vld [vmem:[%s4001_s11 + $0x28] ss:$16 sps:$4 sm:$0xff]   ;;  %v3365_v36 = vld [vmem:[%s4001_s11 + $0x4c] ss:$16 sps:$4 sm:$0xff]  }
  0xbd   : > { %1308 = vmatprep.subr.bf16.mxu0 %v3274_v37  ;;  %v3367_v37 = vld [vmem:[%s4001_s11 + $0x48] ss:$16 sps:$4 sm:$0xff]  }
  0xc0   : > { %1309 = vmatpush1.bf16.msra.mxu0 %v3272_v38  ;;  %v3368_v38 = vld [vmem:[%s4001_s11 + $0x6c] ss:$16 sps:$4 sm:$0xff]  }
  0xc1   : > { %1310 = vmatprep.subr.bf16.mxu0 %v3280_v39  ;;  %v3370_v39 = vld [vmem:[%s4001_s11 + $0x68] ss:$16 sps:$4 sm:$0xff]  }
  0xc3   : > { %1156 = vmatmul.mubr.bf16.gmra.mrb[4].mxu0 %v3271_v40  ;;  %v3371_v40 = vld [vmem:[%s4001_s11 + $0x8c] ss:$16 sps:$4 sm:$0xff]  }
  0xc4   : > { %1165 = vmatprep.mubr.bf16.mxu0 %v3275_v41  ;;  %1311 = vmatpush1.bf16.msra.mxu0 %v3278_v42  ;;  %v3373_v41 = vld [vmem:[%s4001_s11 + $0x88] ss:$16 sps:$4 sm:$0xff]   ;;  %v3374_v42 = vld [vmem:[%s4001_s11 + $0xac] ss:$16 sps:$4 sm:$0xff]  }
  0xc5   : > { %1312 = vmatprep.subr.bf16.mxu0 %v3286_v43  ;;  %v3376_v43 = vld [vmem:[%s4001_s11 + $0xa8] ss:$16 sps:$4 sm:$0xff]  }
  0xc8   : > { %1313 = vmatpush1.bf16.msra.mxu0 %v3284_v44  ;;  %v3377_v44 = vld [vmem:[%s4001_s11 + $0xcc] ss:$16 sps:$4 sm:$0xff]  }
  0xc9   : > { %1314 = vmatprep.subr.bf16.mxu0 %v3292_v45  ;;  %v3379_v45 = vld [vmem:[%s4001_s11 + $0xc8] ss:$16 sps:$4 sm:$0xff]  }
  0xcb   : > { %1166 = vmatmul.mubr.bf16.gmra.mrb[8].mxu0 %v3277_v46  ;;  %v3380_v46 = vld [vmem:[%s4001_s11 + $0xec] ss:$16 sps:$4 sm:$0xff]  }
  0xcc   : > { %1175 = vmatprep.mubr.bf16.mxu0 %v3281_v47  ;;  %1315 = vmatpush1.bf16.msra.mxu0 %v3290_v48  ;;  %v3382_v47 = vld [vmem:[%s4001_s11 + $0xe8] ss:$16 sps:$4 sm:$0xff]   ;;  %v3383_v48 = vld [vmem:[%s4001_s11 + $0x10c] ss:$16 sps:$4 sm:$0xff]  }
  0xcd   : > { %1316 = vmatprep.subr.bf16.mxu0 %v3298_v49  ;;  %v3385_v49 = vld [vmem:[%s4001_s11 + $0x108] ss:$16 sps:$4 sm:$0xff]  }
  0xd0   : > { %1317 = vmatpush1.bf16.msra.mxu0 %v3296_v50  ;;  %v3386_v50 = vld [vmem:[%s4001_s11 + $0x12c] ss:$16 sps:$4 sm:$0xff]  }
  0xd1   : > { %1318 = vmatprep.subr.bf16.mxu0 %v3304_v51  ;;  %v3388_v51 = vld [vmem:[%s4001_s11 + $0x128] ss:$16 sps:$4 sm:$0xff]  }
  0xd3   : > { %1176 = vmatmul.mubr.bf16.gmra.mrb[12].mxu0 %v3283_v52  ;;  %v3389_v52 = vld [vmem:[%s4001_s11 + $0x14c] ss:$16 sps:$4 sm:$0xff]  }
  0xd4   : > { %1185 = vmatprep.mubr.bf16.mxu0 %v3287_v53  ;;  %1319 = vmatpush1.bf16.msra.mxu0 %v3302_v54  ;;  %v3391_v53 = vld [vmem:[%s4001_s11 + $0x148] ss:$16 sps:$4 sm:$0xff]   ;;  %v3392_v54 = vld [vmem:[%s4001_s11 + $0x16c] ss:$16 sps:$4 sm:$0xff]  }
  0xd5   : > { %1320 = vmatprep.subr.bf16.mxu0 %v3310_v55  ;;  %v3394_v55 = vld [vmem:[%s4001_s11 + $0x168] ss:$16 sps:$4 sm:$0xff]  }
  0xd8   : > { %1321 = vmatpush1.bf16.msra.mxu0 %v3308_v56  ;;  %v3395_v56 = vld [vmem:[%s4001_s11 + $0x18c] ss:$16 sps:$4 sm:$0xff]  }
  0xd9   : > { %1322 = vmatprep.subr.bf16.mxu0 %v3316_v57  ;;  %v3397_v57 = vld [vmem:[%s4001_s11 + $0x188] ss:$16 sps:$4 sm:$0xff]  }
  0xdb   : > { %1186 = vmatmul.mubr.bf16.gmra.mrb[16].mxu0 %v3289_v58  ;;  %v3398_v58 = vld [vmem:[%s4001_s11 + $0x1ac] ss:$16 sps:$4 sm:$0xff]  }
  0xdc   : > { %1195 = vmatprep.mubr.bf16.mxu0 %v3293_v59  ;;  %1323 = vmatpush1.bf16.msra.mxu0 %v3314_v60  ;;  %v3400_v59 = vld [vmem:[%s4001_s11 + $0x1a8] ss:$16 sps:$4 sm:$0xff]   ;;  %v3401_v60 = vld [vmem:[%s4001_s11 + $0x1cc] ss:$16 sps:$4 sm:$0xff]  }
  0xdd   : > { %1324 = vmatprep.subr.bf16.mxu0 %v3322_v61  ;;  %v3403_v61 = vld [vmem:[%s4001_s11 + $0x1c8] ss:$16 sps:$4 sm:$0xff]  }
  0xe0   : > { %1325 = vmatpush1.bf16.msra.mxu0 %v3320_v62  ;;  %v3404_v62 = vld [vmem:[%s4001_s11 + $0x1ec] ss:$16 sps:$4 sm:$0xff]  }
  0xe1   : > { %1326 = vmatprep.subr.bf16.mxu0 %v3328_v63  ;;  %v3406_v63 = vld [vmem:[%s4001_s11 + $0x1e8] ss:$16 sps:$4 sm:$0xff]  }
  0xe3   : > { %1196 = vmatmul.mubr.bf16.gmra.mrb[20].mxu0 %v3295_v0  ;;  %v463_v0 = vlaneseq }
  0xe4   : > { %1205 = vmatprep.mubr.bf16.mxu0 %v3299_v1  ;;  %1327 = vmatpush1.bf16.msra.mxu0 %v3326_v2 }
  0xe5   : > { %1328 = vmatprep.subr.bf16.mxu0 %v3334_v3  ;;  %v464_v1 = vshrl.u32 %v463_v0, 7  ;;  %v461_v3 = vld [vmem:[%s5247_s2] sm:$0x3] }
  0xe7   : > { %v4085_v2 = vsub.s32 0, %v464_v1 }
  0xe8   : > { %1329 = vmatpush1.bf16.msra.mxu0 %v3332_v4  ;;  %v4090_v4 = vsub.s32 1, %v464_v1 }
  0xe9   : > { %1330 = vmatprep.subr.bf16.mxu0 %v3340_v5  ;;  %5281 = vst [vmem:[#allocation23_spill] sm:$0xff] %v4085_v2  ;;  %v4093_v5 = vrot.slane %v461_v3, %v4085_v2 }
  0xea   : > { %5282 = vst [vmem:[#allocation24_spill] sm:$0xff] %v4090_v4 }
  0xeb   : > { %1206 = vmatmul.mubr.bf16.gmra.mrb[24].mxu0 %v3301_v6  ;;  %v4096_v6 = vrot.slane %v461_v3, %v4090_v4 }
  0xec   : > { %1215 = vmatprep.mubr.bf16.mxu0 %v3305_v7  ;;  %1331 = vmatpush1.bf16.msra.mxu0 %v3338_v8 }
  0xed   : > { %1332 = vmatprep.subr.bf16.mxu0 %v3346_v9 }
  0xf0   : > { %1333 = vmatpush1.bf16.msra.mxu0 %v3344_v10 }
  0xf1   : > { %1334 = vmatprep.subr.bf16.mxu0 %v3352_v11 }
  0xf3   : > { %1216 = vmatmul.mubr.bf16.gmra.mrb[28].mxu0 %v3307_v12 }
  0xf4   : > { %1225 = vmatprep.mubr.bf16.mxu0 %v3311_v13  ;;  %1335 = vmatpush1.bf16.msra.mxu0 %v3350_v14 }
  0xf5   : > { %1336 = vmatprep.subr.bf16.mxu0 %v3358_v15 }
  0xf8   : > { %1337 = vmatpush1.bf16.msra.mxu0 %v3356_v16 }
  0xfb   : > { %1226 = vmatmul.mubr.bf16.gmra.mrb[32].mxu0 %v3313_v17 }
  0xfc   : > { %1235 = vmatprep.mubr.bf16.mxu0 %v3317_v18 }
 0x103   : > { %1236 = vmatmul.mubr.bf16.gmra.mrb[36].mxu0 %v3319_v19 }
 0x104   : > { %1245 = vmatprep.mubr.bf16.mxu0 %v3323_v20 }
 0x10b   : > { %1246 = vmatmul.mubr.bf16.gmra.mrb[40].mxu0 %v3325_v21 }
 0x10c   : > { %1255 = vmatprep.mubr.bf16.mxu0 %v3329_v22 }
 0x113   : > { %1256 = vmatmul.mubr.bf16.gmra.mrb[44].mxu0 %v3331_v23 }
 0x114   : > { %1265 = vmatprep.mubr.bf16.mxu0 %v3335_v24 }
 0x11b   : > { %1266 = vmatmul.mubr.bf16.gmra.mrb[48].mxu0 %v3337_v25 }
 0x11c   : > { %1275 = vmatprep.mubr.bf16.mxu0 %v3341_v26 }
 0x123   : > { %1276 = vmatmul.mubr.bf16.gmra.mrb[52].mxu0 %v3343_v27 }
 0x124   : > { %1285 = vmatprep.mubr.bf16.mxu0 %v3347_v28 }
 0x12b   : > { %1286 = vmatmul.mubr.bf16.gmra.mrb[56].mxu0 %v3349_v29 }
 0x12c   : > { %1295 = vmatprep.mubr.bf16.mxu0 %v3353_v30 }
 0x133   : > { %1296 = vmatmul.mubr.bf16.gmra.mrb[60].mxu0 %v3355_v31 }
 0x134   : > { %1338 = vmatprep.mubr.bf16.mxu0 %v3361_v32 }
 0x13b   : > { %1339 = vmatmul.mubr.bf16.vlgmr.msra.gmra.mrb[0].mxu0 %v3359_v33 }
 0x13c   : > { %1348 = vmatprep.mubr.bf16.mxu0 %v3362_v34 }
 0x143   : > { %1349 = vmatmul.mubr.bf16.gmra.mrb[4].mxu0 %v3364_v35 }
 0x144   : > { %1358 = vmatprep.mubr.bf16.mxu0 %v3365_v36 }
 0x14b   : > { %1359 = vmatmul.mubr.bf16.gmra.mrb[8].mxu0 %v3367_v37 }
 0x14c   : > { %1368 = vmatprep.mubr.bf16.mxu0 %v3368_v38 }
 0x153   : > { %1369 = vmatmul.mubr.bf16.gmra.mrb[12].mxu0 %v3370_v39 }
 0x154   : > { %1378 = vmatprep.mubr.bf16.mxu0 %v3371_v40 }
 0x15b   : > { %1379 = vmatmul.mubr.bf16.gmra.mrb[16].mxu0 %v3373_v41 }
 0x15c   : > { %1388 = vmatprep.mubr.bf16.mxu0 %v3374_v42 }
 0x163   : > { %1389 = vmatmul.mubr.bf16.gmra.mrb[20].mxu0 %v3376_v43 }
 0x164   : > { %1398 = vmatprep.mubr.bf16.mxu0 %v3377_v44 }
 0x16b   : > { %1399 = vmatmul.mubr.bf16.gmra.mrb[24].mxu0 %v3379_v45 }
 0x16c   : > { %1408 = vmatprep.mubr.bf16.mxu0 %v3380_v46 }
 0x173   : > { %1409 = vmatmul.mubr.bf16.gmra.mrb[28].mxu0 %v3382_v47 }
 0x174   : > { %1418 = vmatprep.mubr.bf16.mxu0 %v3383_v48 }
 0x17b   : > { %1419 = vmatmul.mubr.bf16.gmra.mrb[32].mxu0 %v3385_v49 }
 0x17c   : > { %1428 = vmatprep.mubr.bf16.mxu0 %v3386_v50 }
 0x183   : > { %1429 = vmatmul.mubr.bf16.gmra.mrb[36].mxu0 %v3388_v51 }
 0x184   : > { %1438 = vmatprep.mubr.bf16.mxu0 %v3389_v52 }
 0x18b   : > { %1439 = vmatmul.mubr.bf16.gmra.mrb[40].mxu0 %v3391_v53 }
 0x18c   : > { %1448 = vmatprep.mubr.bf16.mxu0 %v3392_v54 }
 0x193   : > { %1449 = vmatmul.mubr.bf16.gmra.mrb[44].mxu0 %v3394_v55 }
 0x194   : > { %1458 = vmatprep.mubr.bf16.mxu0 %v3395_v56 }
 0x19b   : > { %1459 = vmatmul.mubr.bf16.gmra.mrb[48].mxu0 %v3397_v57 }
 0x19c   : > { %1468 = vmatprep.mubr.bf16.mxu0 %v3398_v58 }
 0x1a3   : > { %1469 = vmatmul.mubr.bf16.gmra.mrb[52].mxu0 %v3400_v59 }
 0x1a4   : > { %1478 = vmatprep.mubr.bf16.mxu0 %v3401_v60 }
 0x1ab   : > { %1479 = vmatmul.mubr.bf16.gmra.mrb[56].mxu0 %v3403_v61 }
 0x1ac   : > { %1488 = vmatprep.mubr.bf16.mxu0 %v3404_v62 }
 0x1b3   : > { %1489 = vmatmul.mubr.bf16.gmra.mrb[60].mxu0 %v3406_v63 }
 0x20e   : > { %v1340_v7 = vpop.f32.mrb[0].mxu0 }
 0x20f   : > { %v3014_v8 = vadd.f32 %v1340_v7, %v4093_v5  ;;  %v1342_v9 = vpop.f32.mrb[1].mxu0 }
 0x210   : > { %v3015_v10 = vadd.f32 %v1342_v9, %v4096_v6  ;;  %v1344_v11 = vpop.f32.mrb[2].mxu0 }
 0x211   : > { %v1499_v12 = vmul.f32 0.5, %v3014_v8  ;;  %v3016_v13 = vadd.f32 %v1344_v11, %v4093_v5  ;;  %v1346_v14 = vpop.f32.mrb[3].mxu0 }
 0x212   : > { %v1500_v15 = vmul.f32 0.5, %v3015_v10  ;;  %v3017_v16 = vadd.f32 %v1346_v14, %v4096_v6 }
 0x213   : > { %3407 = vtanh.f32 %v1499_v12  ;;  %v1501_v17 = vmul.f32 0.5, %v3016_v13 }
 0x214   : > { %3409 = vtanh.f32 %v1500_v15  ;;  %v1502_v18 = vmul.f32 0.5, %v3017_v16 }
 0x215   : > { %3411 = vtanh.f32 %v1501_v17 }
 0x216   : > { %3413 = vtanh.f32 %v1502_v18  ;;  %v1350_v19 = vpop.f32.mrb[4].mxu0 }
 0x217   : > { %v4103_v20 = vadd.f32 %v1350_v19, %v4093_v5  ;;  %v1352_v21 = vpop.f32.mrb[5].mxu0 }
 0x218   : > { %v4106_v22 = vadd.f32 %v1352_v21, %v4096_v6  ;;  %v1354_v23 = vpop.f32.mrb[6].mxu0 }
 0x219   : > { %v1503_v24 = vmul.f32 0.5, %v4103_v20  ;;  %v4110_v25 = vadd.f32 %v1354_v23, %v4093_v5  ;;  %v1356_v26 = vpop.f32.mrb[7].mxu0 }
 0x21a   : > { %v1504_v27 = vmul.f32 0.5, %v4106_v22  ;;  %v4114_v28 = vadd.f32 %v1356_v26, %v4096_v6 }
 0x21b   : > { %3415 = vtanh.f32 %v1503_v24  ;;  %v1505_v29 = vmul.f32 0.5, %v4110_v25 }
 0x21c   : > { %3417 = vtanh.f32 %v1504_v27  ;;  %v1506_v30 = vmul.f32 0.5, %v4114_v28 }
 0x21d   : > { %v3408_v31 = vpop.eup %3407  ;;  %3419 = vtanh.f32 %v1505_v29 }
 0x21e   : > { %v3410_v32 = vpop.eup %3409  ;;  %v1627_v33 = vmul.f32 0.5, %v3408_v31  ;;  %3421 = vtanh.f32 %v1506_v30  ;;  %v1360_v34 = vpop.f32.mrb[8].mxu0 }
 0x21f   : > { %v3412_v35 = vpop.eup %3411  ;;  %v1628_v36 = vmul.f32 0.5, %v3410_v32  ;;  %v4119_v37 = vadd.f32 %v1360_v34, %v4093_v5  ;;  %v1362_v38 = vpop.f32.mrb[9].mxu0 }
 0x220   : > { %v3414_v39 = vpop.eup %3413  ;;  %v1691_v40 = vadd.f32 0.5, %v1627_v33  ;;  %v1629_v41 = vmul.f32 0.5, %v3412_v35  ;;  %v4122_v42 = vadd.f32 %v1362_v38, %v4096_v6  ;;  %v1364_v43 = vpop.f32.mrb[10].mxu0 }
 0x221   : > { %v1692_v44 = vadd.f32 0.5, %v1628_v36  ;;  %v1630_v45 = vmul.f32 0.5, %v3414_v39  ;;  %v1507_v46 = vmul.f32 0.5, %v4119_v37  ;;  %v4126_v47 = vadd.f32 %v1364_v43, %v4093_v5  ;;  %v1366_v48 = vpop.f32.mrb[11].mxu0 }
 0x222   : > { %v4128_v49 = vmul.f32 %v3014_v8, %v1691_v40  ;;  %v1693_v50 = vadd.f32 0.5, %v1629_v41  ;;  %v1508_v51 = vmul.f32 0.5, %v4122_v42  ;;  %v4132_v52 = vadd.f32 %v1366_v48, %v4096_v6 }
 0x223   : > { %v4134_v53 = vmul.f32 %v3015_v10, %v1692_v44  ;;  %v1694_v54 = vadd.f32 0.5, %v1630_v45  ;;  %3423 = vtanh.f32 %v1507_v46  ;;  %v1509_v55 = vmul.f32 0.5, %v4126_v47 }
 0x224   : > { %v4137_v56 = vmul.f32 %v3016_v13, %v1693_v50  ;;  %3425 = vtanh.f32 %v1508_v51  ;;  %v1510_v57 = vmul.f32 0.5, %v4132_v52 }
 0x225   : > { %v3416_v58 = vpop.eup %3415  ;;  %v4140_v59 = vmul.f32 %v3017_v16, %v1694_v54  ;;  %3427 = vtanh.f32 %v1509_v55 }
 0x226   : > { %v3418_v60 = vpop.eup %3417  ;;  %v1631_v61 = vmul.f32 0.5, %v3416_v58  ;;  %3429 = vtanh.f32 %v1510_v57  ;;  %v1370_v62 = vpop.f32.mrb[12].mxu0 }
 0x227   : > { %v3420_v63 = vpop.eup %3419  ;;  %v1632_v0 = vmul.f32 0.5, %v3418_v60  ;;  %v4143_v1 = vadd.f32 %v1370_v62, %v4093_v5  ;;  %v1372_v3 = vpop.f32.mrb[13].mxu0 }
 0x228   : > { %v3422_v7 = vpop.eup %3421  ;;  %v1695_v8 = vadd.f32 0.5, %v1631_v61  ;;  %v1633_v9 = vmul.f32 0.5, %v3420_v63  ;;  %v4146_v10 = vadd.f32 %v1372_v3, %v4096_v6  ;;  %v1374_v11 = vpop.f32.mrb[14].mxu0 }
 0x229   : > { %v1696_v12 = vadd.f32 0.5, %v1632_v0  ;;  %v1634_v13 = vmul.f32 0.5, %v3422_v7  ;;  %v1511_v14 = vmul.f32 0.5, %v4143_v1  ;;  %v4150_v15 = vadd.f32 %v1374_v11, %v4093_v5  ;;  %v1376_v16 = vpop.f32.mrb[15].mxu0 }
 0x22a   : > { %v4153_v17 = vmul.f32 %v4103_v20, %v1695_v8  ;;  %v1697_v18 = vadd.f32 0.5, %v1633_v9  ;;  %v1512_v19 = vmul.f32 0.5, %v4146_v10  ;;  %v4157_v21 = vadd.f32 %v1376_v16, %v4096_v6 }
 0x22b   : > { %v4160_v23 = vmul.f32 %v4106_v22, %v1696_v12  ;;  %v1698_v24 = vadd.f32 0.5, %v1634_v13  ;;  %3431 = vtanh.f32 %v1511_v14  ;;  %v1513_v26 = vmul.f32 0.5, %v4150_v15 }
 0x22c   : > { %v4164_v27 = vmul.f32 %v4110_v25, %v1697_v18  ;;  %3433 = vtanh.f32 %v1512_v19  ;;  %v1514_v20 = vmul.f32 0.5, %v4157_v21 }
 0x22d   : > { %v3424_v29 = vpop.eup %3423  ;;  %v4168_v30 = vmul.f32 %v4114_v28, %v1698_v24  ;;  %3435 = vtanh.f32 %v1513_v26 }
 0x22e   : > { %v3426_v31 = vpop.eup %3425  ;;  %v1635_v32 = vmul.f32 0.5, %v3424_v29  ;;  %3437 = vtanh.f32 %v1514_v20  ;;  %v1380_v22 = vpop.f32.mrb[16].mxu0 }
 0x22f   : > { %v3428_v33 = vpop.eup %3427  ;;  %v1636_v34 = vmul.f32 0.5, %v3426_v31  ;;  %v4171_v35 = vadd.f32 %v1380_v22, %v4093_v5  ;;  %v1382_v36 = vpop.f32.mrb[17].mxu0 }
 0x230   : > { %v3430_v25 = vpop.eup %3429  ;;  %v1699_v38 = vadd.f32 0.5, %v1635_v32  ;;  %v1637_v39 = vmul.f32 0.5, %v3428_v33  ;;  %v4174_v40 = vadd.f32 %v1382_v36, %v4096_v6  ;;  %v1384_v41 = vpop.f32.mrb[18].mxu0 }
 0x231   : > { %v1700_v28 = vadd.f32 0.5, %v1636_v34  ;;  %v1638_v43 = vmul.f32 0.5, %v3430_v25  ;;  %v1515_v44 = vmul.f32 0.5, %v4171_v35  ;;  %v4178_v45 = vadd.f32 %v1384_v41, %v4093_v5  ;;  %v1386_v46 = vpop.f32.mrb[19].mxu0 }
 0x232   : > { %v4181_v48 = vmul.f32 %v4119_v37, %v1699_v38  ;;  %v1701_v50 = vadd.f32 0.5, %v1637_v39  ;;  %v1516_v51 = vmul.f32 0.5, %v4174_v40  ;;  %v4185_v54 = vadd.f32 %v1386_v46, %v4096_v6 }
 0x233   : > { %v4188_v55 = vmul.f32 %v4122_v42, %v1700_v28  ;;  %v1702_v57 = vadd.f32 0.5, %v1638_v43  ;;  %3439 = vtanh.f32 %v1515_v44  ;;  %v1517_v58 = vmul.f32 0.5, %v4178_v45 }
 0x234   : > { %v4192_v60 = vmul.f32 %v4126_v47, %v1701_v50  ;;  %3441 = vtanh.f32 %v1516_v51  ;;  %v1518_v37 = vmul.f32 0.5, %v4185_v54 }
 0x235   : > { %v3432_v61 = vpop.eup %3431  ;;  %v4196_v62 = vmul.f32 %v4132_v52, %v1702_v57  ;;  %3443 = vtanh.f32 %v1517_v58 }
 0x236   : > { %v3434_v63 = vpop.eup %3433  ;;  %v1639_v0 = vmul.f32 0.5, %v3432_v61  ;;  %3445 = vtanh.f32 %v1518_v37  ;;  %v1390_v42 = vpop.f32.mrb[20].mxu0 }
 0x237   : > { %v3436_v3 = vpop.eup %3435  ;;  %v1640_v7 = vmul.f32 0.5, %v3434_v63  ;;  %v4199_v8 = vadd.f32 %v1390_v42, %v4093_v5  ;;  %v1392_v9 = vpop.f32.mrb[21].mxu0 }
 0x238   : > { %v3438_v47 = vpop.eup %3437  ;;  %v1703_v11 = vadd.f32 0.5, %v1639_v0  ;;  %v1641_v12 = vmul.f32 0.5, %v3436_v3  ;;  %v4202_v13 = vadd.f32 %v1392_v9, %v4096_v6  ;;  %v1394_v14 = vpop.f32.mrb[22].mxu0 }
 0x239   : > { %v1704_v52 = vadd.f32 0.5, %v1640_v7  ;;  %v1642_v16 = vmul.f32 0.5, %v3438_v47  ;;  %v1519_v18 = vmul.f32 0.5, %v4199_v8  ;;  %v4206_v19 = vadd.f32 %v1394_v14, %v4093_v5  ;;  %v1396_v24 = vpop.f32.mrb[23].mxu0 }
 0x23a   : > { %v4209_v26 = vmul.f32 %v4143_v1, %v1703_v11  ;;  %v1705_v20 = vadd.f32 0.5, %v1641_v12  ;;  %v1520_v29 = vmul.f32 0.5, %v4202_v13  ;;  %v4213_v31 = vadd.f32 %v1396_v24, %v4096_v6 }
 0x23b   : > { %v4216_v32 = vmul.f32 %v4146_v10, %v1704_v52  ;;  %v1706_v22 = vadd.f32 0.5, %v1642_v16  ;;  %3447 = vtanh.f32 %v1519_v18  ;;  %v1521_v33 = vmul.f32 0.5, %v4206_v19 }
 0x23c   : > { %v4220_v34 = vmul.f32 %v4150_v15, %v1705_v20  ;;  %3449 = vtanh.f32 %v1520_v29  ;;  %v1522_v1 = vmul.f32 0.5, %v4213_v31 }
 0x23d   : > { %v3440_v36 = vpop.eup %3439  ;;  %v4224_v25 = vmul.f32 %v4157_v21, %v1706_v22  ;;  %3451 = vtanh.f32 %v1521_v33 }
 0x23e   : > { %v3442_v38 = vpop.eup %3441  ;;  %v1643_v39 = vmul.f32 0.5, %v3440_v36  ;;  %3453 = vtanh.f32 %v1522_v1  ;;  %v1400_v10 = vpop.f32.mrb[24].mxu0 }
 0x23f   : > { %v3444_v41 = vpop.eup %3443  ;;  %v1644_v28 = vmul.f32 0.5, %v3442_v38  ;;  %v4227_v43 = vadd.f32 %v1400_v10, %v4093_v5  ;;  %v1402_v44 = vpop.f32.mrb[25].mxu0 }
 0x240   : > { %v3446_v15 = vpop.eup %3445  ;;  %v1707_v46 = vadd.f32 0.5, %v1643_v39  ;;  %v1645_v50 = vmul.f32 0.5, %v3444_v41  ;;  %v4230_v51 = vadd.f32 %v1402_v44, %v4096_v6  ;;  %v1404_v57 = vpop.f32.mrb[26].mxu0 }
 0x241   : > { %v1708_v21 = vadd.f32 0.5, %v1644_v28  ;;  %v1646_v58 = vmul.f32 0.5, %v3446_v15  ;;  %v1523_v37 = vmul.f32 0.5, %v4227_v43  ;;  %v4234_v61 = vadd.f32 %v1404_v57, %v4093_v5  ;;  %v1406_v63 = vpop.f32.mrb[27].mxu0 }
 0x242   : > { %v4237_v0 = vmul.f32 %v4171_v35, %v1707_v46  ;;  %v1709_v42 = vadd.f32 0.5, %v1645_v50  ;;  %v1524_v3 = vmul.f32 0.5, %v4230_v51  ;;  %v4241_v7 = vadd.f32 %v1406_v63, %v4096_v6 }
 0x243   : > { %v4244_v9 = vmul.f32 %v4174_v40, %v1708_v21  ;;  %v1710_v47 = vadd.f32 0.5, %v1646_v58  ;;  %3455 = vtanh.f32 %v1523_v37  ;;  %v1525_v11 = vmul.f32 0.5, %v4234_v61 }
 0x244   : > { %v4248_v12 = vmul.f32 %v4178_v45, %v1709_v42  ;;  %3457 = vtanh.f32 %v1524_v3  ;;  %v1526_v35 = vmul.f32 0.5, %v4241_v7 }
 0x245   : > { %v3448_v14 = vpop.eup %3447  ;;  %v4252_v52 = vmul.f32 %v4185_v54, %v1710_v47  ;;  %3459 = vtanh.f32 %v1525_v11 }
 0x246   : > { %v3450_v16 = vpop.eup %3449  ;;  %v1647_v18 = vmul.f32 0.5, %v3448_v14  ;;  %3461 = vtanh.f32 %v1526_v35  ;;  %v1410_v40 = vpop.f32.mrb[28].mxu0 }
 0x247   : > { %v3452_v24 = vpop.eup %3451  ;;  %v1648_v20 = vmul.f32 0.5, %v3450_v16  ;;  %v4255_v29 = vadd.f32 %v1410_v40, %v4093_v5  ;;  %v1412_v22 = vpop.f32.mrb[29].mxu0 }
 0x248   : > { %v3454_v45 = vpop.eup %3453  ;;  %v1711_v33 = vadd.f32 0.5, %v1647_v18  ;;  %v1649_v1 = vmul.f32 0.5, %v3452_v24  ;;  %v4258_v36 = vadd.f32 %v1412_v22, %v4096_v6  ;;  %v1414_v38 = vpop.f32.mrb[30].mxu0 }
 0x249   : > { %v1712_v54 = vadd.f32 0.5, %v1648_v20  ;;  %v1650_v39 = vmul.f32 0.5, %v3454_v45  ;;  %v1527_v10 = vmul.f32 0.5, %v4255_v29  ;;  %v4262_v41 = vadd.f32 %v1414_v38, %v4093_v5  ;;  %v1416_v28 = vpop.f32.mrb[31].mxu0 }
 0x24a   : > { %v4265_v44 = vmul.f32 %v4199_v8, %v1711_v33  ;;  %v1713_v15 = vadd.f32 0.5, %v1649_v1  ;;  %v1528_v46 = vmul.f32 0.5, %v4258_v36  ;;  %v4269_v50 = vadd.f32 %v1416_v28, %v4096_v6 }
 0x24b   : > { %v4272_v57 = vmul.f32 %v4202_v13, %v1712_v54  ;;  %v1714_v21 = vadd.f32 0.5, %v1650_v39  ;;  %3463 = vtanh.f32 %v1527_v10  ;;  %v1529_v58 = vmul.f32 0.5, %v4262_v41 }
 0x24c   : > { %v4276_v37 = vmul.f32 %v4206_v19, %v1713_v15  ;;  %3465 = vtanh.f32 %v1528_v46  ;;  %v1530_v8 = vmul.f32 0.5, %v4269_v50 }
 0x24d   : > { %v3456_v63 = vpop.eup %3455  ;;  %v4280_v42 = vmul.f32 %v4213_v31, %v1714_v21  ;;  %3467 = vtanh.f32 %v1529_v58 }
 0x24e   : > { %v3458_v3 = vpop.eup %3457  ;;  %v1651_v47 = vmul.f32 0.5, %v3456_v63  ;;  %3469 = vtanh.f32 %v1530_v8  ;;  %v1420_v13 = vpop.f32.mrb[32].mxu0 }
 0x24f   : > { %v3460_v11 = vpop.eup %3459  ;;  %v1652_v35 = vmul.f32 0.5, %v3458_v3  ;;  %v4283_v14 = vadd.f32 %v1420_v13, %v4093_v5  ;;  %v1422_v16 = vpop.f32.mrb[33].mxu0 }
 0x250   : > { %v3462_v19 = vpop.eup %3461  ;;  %v1715_v18 = vadd.f32 0.5, %v1651_v47  ;;  %v1653_v40 = vmul.f32 0.5, %v3460_v11  ;;  %v4286_v24 = vadd.f32 %v1422_v16, %v4096_v6  ;;  %v1424_v20 = vpop.f32.mrb[34].mxu0 }
 0x251   : > { %v1716_v31 = vadd.f32 0.5, %v1652_v35  ;;  %v1654_v22 = vmul.f32 0.5, %v3462_v19  ;;  %v1531_v45 = vmul.f32 0.5, %v4283_v14  ;;  %v4290_v33 = vadd.f32 %v1424_v20, %v4093_v5  ;;  %v1426_v1 = vpop.f32.mrb[35].mxu0 }
 0x252   : > { %v4293_v38 = vmul.f32 %v4227_v43, %v1715_v18  ;;  %v1717_v54 = vadd.f32 0.5, %v1653_v40  ;;  %v1532_v39 = vmul.f32 0.5, %v4286_v24  ;;  %v4297_v10 = vadd.f32 %v1426_v1, %v4096_v6 }
 0x253   : > { %v4300_v28 = vmul.f32 %v4230_v51, %v1716_v31  ;;  %v1718_v15 = vadd.f32 0.5, %v1654_v22  ;;  %3471 = vtanh.f32 %v1531_v45  ;;  %v1533_v46 = vmul.f32 0.5, %v4290_v33 }
 0x254   : > { %v4304_v21 = vmul.f32 %v4234_v61, %v1717_v54  ;;  %3473 = vtanh.f32 %v1532_v39  ;;  %v1534_v43 = vmul.f32 0.5, %v4297_v10 }
 0x255   : > { %v3464_v58 = vpop.eup %3463  ;;  %v4308_v8 = vmul.f32 %v4241_v7, %v1718_v15  ;;  %3475 = vtanh.f32 %v1533_v46 }
 0x256   : > { %v3466_v63 = vpop.eup %3465  ;;  %v1655_v3 = vmul.f32 0.5, %v3464_v58  ;;  %3477 = vtanh.f32 %v1534_v43  ;;  %v1430_v51 = vpop.f32.mrb[36].mxu0 }
 0x257   : > { %v3468_v47 = vpop.eup %3467  ;;  %v1656_v13 = vmul.f32 0.5, %v3466_v63  ;;  %v4311_v11 = vadd.f32 %v1430_v51, %v4093_v5  ;;  %v1432_v35 = vpop.f32.mrb[37].mxu0 }
 0x258   : > { %v3470_v61 = vpop.eup %3469  ;;  %v1719_v16 = vadd.f32 0.5, %v1655_v3  ;;  %v1657_v19 = vmul.f32 0.5, %v3468_v47  ;;  %v4314_v18 = vadd.f32 %v1432_v35, %v4096_v6  ;;  %v1434_v40 = vpop.f32.mrb[38].mxu0 }
 0x259   : > { %v1720_v7 = vadd.f32 0.5, %v1656_v13  ;;  %v1658_v20 = vmul.f32 0.5, %v3470_v61  ;;  %v1535_v31 = vmul.f32 0.5, %v4311_v11  ;;  %v4318_v22 = vadd.f32 %v1434_v40, %v4093_v5  ;;  %v1436_v45 = vpop.f32.mrb[39].mxu0 }
 0x25a   : > { %v4321_v1 = vmul.f32 %v4255_v29, %v1719_v16  ;;  %v1721_v54 = vadd.f32 0.5, %v1657_v19  ;;  %v1536_v39 = vmul.f32 0.5, %v4314_v18  ;;  %v4325_v15 = vadd.f32 %v1436_v45, %v4096_v6 }
 0x25b   : > { %v4328_v46 = vmul.f32 %v4258_v36, %v1720_v7  ;;  %v1722_v43 = vadd.f32 0.5, %v1658_v20  ;;  %3479 = vtanh.f32 %v1535_v31  ;;  %v1537_v58 = vmul.f32 0.5, %v4318_v22 }
 0x25c   : > { %v4332_v63 = vmul.f32 %v4262_v41, %v1721_v54  ;;  %3481 = vtanh.f32 %v1536_v39  ;;  %v1538_v29 = vmul.f32 0.5, %v4325_v15 }
 0x25d   : > { %v3472_v3 = vpop.eup %3471  ;;  %v4336_v51 = vmul.f32 %v4269_v50, %v1722_v43  ;;  %3483 = vtanh.f32 %v1537_v58 }
 0x25e   : > { %v3474_v47 = vpop.eup %3473  ;;  %v1659_v13 = vmul.f32 0.5, %v3472_v3  ;;  %3485 = vtanh.f32 %v1538_v29  ;;  %v1440_v36 = vpop.f32.mrb[40].mxu0 }
 0x25f   : > { %v3476_v35 = vpop.eup %3475  ;;  %v1660_v61 = vmul.f32 0.5, %v3474_v47  ;;  %v4339_v16 = vadd.f32 %v1440_v36, %v4093_v5  ;;  %v1442_v19 = vpop.f32.mrb[41].mxu0 }
 0x260   : > { %v3478_v41 = vpop.eup %3477  ;;  %v1723_v40 = vadd.f32 0.5, %v1659_v13  ;;  %v1661_v7 = vmul.f32 0.5, %v3476_v35  ;;  %v4342_v20 = vadd.f32 %v1442_v19, %v4096_v6  ;;  %v1444_v31 = vpop.f32.mrb[42].mxu0 }
 0x261   : > { %v1724_v50 = vadd.f32 0.5, %v1660_v61  ;;  %v1662_v45 = vmul.f32 0.5, %v3478_v41  ;;  %v1539_v54 = vmul.f32 0.5, %v4339_v16  ;;  %v4346_v39 = vadd.f32 %v1444_v31, %v4093_v5  ;;  %v1446_v43 = vpop.f32.mrb[43].mxu0 }
 0x262   : > { %v4349_v58 = vmul.f32 %v4283_v14, %v1723_v40  ;;  %v1725_v29 = vadd.f32 0.5, %v1661_v7  ;;  %v1540_v3 = vmul.f32 0.5, %v4342_v20  ;;  %v4353_v47 = vadd.f32 %v1446_v43, %v4096_v6 }
 0x263   : > { %v4356_v13 = vmul.f32 %v4286_v24, %v1724_v50  ;;  %v1726_v36 = vadd.f32 0.5, %v1662_v45  ;;  %3487 = vtanh.f32 %v1539_v54  ;;  %v1541_v35 = vmul.f32 0.5, %v4346_v39 }
 0x264   : > { %5283 = vst [vmem:[#allocation25_spill] sm:$0xff] %v4349_v58  ;;  %v4360_v61 = vmul.f32 %v4290_v33, %v1725_v29  ;;  %3489 = vtanh.f32 %v1540_v3  ;;  %v1542_v14 = vmul.f32 0.5, %v4353_v47 }
 0x265   : > { %v3480_v19 = vpop.eup %3479  ;;  %v4364_v41 = vmul.f32 %v4297_v10, %v1726_v36  ;;  %3491 = vtanh.f32 %v1541_v35 }
 0x266   : > { %5284 = vst [vmem:[#allocation26_spill] sm:$0xff] %v4360_v61  ;;  %v3482_v40 = vpop.eup %3481  ;;  %v1663_v7 = vmul.f32 0.5, %v3480_v19  ;;  %3493 = vtanh.f32 %v1542_v14  ;;  %v1450_v24 = vpop.f32.mrb[44].mxu0 }
 0x267   : > { %v3484_v31 = vpop.eup %3483  ;;  %v1664_v50 = vmul.f32 0.5, %v3482_v40  ;;  %v4367_v45 = vadd.f32 %v1450_v24, %v4093_v5  ;;  %v1452_v54 = vpop.f32.mrb[45].mxu0 }
 0x268   : > { %v3486_v33 = vpop.eup %3485  ;;  %v1727_v43 = vadd.f32 0.5, %v1663_v7  ;;  %v1665_v29 = vmul.f32 0.5, %v3484_v31  ;;  %v4370_v3 = vadd.f32 %v1452_v54, %v4096_v6  ;;  %v1454_v4 = vpop.f32.mrb[46].mxu0 }
 0x269   : > { %v1728_v10 = vadd.f32 0.5, %v1664_v50  ;;  %v1666_v36 = vmul.f32 0.5, %v3486_v33  ;;  %v1543_v35 = vmul.f32 0.5, %v4367_v45  ;;  %v4374_v14 = vadd.f32 %v1454_v4, %v4093_v5  ;;  %v1456_v19 = vpop.f32.mrb[47].mxu0 }
 0x26a   : > { %v4377_v40 = vmul.f32 %v4311_v11, %v1727_v43  ;;  %v1729_v24 = vadd.f32 0.5, %v1665_v29  ;;  %v1544_v2 = vmul.f32 0.5, %v4370_v3  ;;  %v4381_v7 = vadd.f32 %v1456_v19, %v4096_v6 }
 0x26b   : > { %v4384_v31 = vmul.f32 %v4314_v18, %v1728_v10  ;;  %v1730_v50 = vadd.f32 0.5, %v1666_v36  ;;  %3495 = vtanh.f32 %v1543_v35  ;;  %v1545_v54 = vmul.f32 0.5, %v4374_v14 }
 0x26c   : > { %5285 = vst [vmem:[#allocation27_spill] sm:$0xff] %v4377_v40  ;;  %v4388_v4 = vmul.f32 %v4318_v22, %v1729_v24  ;;  %3497 = vtanh.f32 %v1544_v2  ;;  %v1546_v11 = vmul.f32 0.5, %v4381_v7 }
 0x26d   : > { %5286 = vst [vmem:[#allocation28_spill] sm:$0xff] %v4384_v31  ;;  %v3488_v33 = vpop.eup %3487  ;;  %v4392_v43 = vmul.f32 %v4325_v15, %v1730_v50  ;;  %3499 = vtanh.f32 %v1545_v54 }
 0x26e   : > { %5287 = vst [vmem:[#allocation29_spill] sm:$0xff] %v4388_v4  ;;  %v3490_v29 = vpop.eup %3489  ;;  %v1667_v19 = vmul.f32 0.5, %v3488_v33  ;;  %3501 = vtanh.f32 %v1546_v11  ;;  %v1460_v18 = vpop.f32.mrb[48].mxu0 }
 0x26f   : > { %5288 = vst [vmem:[#allocation30_spill] sm:$0xff] %v4392_v43  ;;  %v3492_v10 = vpop.eup %3491  ;;  %v1668_v36 = vmul.f32 0.5, %v3490_v29  ;;  %v4395_v35 = vadd.f32 %v1460_v18, %v4093_v5  ;;  %v1462_v40 = vpop.f32.mrb[49].mxu0 }
 0x270   : > { %v3494_v22 = vpop.eup %3493  ;;  %v1731_v24 = vadd.f32 0.5, %v1667_v19  ;;  %v1669_v2 = vmul.f32 0.5, %v3492_v10  ;;  %v4398_v4 = vadd.f32 %v1462_v40, %v4096_v6  ;;  %v1464_v31 = vpop.f32.mrb[50].mxu0 }
 0x271   : > { %v1732_v15 = vadd.f32 0.5, %v1668_v36  ;;  %v1670_v50 = vmul.f32 0.5, %v3494_v22  ;;  %v1547_v54 = vmul.f32 0.5, %v4395_v35  ;;  %v4402_v11 = vadd.f32 %v1464_v31, %v4093_v5  ;;  %v1466_v33 = vpop.f32.mrb[51].mxu0 }
 0x272   : > { %v4405_v29 = vmul.f32 %v4339_v16, %v1731_v24  ;;  %v1733_v18 = vadd.f32 0.5, %v1669_v2  ;;  %v1548_v43 = vmul.f32 0.5, %v4398_v4  ;;  %v4409_v19 = vadd.f32 %v1466_v33, %v4096_v6 }
 0x273   : > { %v4412_v40 = vmul.f32 %v4342_v20, %v1732_v15  ;;  %v1734_v10 = vadd.f32 0.5, %v1670_v50  ;;  %3503 = vtanh.f32 %v1547_v54  ;;  %v1549_v36 = vmul.f32 0.5, %v4402_v11 }
 0x274   : > { %5289 = vst [vmem:[#allocation31_spill] sm:$0xff] %v4405_v29  ;;  %v4416_v31 = vmul.f32 %v4346_v39, %v1733_v18  ;;  %3505 = vtanh.f32 %v1548_v43  ;;  %v1550_v16 = vmul.f32 0.5, %v4409_v19 }
 0x275   : > { %5290 = vst [vmem:[#allocation32_spill] sm:$0xff] %v4412_v40  ;;  %v3496_v22 = vpop.eup %3495  ;;  %v4420_v24 = vmul.f32 %v4353_v47, %v1734_v10  ;;  %3507 = vtanh.f32 %v1549_v36 }
 0x276   : > { %5291 = vst [vmem:[#allocation33_spill] sm:$0xff] %v4416_v31  ;;  %v3498_v2 = vpop.eup %3497  ;;  %v1671_v33 = vmul.f32 0.5, %v3496_v22  ;;  %3509 = vtanh.f32 %v1550_v16  ;;  %v1470_v20 = vpop.f32.mrb[52].mxu0 }
 0x277   : > { %5292 = vst [vmem:[#allocation34_spill] sm:$0xff] %v4420_v24  ;;  %v3500_v15 = vpop.eup %3499  ;;  %v1672_v50 = vmul.f32 0.5, %v3498_v2  ;;  %v4423_v54 = vadd.f32 %v1470_v20, %v4093_v5  ;;  %v1472_v29 = vpop.f32.mrb[53].mxu0 }
 0x278   : > { %v3502_v39 = vpop.eup %3501  ;;  %v1735_v18 = vadd.f32 0.5, %v1671_v33  ;;  %v1673_v43 = vmul.f32 0.5, %v3500_v15  ;;  %v4426_v31 = vadd.f32 %v1472_v29, %v4096_v6  ;;  %v1474_v40 = vpop.f32.mrb[54].mxu0 }
 0x279   : > { %v1736_v47 = vadd.f32 0.5, %v1672_v50  ;;  %v1674_v10 = vmul.f32 0.5, %v3502_v39  ;;  %v1551_v36 = vmul.f32 0.5, %v4423_v54  ;;  %v4430_v16 = vadd.f32 %v1474_v40, %v4093_v5  ;;  %v1476_v22 = vpop.f32.mrb[55].mxu0 }
 0x27a   : > { %v4433_v2 = vmul.f32 %v4367_v45, %v1735_v18  ;;  %v1737_v20 = vadd.f32 0.5, %v1673_v43  ;;  %v1552_v24 = vmul.f32 0.5, %v4426_v31  ;;  %v4437_v33 = vadd.f32 %v1476_v22, %v4096_v6 }
 0x27b   : > { %v4440_v29 = vmul.f32 %v4370_v3, %v1736_v47  ;;  %v1738_v15 = vadd.f32 0.5, %v1674_v10  ;;  %3511 = vtanh.f32 %v1551_v36  ;;  %v1553_v50 = vmul.f32 0.5, %v4430_v16 }
 0x27c   : > { %5293 = vst [vmem:[#allocation35_spill] sm:$0xff] %v4433_v2  ;;  %v4444_v40 = vmul.f32 %v4374_v14, %v1737_v20  ;;  %3513 = vtanh.f32 %v1552_v24  ;;  %v1554_v45 = vmul.f32 0.5, %v4437_v33 }
 0x27d   : > { %5294 = vst [vmem:[#allocation36_spill] sm:$0xff] %v4440_v29  ;;  %v3504_v39 = vpop.eup %3503  ;;  %v4448_v18 = vmul.f32 %v4381_v7, %v1738_v15  ;;  %3515 = vtanh.f32 %v1553_v50 }
 0x27e   : > { %5295 = vst [vmem:[#allocation37_spill] sm:$0xff] %v4444_v40  ;;  %v3506_v43 = vpop.eup %3505  ;;  %v1675_v22 = vmul.f32 0.5, %v3504_v39  ;;  %3517 = vtanh.f32 %v1554_v45  ;;  %v1480_v3 = vpop.f32.mrb[56].mxu0 }
 0x27f   : > { %5296 = vst [vmem:[#allocation38_spill] sm:$0xff] %v4448_v18  ;;  %v3508_v47 = vpop.eup %3507  ;;  %v1676_v10 = vmul.f32 0.5, %v3506_v43  ;;  %v4451_v36 = vadd.f32 %v1480_v3, %v4093_v5  ;;  %v1482_v2 = vpop.f32.mrb[57].mxu0 }
 0x280   : > { %v3510_v14 = vpop.eup %3509  ;;  %v1739_v20 = vadd.f32 0.5, %v1675_v22  ;;  %v1677_v24 = vmul.f32 0.5, %v3508_v47  ;;  %v4454_v40 = vadd.f32 %v1482_v2, %v4096_v6  ;;  %v1484_v29 = vpop.f32.mrb[58].mxu0 }
 0x281   : > { %v1740_v7 = vadd.f32 0.5, %v1676_v10  ;;  %v1678_v15 = vmul.f32 0.5, %v3510_v14  ;;  %v1555_v50 = vmul.f32 0.5, %v4451_v36  ;;  %v3072_v45 = vadd.f32 %v1484_v29, %v4093_v5  ;;  %v1486_v39 = vpop.f32.mrb[59].mxu0 }
 0x282   : > { %v4459_v43 = vmul.f32 %v4395_v35, %v1739_v20  ;;  %v1741_v3 = vadd.f32 0.5, %v1677_v24  ;;  %v1556_v18 = vmul.f32 0.5, %v4454_v40  ;;  %v3073_v22 = vadd.f32 %v1486_v39, %v4096_v6 }
 0x283   : > { %v4464_v47 = vmul.f32 %v4398_v4, %v1740_v7  ;;  %v1742_v2 = vadd.f32 0.5, %v1678_v15  ;;  %3519 = vtanh.f32 %v1555_v50  ;;  %v1557_v10 = vmul.f32 0.5, %v3072_v45 }
 0x284   : > { %5297 = vst [vmem:[#allocation39_spill] sm:$0xff] %v4459_v43  ;;  %v4467_v14 = vmul.f32 %v4402_v11, %v1741_v3  ;;  %3521 = vtanh.f32 %v1556_v18  ;;  %v1558_v29 = vmul.f32 0.5, %v3073_v22 }
 0x285   : > { %5298 = vst [vmem:[#allocation40_spill] sm:$0xff] %v4464_v47  ;;  %v3512_v61 = vpop.eup %3511  ;;  %v4470_v35 = vmul.f32 %v4409_v19, %v1742_v2  ;;  %3523 = vtanh.f32 %v1557_v10 }
 0x286   : > { %5299 = vst [vmem:[#allocation41_spill] sm:$0xff] %v4467_v14  ;;  %v3514_v20 = vpop.eup %3513  ;;  %v1679_v24 = vmul.f32 0.5, %v3512_v61  ;;  %3525 = vtanh.f32 %v1558_v29  ;;  %v1490_v39 = vpop.f32.mrb[60].mxu0 }
 0x287   : > { %5300 = vst [vmem:[#allocation42_spill] sm:$0xff] %v4470_v35  ;;  %v3516_v43 = vpop.eup %3515  ;;  %v1680_v4 = vmul.f32 0.5, %v3514_v20  ;;  %v3074_v7 = vadd.f32 %v1490_v39, %v4093_v5  ;;  %v1492_v15 = vpop.f32.mrb[61].mxu0 }
 0x288   : > { %v3518_v50 = vpop.eup %3517  ;;  %v1743_v47 = vadd.f32 0.5, %v1679_v24  ;;  %v1681_v11 = vmul.f32 0.5, %v3516_v43  ;;  %v3075_v18 = vadd.f32 %v1492_v15, %v4096_v6  ;;  %v1494_v3 = vpop.f32.mrb[62].mxu0 }
 0x289   : > { %v1744_v14 = vadd.f32 0.5, %v1680_v4  ;;  %v1682_v58 = vmul.f32 0.5, %v3518_v50  ;;  %v1559_v19 = vmul.f32 0.5, %v3074_v7  ;;  %v3076_v2 = vadd.f32 %v1494_v3, %v4093_v5  ;;  %v1496_v10 = vpop.f32.mrb[63].mxu0 }
 0x28a   : > { %v4476_v61 = vmul.f32 %v4423_v54, %v1743_v47  ;;  %v1745_v29 = vadd.f32 0.5, %v1681_v11  ;;  %v1560_v20 = vmul.f32 0.5, %v3075_v18  ;;  %v3077_v39 = vadd.f32 %v1496_v10, %v4096_v6 }
 0x28b   : > { %v4480_v35 = vmul.f32 %v4426_v31, %v1744_v14  ;;  %v1746_v43 = vadd.f32 0.5, %v1682_v58  ;;  %3527 = vtanh.f32 %v1559_v19  ;;  %v1561_v24 = vmul.f32 0.5, %v3076_v2 }
 0x28c   : > { %v4483_v4 = vmul.f32 %v4430_v16, %v1745_v29  ;;  %3529 = vtanh.f32 %v1560_v20  ;;  %v1562_v15 = vmul.f32 0.5, %v3077_v39 }
 0x28d   : > { %v3520_v5 = vpop.eup %3519  ;;  %v4486_v50 = vmul.f32 %v4437_v33, %v1746_v43  ;;  %3531 = vtanh.f32 %v1561_v24 }
 0x28e   : > { %v3522_v54 = vpop.eup %3521  ;;  %v1683_v47 = vmul.f32 0.5, %v3520_v5  ;;  %3533 = vtanh.f32 %v1562_v15 }
 0x28f   : > { %v3524_v6 = vpop.eup %3523  ;;  %v1684_v11 = vmul.f32 0.5, %v3522_v54 }
 0x290   : > { %v3526_v31 = vpop.eup %3525  ;;  %v1747_v14 = vadd.f32 0.5, %v1683_v47  ;;  %v1685_v58 = vmul.f32 0.5, %v3524_v6 }
 0x291   : > { %v1748_v3 = vadd.f32 0.5, %v1684_v11  ;;  %v1686_v19 = vmul.f32 0.5, %v3526_v31 }
 0x292   : > { %v4489_v16 = vmul.f32 %v4451_v36, %v1747_v14  ;;  %v1749_v10 = vadd.f32 0.5, %v1685_v58 }
 0x293   : > { %v4492_v29 = vmul.f32 %v4454_v40, %v1748_v3  ;;  %v1750_v33 = vadd.f32 0.5, %v1686_v19 }
 0x294   : > { %v4494_v20 = vmul.f32 %v3072_v45, %v1749_v10 }
 0x295   : > { %v3528_v43 = vpop.eup %3527  ;;  %v4496_v24 = vmul.f32 %v3073_v22, %v1750_v33 }
 0x296   : > { %v3530_v15 = vpop.eup %3529  ;;  %v1687_v5 = vmul.f32 0.5, %v3528_v43 }
 0x297   : > { %v3532_v54 = vpop.eup %3531  ;;  %v1688_v47 = vmul.f32 0.5, %v3530_v15 }
 0x298   : > { %v3534_v6 = vpop.eup %3533  ;;  %v1751_v11 = vadd.f32 0.5, %v1687_v5  ;;  %v1689_v31 = vmul.f32 0.5, %v3532_v54 }
 0x299   : > { %v1752_v36 = vadd.f32 0.5, %v1688_v47  ;;  %v1690_v14 = vmul.f32 0.5, %v3534_v6 }
 0x29a   : > { %v4498_v58 = vmul.f32 %v3074_v7, %v1751_v11  ;;  %v1753_v40 = vadd.f32 0.5, %v1689_v31 }
 0x29b   : > { %v4500_v3 = vmul.f32 %v3075_v18, %v1752_v36  ;;  %v1754_v45 = vadd.f32 0.5, %v1690_v14 }
 0x29c   : > { %v4502_v19 = vmul.f32 %v3076_v2, %v1753_v40 }
 0x29d   : > { %v4504_v22 = vmul.f32 %v3077_v39, %v1754_v45 }
 0x29e   : > { %3773 = dma.done.wait [#allocation4], 4096 }
 0x29f   : > { %3774 = vsyncadd [#allocation4], 4294963200  ;;  %v1824_v10 = vpack.c.bf16 %v4140_v59, %v4134_v53  ;;  %v1856_v33 = vld [vmem:[#allocation2 + $0x8] sm:$0xff]  ;;  %v1855_v7 = vld [vmem:[#allocation2] sm:$0xff] }
 0x2a0   : > { %v1858_v43 = vld [vmem:[#allocation2 + $0x18] sm:$0xff]  ;;  %1899 = vmatprep.subr.bf16.mxu1 %v1856_v33  ;;  %v1857_v18 = vld [vmem:[#allocation2 + $0x10] sm:$0xff]  ;;  %v1860_v2 = vld [vmem:[#allocation2 + $0x28] sm:$0xff] }
 0x2a1   : > { %1931 = vmatprep.mubr.bf16.mxu1 %v1824_v10  ;;  %1900 = vmatpush1.bf16.msra.mxu1 %v1855_v7  ;;  %v1859_v39 = vld [vmem:[#allocation2 + $0x20] sm:$0xff]  ;;  %v1862_v15 = vld [vmem:[#allocation2 + $0x38] sm:$0xff]  ;;  %v1861_v5 = vld [vmem:[#allocation2 + $0x30] sm:$0xff] }
 0x2a2   : > { %1901 = vmatprep.subr.bf16.mxu1 %v1858_v43  ;;  %v1864_v54 = vld [vmem:[#allocation2 + $0x48] sm:$0xff]  ;;  %v1863_v53 = vld [vmem:[#allocation2 + $0x40] sm:$0xff]  ;;  %v1866_v59 = vld [vmem:[#allocation2 + $0x58] sm:$0xff] }
 0x2a3   : > { %v1865_v47 = vld [vmem:[#allocation2 + $0x50] sm:$0xff]  ;;  %v1868_v6 = vld [vmem:[#allocation2 + $0x68] sm:$0xff]  ;;  %v1867_v11 = vld [vmem:[#allocation2 + $0x60] sm:$0xff] }
 0x2a4   : > { %v1870_v31 = vld [vmem:[#allocation2 + $0x78] sm:$0xff]  ;;  %v1869_v36 = vld [vmem:[#allocation2 + $0x70] sm:$0xff]  ;;  %v1872_v14 = vld [vmem:[#allocation2 + $0x88] sm:$0xff] }
 0x2a5   : > { %1902 = vmatpush1.bf16.msra.mxu1 %v1857_v18  ;;  %v1871_v40 = vld [vmem:[#allocation2 + $0x80] sm:$0xff]  ;;  %v1874_v45 = vld [vmem:[#allocation2 + $0x98] sm:$0xff]  ;;  %v1873_v10 = vld [vmem:[#allocation2 + $0x90] sm:$0xff] }
 0x2a6   : > { %1903 = vmatprep.subr.bf16.mxu1 %v1860_v2  ;;  %v1876_v33 = vld [vmem:[#allocation2 + $0xa8] sm:$0xff]  ;;  %v1875_v7 = vld [vmem:[#allocation2 + $0xa0] sm:$0xff]  ;;  %v1878_v43 = vld [vmem:[#allocation2 + $0xb8] sm:$0xff] }
 0x2a7   : > { %v1877_v18 = vld [vmem:[#allocation2 + $0xb0] sm:$0xff]  ;;  %v1880_v2 = vld [vmem:[#allocation2 + $0xc8] sm:$0xff] }
 0x2a9   : > { %1904 = vmatpush1.bf16.msra.mxu1 %v1859_v39  ;;  %v1879_v39 = vld [vmem:[#allocation2 + $0xc0] sm:$0xff] }
 0x2aa   : > { %1905 = vmatprep.subr.bf16.mxu1 %v1862_v15  ;;  %v1882_v15 = vld [vmem:[#allocation2 + $0xd8] sm:$0xff] }
 0x2ad   : > { %1906 = vmatpush1.bf16.msra.mxu1 %v1861_v5  ;;  %v1881_v5 = vld [vmem:[#allocation2 + $0xd0] sm:$0xff] }
 0x2ae   : > { %1907 = vmatprep.subr.bf16.mxu1 %v1864_v54  ;;  %v1884_v54 = vld [vmem:[#allocation2 + $0xe8] sm:$0xff] }
 0x2b1   : > { %1908 = vmatpush1.bf16.msra.mxu1 %v1863_v53  ;;  %v1883_v53 = vld [vmem:[#allocation2 + $0xe0] sm:$0xff] }
 0x2b2   : > { %1909 = vmatprep.subr.bf16.mxu1 %v1866_v59  ;;  %v1886_v59 = vld [vmem:[#allocation2 + $0xf8] sm:$0xff] }
 0x2b5   : > { %1910 = vmatpush1.bf16.msra.mxu1 %v1865_v47  ;;  %v1885_v47 = vld [vmem:[#allocation2 + $0xf0] sm:$0xff] }
 0x2b6   : > { %1911 = vmatprep.subr.bf16.mxu1 %v1868_v6  ;;  %v1823_v6 = vpack.c.bf16 %v4137_v56, %v4128_v49  ;;  %v1830_v49 = vpack.c.bf16 %v4224_v25, %v4216_v32  ;;  %v1829_v56 = vpack.c.bf16 %v4220_v34, %v4209_v26  ;;  %v1840_v26 = vpack.c.bf16 %v4364_v41, %v4356_v13  ;;  %v5302_v32 = vld [vmem:[#allocation25_spill] sm:$0xff]  ;;  %v5303_v34 = vld [vmem:[#allocation26_spill] sm:$0xff] }
 0x2b7   : > { %v1839_v25 = vpack.c.bf16 %v5303_v34, %v5302_v32  ;;  %v5315_v13 = vld [vmem:[#allocation37_spill] sm:$0xff] }
 0x2b9   : > { %1912 = vmatpush1.bf16.msra.mxu1 %v1867_v11  ;;  %v1826_v11 = vpack.c.bf16 %v4168_v30, %v4160_v23  ;;  %v1832_v23 = vpack.c.bf16 %v4252_v52, %v4244_v9  ;;  %v1833_v30 = vpack.c.bf16 %v4276_v37, %v4265_v44  ;;  %v5305_v9 = vld [vmem:[#allocation30_spill] sm:$0xff]  ;;  %v5306_v52 = vld [vmem:[#allocation27_spill] sm:$0xff]  ;;  %v5307_v44 = vld [vmem:[#allocation29_spill] sm:$0xff] }
 0x2ba   : > { %1913 = vmatprep.subr.bf16.mxu1 %v1870_v31  ;;  %v1825_v31 = vpack.c.bf16 %v4164_v27, %v4153_v17  ;;  %v1831_v17 = vpack.c.bf16 %v4248_v12, %v4237_v0  ;;  %v1834_v27 = vpack.c.bf16 %v4280_v42, %v4272_v57  ;;  %v5304_v0 = vld [vmem:[#allocation28_spill] sm:$0xff]  ;;  %v1841_v57 = vpack.c.bf16 %v5307_v44, %v5306_v52  ;;  %v5309_v42 = vld [vmem:[#allocation34_spill] sm:$0xff] }
 0x2bb   : > { %v1842_v12 = vpack.c.bf16 %v5305_v9, %v5304_v0  ;;  %v5308_v37 = vld [vmem:[#allocation32_spill] sm:$0xff] }
 0x2bd   : > { %1914 = vmatpush1.bf16.msra.mxu1 %v1869_v36  ;;  %v1828_v36 = vpack.c.bf16 %v4196_v62, %v4188_v55  ;;  %v1835_v55 = vpack.c.bf16 %v4304_v21, %v4293_v38  ;;  %v1837_v62 = vpack.c.bf16 %v4332_v63, %v4321_v1  ;;  %v1844_v38 = vpack.c.bf16 %v5309_v42, %v5308_v37  ;;  %v5311_v21 = vld [vmem:[#allocation33_spill] sm:$0xff]  ;;  %v5312_v1 = vld [vmem:[#allocation36_spill] sm:$0xff] }
 0x2be   : > { %1915 = vmatprep.subr.bf16.mxu1 %v1872_v14  ;;  %v1827_v14 = vpack.c.bf16 %v4192_v60, %v4181_v48  ;;  %v1836_v48 = vpack.c.bf16 %v4308_v8, %v4300_v28  ;;  %v1838_v60 = vpack.c.bf16 %v4336_v51, %v4328_v46  ;;  %v5310_v28 = vld [vmem:[#allocation31_spill] sm:$0xff]  ;;  %v5313_v46 = vld [vmem:[#allocation38_spill] sm:$0xff] }
 0x2bf   : > { %v1843_v8 = vpack.c.bf16 %v5311_v21, %v5310_v28  ;;  %v1846_v63 = vpack.c.bf16 %v5313_v46, %v5312_v1  ;;  %v5314_v51 = vld [vmem:[#allocation35_spill] sm:$0xff] }
 0x2c0   : > { %v1845_v41 = vpack.c.bf16 %v5315_v13, %v5314_v51 }
 0x2c1   : > { %1916 = vmatpush1.bf16.msra.mxu1 %v1871_v40  ;;  %v5316_v40 = vld [vmem:[#allocation40_spill] sm:$0xff] }
 0x2c2   : > { %1917 = vmatprep.subr.bf16.mxu1 %v1874_v45  ;;  %v5317_v45 = vld [vmem:[#allocation42_spill] sm:$0xff] }
 0x2c5   : > { %1918 = vmatpush1.bf16.msra.mxu1 %v1873_v10  ;;  %v1848_v10 = vpack.c.bf16 %v5317_v45, %v5316_v40 }
 0x2c6   : > { %1919 = vmatprep.subr.bf16.mxu1 %v1876_v33  ;;  %v5318_v33 = vld [vmem:[#allocation39_spill] sm:$0xff] }
 0x2c9   : > { %1920 = vmatpush1.bf16.msra.mxu1 %v1875_v7  ;;  %v5319_v7 = vld [vmem:[#allocation41_spill] sm:$0xff] }
 0x2ca   : > { %1921 = vmatprep.subr.bf16.mxu1 %v1878_v43  ;;  %v1847_v43 = vpack.c.bf16 %v5319_v7, %v5318_v33 }
 0x2cd   : > { %1922 = vmatpush1.bf16.msra.mxu1 %v1877_v18  ;;  %v1850_v18 = vpack.c.bf16 %v4486_v50, %v4480_v35  ;;  %v1853_v35 = vpack.c.bf16 %v4502_v19, %v4498_v58 }
 0x2ce   : > { %1923 = vmatprep.subr.bf16.mxu1 %v1880_v2  ;;  %v1849_v2 = vpack.c.bf16 %v4483_v4, %v4476_v61  ;;  %v1887_v61 = vld [vmem:[%s5249_s4] sm:$0x3] }
 0x2cf   : > { %v5320_v4 = vld [vmem:[#allocation23_spill] sm:$0xff] }
 0x2d0   : > { %v4578_v50 = vrot.slane %v1887_v61, %v5320_v4 }
 0x2d1   : > { %1924 = vmatpush1.bf16.msra.mxu1 %v1879_v39  ;;  %v1852_v39 = vpack.c.bf16 %v4496_v24, %v4492_v29  ;;  %v5321_v29 = vld [vmem:[#allocation24_spill] sm:$0xff] }
 0x2d2   : > { %1925 = vmatprep.subr.bf16.mxu1 %v1882_v15  ;;  %v1851_v15 = vpack.c.bf16 %v4494_v20, %v4489_v16  ;;  %v4581_v24 = vrot.slane %v1887_v61, %v5321_v29 }
 0x2d5   : > { %1926 = vmatpush1.bf16.msra.mxu1 %v1881_v5  ;;  %v1854_v5 = vpack.c.bf16 %v4504_v22, %v4500_v3 }
 0x2d6   : > { %1927 = vmatprep.subr.bf16.mxu1 %v1884_v54 }
 0x2d9   : > { %1928 = vmatpush1.bf16.msra.mxu1 %v1883_v53 }
 0x2da   : > { %1929 = vmatprep.subr.bf16.mxu1 %v1886_v59 }
 0x2dd   : > { %1930 = vmatpush1.bf16.msra.mxu1 %v1885_v47 }
 0x2e0   : > { %1932 = vmatmul.mubr.bf16.vlgmr.msra.gmra.mrb[0].mxu1 %v1823_v6 }
 0x2e1   : > { %1941 = vmatprep.mubr.bf16.mxu1 %v1826_v11 }
 0x2e8   : > { %1942 = vmatmul.mubr.bf16.gmra.mrb[4].mxu1 %v1825_v31 }
 0x2e9   : > { %1951 = vmatprep.mubr.bf16.mxu1 %v1828_v36 }
 0x2f0   : > { %1952 = vmatmul.mubr.bf16.gmra.mrb[8].mxu1 %v1827_v14 }
 0x2f1   : > { %1961 = vmatprep.mubr.bf16.mxu1 %v1830_v49 }
 0x2f8   : > { %1962 = vmatmul.mubr.bf16.gmra.mrb[12].mxu1 %v1829_v56 }
 0x2f9   : > { %1971 = vmatprep.mubr.bf16.mxu1 %v1832_v23 }
 0x300   : > { %1972 = vmatmul.mubr.bf16.gmra.mrb[16].mxu1 %v1831_v17 }
 0x301   : > { %1981 = vmatprep.mubr.bf16.mxu1 %v1834_v27 }
 0x308   : > { %1982 = vmatmul.mubr.bf16.gmra.mrb[20].mxu1 %v1833_v30 }
 0x309   : > { %1991 = vmatprep.mubr.bf16.mxu1 %v1836_v48 }
 0x310   : > { %1992 = vmatmul.mubr.bf16.gmra.mrb[24].mxu1 %v1835_v55 }
 0x311   : > { %2001 = vmatprep.mubr.bf16.mxu1 %v1838_v60 }
 0x318   : > { %2002 = vmatmul.mubr.bf16.gmra.mrb[28].mxu1 %v1837_v62 }
 0x319   : > { %2011 = vmatprep.mubr.bf16.mxu1 %v1840_v26 }
 0x320   : > { %2012 = vmatmul.mubr.bf16.gmra.mrb[32].mxu1 %v1839_v25 }
 0x321   : > { %2021 = vmatprep.mubr.bf16.mxu1 %v1842_v12 }
 0x328   : > { %2022 = vmatmul.mubr.bf16.gmra.mrb[36].mxu1 %v1841_v57 }
 0x329   : > { %2031 = vmatprep.mubr.bf16.mxu1 %v1844_v38 }
 0x330   : > { %2032 = vmatmul.mubr.bf16.gmra.mrb[40].mxu1 %v1843_v8 }
 0x331   : > { %2041 = vmatprep.mubr.bf16.mxu1 %v1846_v63 }
 0x338   : > { %2042 = vmatmul.mubr.bf16.gmra.mrb[44].mxu1 %v1845_v41 }
 0x339   : > { %2051 = vmatprep.mubr.bf16.mxu1 %v1848_v10 }
 0x340   : > { %2052 = vmatmul.mubr.bf16.gmra.mrb[48].mxu1 %v1847_v43 }
 0x341   : > { %2061 = vmatprep.mubr.bf16.mxu1 %v1850_v18 }
 0x348   : > { %2062 = vmatmul.mubr.bf16.gmra.mrb[52].mxu1 %v1849_v2 }
 0x349   : > { %2071 = vmatprep.mubr.bf16.mxu1 %v1852_v39 }
 0x350   : > { %2072 = vmatmul.mubr.bf16.gmra.mrb[56].mxu1 %v1851_v15 }
 0x351   : > { %2081 = vmatprep.mubr.bf16.mxu1 %v1854_v5 }
 0x358   : > { %2082 = vmatmul.mubr.bf16.gmra.mrb[60].mxu1 %v1853_v35 }
 0x3b3   : > { %v1933_v16 = vpop.f32.mrb[0].mxu1 }
 0x3b4   : > { %v1934_v20 = vadd.f32 %v1933_v16, %v4578_v50  ;;  %v1935_v3 = vpop.f32.mrb[1].mxu1 }
 0x3b5   : > { %v1936_v22 = vadd.f32 %v1935_v3, %v4581_v24  ;;  %v1937_v54 = vpop.f32.mrb[2].mxu1 }
 0x3b6   : > { %v2092_v53 = vmul.f32 0.5, %v1934_v20  ;;  %v1938_v58 = vadd.f32 %v1937_v54, %v4578_v50  ;;  %v1939_v19 = vpop.f32.mrb[3].mxu1 }
 0x3b7   : > { %v2093_v59 = vmul.f32 0.5, %v1936_v22  ;;  %v1940_v47 = vadd.f32 %v1939_v19, %v4581_v24 }
 0x3b8   : > { %3535 = vtanh.f32 %v2092_v53  ;;  %v2094_v6 = vmul.f32 0.5, %v1938_v58 }
 0x3b9   : > { %3537 = vtanh.f32 %v2093_v59  ;;  %v2095_v11 = vmul.f32 0.5, %v1940_v47 }
 0x3ba   : > { %3539 = vtanh.f32 %v2094_v6 }
 0x3bb   : > { %3541 = vtanh.f32 %v2095_v11  ;;  %v1943_v31 = vpop.f32.mrb[4].mxu1 }
 0x3bc   : > { %v4588_v36 = vadd.f32 %v1943_v31, %v4578_v50  ;;  %v1945_v14 = vpop.f32.mrb[5].mxu1 }
 0x3bd   : > { %v4591_v49 = vadd.f32 %v1945_v14, %v4581_v24  ;;  %v1947_v56 = vpop.f32.mrb[6].mxu1 }
 0x3be   : > { %v2096_v23 = vmul.f32 0.5, %v4588_v36  ;;  %v4595_v17 = vadd.f32 %v1947_v56, %v4578_v50  ;;  %v1949_v27 = vpop.f32.mrb[7].mxu1 }
 0x3bf   : > { %v2097_v30 = vmul.f32 0.5, %v4591_v49  ;;  %v4599_v48 = vadd.f32 %v1949_v27, %v4581_v24 }
 0x3c0   : > { %3543 = vtanh.f32 %v2096_v23  ;;  %v2098_v55 = vmul.f32 0.5, %v4595_v17 }
 0x3c1   : > { %3545 = vtanh.f32 %v2097_v30  ;;  %v2099_v60 = vmul.f32 0.5, %v4599_v48 }
 0x3c2   : > { %v3536_v62 = vpop.eup %3535  ;;  %3547 = vtanh.f32 %v2098_v55 }
 0x3c3   : > { %v3538_v26 = vpop.eup %3537  ;;  %v2220_v32 = vmul.f32 0.5, %v3536_v62  ;;  %3549 = vtanh.f32 %v2099_v60  ;;  %v1953_v34 = vpop.f32.mrb[8].mxu1 }
 0x3c4   : > { %v3540_v25 = vpop.eup %3539  ;;  %v2221_v0 = vmul.f32 0.5, %v3538_v26  ;;  %v4604_v9 = vadd.f32 %v1953_v34, %v4578_v50  ;;  %v1955_v12 = vpop.f32.mrb[9].mxu1 }
 0x3c5   : > { %v3542_v52 = vpop.eup %3541  ;;  %v2284_v44 = vadd.f32 0.5, %v2220_v32  ;;  %v2222_v57 = vmul.f32 0.5, %v3540_v25  ;;  %v4607_v37 = vadd.f32 %v1955_v12, %v4581_v24  ;;  %v1957_v42 = vpop.f32.mrb[10].mxu1 }
 0x3c6   : > { %v2285_v38 = vadd.f32 0.5, %v2221_v0  ;;  %v2223_v28 = vmul.f32 0.5, %v3542_v52  ;;  %v2100_v21 = vmul.f32 0.5, %v4604_v9  ;;  %v4611_v8 = vadd.f32 %v1957_v42, %v4578_v50  ;;  %v1959_v1 = vpop.f32.mrb[11].mxu1 }
 0x3c7   : > { %v4613_v46 = vmul.f32 %v2284_v44, %v1934_v20  ;;  %v2286_v63 = vadd.f32 0.5, %v2222_v57  ;;  %v2101_v51 = vmul.f32 0.5, %v4607_v37  ;;  %v4617_v13 = vadd.f32 %v1959_v1, %v4581_v24 }
 0x3c8   : > { %v4619_v41 = vmul.f32 %v2285_v38, %v1936_v22  ;;  %v2287_v40 = vadd.f32 0.5, %v2223_v28  ;;  %3551 = vtanh.f32 %v2100_v21  ;;  %v2102_v45 = vmul.f32 0.5, %v4611_v8 }
 0x3c9   : > { %v4622_v10 = vmul.f32 %v2286_v63, %v1938_v58  ;;  %3553 = vtanh.f32 %v2101_v51  ;;  %v2103_v33 = vmul.f32 0.5, %v4617_v13 }
 0x3ca   : > { %v3544_v7 = vpop.eup %3543  ;;  %v4625_v43 = vmul.f32 %v2287_v40, %v1940_v47  ;;  %3555 = vtanh.f32 %v2102_v45 }
 0x3cb   : > { %v3546_v18 = vpop.eup %3545  ;;  %v2224_v2 = vmul.f32 0.5, %v3544_v7  ;;  %3557 = vtanh.f32 %v2103_v33  ;;  %v1963_v39 = vpop.f32.mrb[12].mxu1 }
 0x3cc   : > { %v3548_v15 = vpop.eup %3547  ;;  %v2225_v5 = vmul.f32 0.5, %v3546_v18  ;;  %v4628_v35 = vadd.f32 %v1963_v39, %v4578_v50  ;;  %v1965_v61 = vpop.f32.mrb[13].mxu1 }
 0x3cd   : > { %v3550_v16 = vpop.eup %3549  ;;  %v2288_v20 = vadd.f32 0.5, %v2224_v2  ;;  %v2226_v3 = vmul.f32 0.5, %v3548_v15  ;;  %v4631_v22 = vadd.f32 %v1965_v61, %v4581_v24  ;;  %v1967_v54 = vpop.f32.mrb[14].mxu1 }
 0x3ce   : > { %v2289_v53 = vadd.f32 0.5, %v2225_v5  ;;  %v2227_v58 = vmul.f32 0.5, %v3550_v16  ;;  %v2104_v19 = vmul.f32 0.5, %v4628_v35  ;;  %v4635_v59 = vadd.f32 %v1967_v54, %v4578_v50  ;;  %v1969_v47 = vpop.f32.mrb[15].mxu1 }
 0x3cf   : > { %v4638_v6 = vmul.f32 %v2288_v20, %v4588_v36  ;;  %v2290_v11 = vadd.f32 0.5, %v2226_v3  ;;  %v2105_v31 = vmul.f32 0.5, %v4631_v22  ;;  %v4642_v14 = vadd.f32 %v1969_v47, %v4581_v24 }
 0x3d0   : > { %v4645_v56 = vmul.f32 %v2289_v53, %v4591_v49  ;;  %v2291_v23 = vadd.f32 0.5, %v2227_v58  ;;  %3559 = vtanh.f32 %v2104_v19  ;;  %v2106_v27 = vmul.f32 0.5, %v4635_v59 }
 0x3d1   : > { %v4649_v30 = vmul.f32 %v2290_v11, %v4595_v17  ;;  %3561 = vtanh.f32 %v2105_v31  ;;  %v2107_v36 = vmul.f32 0.5, %v4642_v14 }
 0x3d2   : > { %v3552_v55 = vpop.eup %3551  ;;  %v4653_v60 = vmul.f32 %v2291_v23, %v4599_v48  ;;  %3563 = vtanh.f32 %v2106_v27 }
 0x3d3   : > { %v3554_v62 = vpop.eup %3553  ;;  %v2228_v26 = vmul.f32 0.5, %v3552_v55  ;;  %3565 = vtanh.f32 %v2107_v36  ;;  %v1973_v49 = vpop.f32.mrb[16].mxu1 }
 0x3d4   : > { %v3556_v32 = vpop.eup %3555  ;;  %v2229_v34 = vmul.f32 0.5, %v3554_v62  ;;  %v4656_v25 = vadd.f32 %v1973_v49, %v4578_v50  ;;  %v1975_v0 = vpop.f32.mrb[17].mxu1 }
 0x3d5   : > { %v3558_v17 = vpop.eup %3557  ;;  %v2292_v12 = vadd.f32 0.5, %v2228_v26  ;;  %v2230_v52 = vmul.f32 0.5, %v3556_v32  ;;  %v4659_v44 = vadd.f32 %v1975_v0, %v4581_v24  ;;  %v1977_v57 = vpop.f32.mrb[18].mxu1 }
 0x3d6   : > { %v2293_v48 = vadd.f32 0.5, %v2229_v34  ;;  %v2231_v42 = vmul.f32 0.5, %v3558_v17  ;;  %v2108_v38 = vmul.f32 0.5, %v4656_v25  ;;  %v4663_v28 = vadd.f32 %v1977_v57, %v4578_v50  ;;  %v1979_v21 = vpop.f32.mrb[19].mxu1 }
 0x3d7   : > { %v4666_v1 = vmul.f32 %v2292_v12, %v4604_v9  ;;  %v2294_v63 = vadd.f32 0.5, %v2230_v52  ;;  %v2109_v51 = vmul.f32 0.5, %v4659_v44  ;;  %v4670_v40 = vadd.f32 %v1979_v21, %v4581_v24 }
 0x3d8   : > { %v4673_v45 = vmul.f32 %v2293_v48, %v4607_v37  ;;  %v2295_v33 = vadd.f32 0.5, %v2231_v42  ;;  %3567 = vtanh.f32 %v2108_v38  ;;  %v2110_v7 = vmul.f32 0.5, %v4663_v28 }
 0x3d9   : > { %v4677_v18 = vmul.f32 %v2294_v63, %v4611_v8  ;;  %3569 = vtanh.f32 %v2109_v51  ;;  %v2111_v9 = vmul.f32 0.5, %v4670_v40 }
 0x3da   : > { %v3560_v2 = vpop.eup %3559  ;;  %v4681_v39 = vmul.f32 %v2295_v33, %v4617_v13  ;;  %3571 = vtanh.f32 %v2110_v7 }
 0x3db   : > { %v3562_v15 = vpop.eup %3561  ;;  %v2232_v5 = vmul.f32 0.5, %v3560_v2  ;;  %3573 = vtanh.f32 %v2111_v9  ;;  %v1983_v37 = vpop.f32.mrb[20].mxu1 }
 0x3dc   : > { %v3564_v61 = vpop.eup %3563  ;;  %v2233_v16 = vmul.f32 0.5, %v3562_v15  ;;  %v4684_v20 = vadd.f32 %v1983_v37, %v4578_v50  ;;  %v1985_v3 = vpop.f32.mrb[21].mxu1 }
 0x3dd   : > { %v3566_v8 = vpop.eup %3565  ;;  %v2296_v54 = vadd.f32 0.5, %v2232_v5  ;;  %v2234_v53 = vmul.f32 0.5, %v3564_v61  ;;  %v4687_v58 = vadd.f32 %v1985_v3, %v4581_v24  ;;  %v1987_v19 = vpop.f32.mrb[22].mxu1 }
 0x3de   : > { %v2297_v13 = vadd.f32 0.5, %v2233_v16  ;;  %v2235_v47 = vmul.f32 0.5, %v3566_v8  ;;  %v2112_v11 = vmul.f32 0.5, %v4684_v20  ;;  %v4691_v31 = vadd.f32 %v1987_v19, %v4578_v50  ;;  %v1989_v23 = vpop.f32.mrb[23].mxu1 }
 0x3df   : > { %v4694_v27 = vmul.f32 %v2296_v54, %v4628_v35  ;;  %v2298_v36 = vadd.f32 0.5, %v2234_v53  ;;  %v2113_v55 = vmul.f32 0.5, %v4687_v58  ;;  %v4698_v62 = vadd.f32 %v1989_v23, %v4581_v24 }
 0x3e0   : > { %v4701_v26 = vmul.f32 %v2297_v13, %v4631_v22  ;;  %v2299_v49 = vadd.f32 0.5, %v2235_v47  ;;  %3575 = vtanh.f32 %v2112_v11  ;;  %v2114_v32 = vmul.f32 0.5, %v4691_v31 }
 0x3e1   : > { %v4705_v34 = vmul.f32 %v2298_v36, %v4635_v59  ;;  %3577 = vtanh.f32 %v2113_v55  ;;  %v2115_v35 = vmul.f32 0.5, %v4698_v62 }
 0x3e2   : > { %v3568_v0 = vpop.eup %3567  ;;  %v4709_v17 = vmul.f32 %v2299_v49, %v4642_v14  ;;  %3579 = vtanh.f32 %v2114_v32 }
 0x3e3   : > { %v3570_v12 = vpop.eup %3569  ;;  %v2236_v52 = vmul.f32 0.5, %v3568_v0  ;;  %3581 = vtanh.f32 %v2115_v35  ;;  %v1993_v22 = vpop.f32.mrb[24].mxu1 }
 0x3e4   : > { %v3572_v57 = vpop.eup %3571  ;;  %v2237_v48 = vmul.f32 0.5, %v3570_v12  ;;  %v4712_v42 = vadd.f32 %v1993_v22, %v4578_v50  ;;  %v1995_v38 = vpop.f32.mrb[25].mxu1 }
 0x3e5   : > { %v3574_v59 = vpop.eup %3573  ;;  %v2300_v21 = vadd.f32 0.5, %v2236_v52  ;;  %v2238_v63 = vmul.f32 0.5, %v3572_v57  ;;  %v4715_v51 = vadd.f32 %v1995_v38, %v4581_v24  ;;  %v1997_v33 = vpop.f32.mrb[26].mxu1 }
 0x3e6   : > { %v2301_v14 = vadd.f32 0.5, %v2237_v48  ;;  %v2239_v7 = vmul.f32 0.5, %v3574_v59  ;;  %v2116_v9 = vmul.f32 0.5, %v4712_v42  ;;  %v4719_v2 = vadd.f32 %v1997_v33, %v4578_v50  ;;  %v1999_v15 = vpop.f32.mrb[27].mxu1 }
 0x3e7   : > { %v4722_v5 = vmul.f32 %v2300_v21, %v4656_v25  ;;  %v2302_v37 = vadd.f32 0.5, %v2238_v63  ;;  %v2117_v61 = vmul.f32 0.5, %v4715_v51  ;;  %v4726_v16 = vadd.f32 %v1999_v15, %v4581_v24 }
 0x3e8   : > { %v4729_v3 = vmul.f32 %v2301_v14, %v4659_v44  ;;  %v2303_v8 = vadd.f32 0.5, %v2239_v7  ;;  %3583 = vtanh.f32 %v2116_v9  ;;  %v2118_v54 = vmul.f32 0.5, %v4719_v2 }
 0x3e9   : > { %v4733_v53 = vmul.f32 %v2302_v37, %v4663_v28  ;;  %3585 = vtanh.f32 %v2117_v61  ;;  %v2119_v25 = vmul.f32 0.5, %v4726_v16 }
 0x3ea   : > { %v3576_v19 = vpop.eup %3575  ;;  %v4737_v13 = vmul.f32 %v2303_v8, %v4670_v40  ;;  %3587 = vtanh.f32 %v2118_v54 }
 0x3eb   : > { %v3578_v47 = vpop.eup %3577  ;;  %v2240_v11 = vmul.f32 0.5, %v3576_v19  ;;  %3589 = vtanh.f32 %v2119_v25  ;;  %v2003_v44 = vpop.f32.mrb[28].mxu1 }
 0x3ec   : > { %v3580_v23 = vpop.eup %3579  ;;  %v2241_v36 = vmul.f32 0.5, %v3578_v47  ;;  %v4740_v55 = vadd.f32 %v2003_v44, %v4578_v50  ;;  %v2005_v49 = vpop.f32.mrb[29].mxu1 }
 0x3ed   : > { %v3582_v28 = vpop.eup %3581  ;;  %v2304_v32 = vadd.f32 0.5, %v2240_v11  ;;  %v2242_v35 = vmul.f32 0.5, %v3580_v23  ;;  %v4743_v0 = vadd.f32 %v2005_v49, %v4581_v24  ;;  %v2007_v12 = vpop.f32.mrb[30].mxu1 }
 0x3ee   : > { %v2305_v40 = vadd.f32 0.5, %v2241_v36  ;;  %v2243_v52 = vmul.f32 0.5, %v3582_v28  ;;  %v2120_v22 = vmul.f32 0.5, %v4740_v55  ;;  %v4747_v57 = vadd.f32 %v2007_v12, %v4578_v50  ;;  %v2009_v48 = vpop.f32.mrb[31].mxu1 }
 0x3ef   : > { %v4750_v38 = vmul.f32 %v2304_v32, %v4684_v20  ;;  %v2306_v59 = vadd.f32 0.5, %v2242_v35  ;;  %v2121_v21 = vmul.f32 0.5, %v4743_v0  ;;  %v4754_v63 = vadd.f32 %v2009_v48, %v4581_v24 }
 0x3f0   : > { %v4757_v33 = vmul.f32 %v2305_v40, %v4687_v58  ;;  %v2307_v14 = vadd.f32 0.5, %v2243_v52  ;;  %3591 = vtanh.f32 %v2120_v22  ;;  %v2122_v7 = vmul.f32 0.5, %v4747_v57 }
 0x3f1   : > { %v4761_v9 = vmul.f32 %v2306_v59, %v4691_v31  ;;  %3593 = vtanh.f32 %v2121_v21  ;;  %v2123_v20 = vmul.f32 0.5, %v4754_v63 }
 0x3f2   : > { %v3584_v15 = vpop.eup %3583  ;;  %v4765_v37 = vmul.f32 %v2307_v14, %v4698_v62  ;;  %3595 = vtanh.f32 %v2122_v7 }
 0x3f3   : > { %v3586_v61 = vpop.eup %3585  ;;  %v2244_v8 = vmul.f32 0.5, %v3584_v15  ;;  %3597 = vtanh.f32 %v2123_v20  ;;  %v2013_v58 = vpop.f32.mrb[32].mxu1 }
 0x3f4   : > { %v3588_v54 = vpop.eup %3587  ;;  %v2245_v25 = vmul.f32 0.5, %v3586_v61  ;;  %v4768_v19 = vadd.f32 %v2013_v58, %v4578_v50  ;;  %v2015_v47 = vpop.f32.mrb[33].mxu1 }
 0x3f5   : > { %v3590_v31 = vpop.eup %3589  ;;  %v2308_v11 = vadd.f32 0.5, %v2244_v8  ;;  %v2246_v44 = vmul.f32 0.5, %v3588_v54  ;;  %v4771_v23 = vadd.f32 %v2015_v47, %v4581_v24  ;;  %v2017_v36 = vpop.f32.mrb[34].mxu1 }
 0x3f6   : > { %v2309_v62 = vadd.f32 0.5, %v2245_v25  ;;  %v2247_v49 = vmul.f32 0.5, %v3590_v31  ;;  %v2124_v28 = vmul.f32 0.5, %v4768_v19  ;;  %v4775_v32 = vadd.f32 %v2017_v36, %v4578_v50  ;;  %v2019_v35 = vpop.f32.mrb[35].mxu1 }
 0x3f7   : > { %v4778_v12 = vmul.f32 %v2308_v11, %v4712_v42  ;;  %v2310_v40 = vadd.f32 0.5, %v2246_v44  ;;  %v2125_v52 = vmul.f32 0.5, %v4771_v23  ;;  %v4782_v22 = vadd.f32 %v2019_v35, %v4581_v24 }
 0x3f8   : > { %v4785_v48 = vmul.f32 %v2309_v62, %v4715_v51  ;;  %v2311_v59 = vadd.f32 0.5, %v2247_v49  ;;  %3599 = vtanh.f32 %v2124_v28  ;;  %v2126_v21 = vmul.f32 0.5, %v4775_v32 }
 0x3f9   : > { %v4789_v14 = vmul.f32 %v2310_v40, %v4719_v2  ;;  %3601 = vtanh.f32 %v2125_v52  ;;  %v2127_v42 = vmul.f32 0.5, %v4782_v22 }
 0x3fa   : > { %v3592_v7 = vpop.eup %3591  ;;  %v4793_v20 = vmul.f32 %v2311_v59, %v4726_v16  ;;  %3603 = vtanh.f32 %v2126_v21 }
 0x3fb   : > { %v3594_v15 = vpop.eup %3593  ;;  %v2248_v61 = vmul.f32 0.5, %v3592_v7  ;;  %3605 = vtanh.f32 %v2127_v42  ;;  %v2023_v51 = vpop.f32.mrb[36].mxu1 }
 0x3fc   : > { %v3596_v8 = vpop.eup %3595  ;;  %v2249_v58 = vmul.f32 0.5, %v3594_v15  ;;  %v4796_v54 = vadd.f32 %v2023_v51, %v4578_v50  ;;  %v2025_v25 = vpop.f32.mrb[37].mxu1 }
 0x3fd   : > { %v3598_v2 = vpop.eup %3597  ;;  %v2312_v47 = vadd.f32 0.5, %v2248_v61  ;;  %v2250_v31 = vmul.f32 0.5, %v3596_v8  ;;  %v4799_v11 = vadd.f32 %v2025_v25, %v4581_v24  ;;  %v2027_v44 = vpop.f32.mrb[38].mxu1 }
 0x3fe   : > { %v2313_v16 = vadd.f32 0.5, %v2249_v58  ;;  %v2251_v36 = vmul.f32 0.5, %v3598_v2  ;;  %v2128_v62 = vmul.f32 0.5, %v4796_v54  ;;  %v4803_v49 = vadd.f32 %v2027_v44, %v4578_v50  ;;  %v2029_v28 = vpop.f32.mrb[39].mxu1 }
 0x3ff   : > { %v4806_v35 = vmul.f32 %v2312_v47, %v4740_v55  ;;  %v2314_v40 = vadd.f32 0.5, %v2250_v31  ;;  %v2129_v52 = vmul.f32 0.5, %v4799_v11  ;;  %v4810_v59 = vadd.f32 %v2029_v28, %v4581_v24 }
 0x400   : > { %v4813_v21 = vmul.f32 %v2313_v16, %v4743_v0  ;;  %v2315_v42 = vadd.f32 0.5, %v2251_v36  ;;  %3607 = vtanh.f32 %v2128_v62  ;;  %v2130_v7 = vmul.f32 0.5, %v4803_v49 }
 0x401   : > { %v4817_v15 = vmul.f32 %v2314_v40, %v4747_v57  ;;  %3609 = vtanh.f32 %v2129_v52  ;;  %v2131_v55 = vmul.f32 0.5, %v4810_v59 }
 0x402   : > { %v3600_v61 = vpop.eup %3599  ;;  %v4821_v51 = vmul.f32 %v2315_v42, %v4754_v63  ;;  %3611 = vtanh.f32 %v2130_v7 }
 0x403   : > { %v3602_v8 = vpop.eup %3601  ;;  %v2252_v58 = vmul.f32 0.5, %v3600_v61  ;;  %3613 = vtanh.f32 %v2131_v55  ;;  %v2033_v0 = vpop.f32.mrb[40].mxu1 }
 0x404   : > { %v3604_v25 = vpop.eup %3603  ;;  %v2253_v2 = vmul.f32 0.5, %v3602_v8  ;;  %v4824_v47 = vadd.f32 %v2033_v0, %v4578_v50  ;;  %v2035_v31 = vpop.f32.mrb[41].mxu1 }
 0x405   : > { %v3606_v57 = vpop.eup %3605  ;;  %v2316_v44 = vadd.f32 0.5, %v2252_v58  ;;  %v2254_v16 = vmul.f32 0.5, %v3604_v25  ;;  %v4827_v36 = vadd.f32 %v2035_v31, %v4581_v24  ;;  %v2037_v62 = vpop.f32.mrb[42].mxu1 }
 0x406   : > { %v2317_v63 = vadd.f32 0.5, %v2253_v2  ;;  %v2255_v28 = vmul.f32 0.5, %v3606_v57  ;;  %v2132_v40 = vmul.f32 0.5, %v4824_v47  ;;  %v4831_v52 = vadd.f32 %v2037_v62, %v4578_v50  ;;  %v2039_v42 = vpop.f32.mrb[43].mxu1 }
 0x407   : > { %v4834_v7 = vmul.f32 %v2316_v44, %v4768_v19  ;;  %v2318_v55 = vadd.f32 0.5, %v2254_v16  ;;  %v2133_v61 = vmul.f32 0.5, %v4827_v36  ;;  %v4838_v8 = vadd.f32 %v2039_v42, %v4581_v24 }
 0x408   : > { %v4841_v58 = vmul.f32 %v2317_v63, %v4771_v23  ;;  %v2319_v0 = vadd.f32 0.5, %v2255_v28  ;;  %3615 = vtanh.f32 %v2132_v40  ;;  %v2134_v25 = vmul.f32 0.5, %v4831_v52 }
 0x409   : > { %5322 = vst [vmem:[#allocation25_spill] sm:$0xff] %v4834_v7  ;;  %v4845_v2 = vmul.f32 %v2318_v55, %v4775_v32  ;;  %3617 = vtanh.f32 %v2133_v61  ;;  %v2135_v19 = vmul.f32 0.5, %v4838_v8 }
 0x40a   : > { %v3608_v31 = vpop.eup %3607  ;;  %v4849_v57 = vmul.f32 %v2319_v0, %v4782_v22  ;;  %3619 = vtanh.f32 %v2134_v25 }
 0x40b   : > { %5323 = vst [vmem:[#allocation26_spill] sm:$0xff] %v4845_v2  ;;  %v3610_v44 = vpop.eup %3609  ;;  %v2256_v16 = vmul.f32 0.5, %v3608_v31  ;;  %3621 = vtanh.f32 %v2135_v19  ;;  %v2043_v23 = vpop.f32.mrb[44].mxu1 }
 0x40c   : > { %v3612_v62 = vpop.eup %3611  ;;  %v2257_v63 = vmul.f32 0.5, %v3610_v44  ;;  %v4852_v28 = vadd.f32 %v2043_v23, %v4578_v50  ;;  %v2045_v40 = vpop.f32.mrb[45].mxu1 }
 0x40d   : > { %v3614_v32 = vpop.eup %3613  ;;  %v2320_v42 = vadd.f32 0.5, %v2256_v16  ;;  %v2258_v55 = vmul.f32 0.5, %v3612_v62  ;;  %v4855_v61 = vadd.f32 %v2045_v40, %v4581_v24  ;;  %v2047_v29 = vpop.f32.mrb[46].mxu1 }
 0x40e   : > { %v2321_v22 = vadd.f32 0.5, %v2257_v63  ;;  %v2259_v0 = vmul.f32 0.5, %v3614_v32  ;;  %v2136_v25 = vmul.f32 0.5, %v4852_v28  ;;  %v4859_v19 = vadd.f32 %v2047_v29, %v4578_v50  ;;  %v2049_v31 = vpop.f32.mrb[47].mxu1 }
 0x40f   : > { %v4862_v44 = vmul.f32 %v2320_v42, %v4796_v54  ;;  %v2322_v23 = vadd.f32 0.5, %v2258_v55  ;;  %v2137_v4 = vmul.f32 0.5, %v4855_v61  ;;  %v4866_v16 = vadd.f32 %v2049_v31, %v4581_v24 }
 0x410   : > { %v4869_v62 = vmul.f32 %v2321_v22, %v4799_v11  ;;  %v2323_v63 = vadd.f32 0.5, %v2259_v0  ;;  %3623 = vtanh.f32 %v2136_v25  ;;  %v2138_v40 = vmul.f32 0.5, %v4859_v19 }
 0x411   : > { %5324 = vst [vmem:[#allocation28_spill] sm:$0xff] %v4862_v44  ;;  %v4873_v29 = vmul.f32 %v2322_v23, %v4803_v49  ;;  %3625 = vtanh.f32 %v2137_v4  ;;  %v2139_v54 = vmul.f32 0.5, %v4866_v16 }
 0x412   : > { %5325 = vst [vmem:[#allocation30_spill] sm:$0xff] %v4869_v62  ;;  %v3616_v32 = vpop.eup %3615  ;;  %v4877_v42 = vmul.f32 %v2323_v63, %v4810_v59  ;;  %3627 = vtanh.f32 %v2138_v40 }
 0x413   : > { %5326 = vst [vmem:[#allocation27_spill] sm:$0xff] %v4873_v29  ;;  %v3618_v55 = vpop.eup %3617  ;;  %v2260_v31 = vmul.f32 0.5, %v3616_v32  ;;  %3629 = vtanh.f32 %v2139_v54  ;;  %v2053_v11 = vpop.f32.mrb[48].mxu1 }
 0x414   : > { %5327 = vst [vmem:[#allocation29_spill] sm:$0xff] %v4877_v42  ;;  %v3620_v22 = vpop.eup %3619  ;;  %v2261_v0 = vmul.f32 0.5, %v3618_v55  ;;  %v4880_v25 = vadd.f32 %v2053_v11, %v4578_v50  ;;  %v2055_v44 = vpop.f32.mrb[49].mxu1 }
 0x415   : > { %v3622_v49 = vpop.eup %3621  ;;  %v2324_v23 = vadd.f32 0.5, %v2260_v31  ;;  %v2262_v4 = vmul.f32 0.5, %v3620_v22  ;;  %v4883_v29 = vadd.f32 %v2055_v44, %v4581_v24  ;;  %v2057_v62 = vpop.f32.mrb[50].mxu1 }
 0x416   : > { %v2325_v59 = vadd.f32 0.5, %v2261_v0  ;;  %v2263_v63 = vmul.f32 0.5, %v3622_v49  ;;  %v2140_v40 = vmul.f32 0.5, %v4880_v25  ;;  %v4887_v54 = vadd.f32 %v2057_v62, %v4578_v50  ;;  %v2059_v32 = vpop.f32.mrb[51].mxu1 }
 0x417   : > { %v4890_v55 = vmul.f32 %v2324_v23, %v4824_v47  ;;  %v2326_v11 = vadd.f32 0.5, %v2262_v4  ;;  %v2141_v42 = vmul.f32 0.5, %v4883_v29  ;;  %v4894_v31 = vadd.f32 %v2059_v32, %v4581_v24 }
 0x418   : > { %v4897_v44 = vmul.f32 %v2325_v59, %v4827_v36  ;;  %v2327_v22 = vadd.f32 0.5, %v2263_v63  ;;  %3631 = vtanh.f32 %v2140_v40  ;;  %v2142_v0 = vmul.f32 0.5, %v4887_v54 }
 0x419   : > { %5328 = vst [vmem:[#allocation32_spill] sm:$0xff] %v4890_v55  ;;  %v4901_v62 = vmul.f32 %v2326_v11, %v4831_v52  ;;  %3633 = vtanh.f32 %v2141_v42  ;;  %v2143_v47 = vmul.f32 0.5, %v4894_v31 }
 0x41a   : > { %5329 = vst [vmem:[#allocation34_spill] sm:$0xff] %v4897_v44  ;;  %v3624_v49 = vpop.eup %3623  ;;  %v4905_v23 = vmul.f32 %v2327_v22, %v4838_v8  ;;  %3635 = vtanh.f32 %v2142_v0 }
 0x41b   : > { %5330 = vst [vmem:[#allocation31_spill] sm:$0xff] %v4901_v62  ;;  %v3626_v4 = vpop.eup %3625  ;;  %v2264_v32 = vmul.f32 0.5, %v3624_v49  ;;  %3637 = vtanh.f32 %v2143_v47  ;;  %v2063_v36 = vpop.f32.mrb[52].mxu1 }
 0x41c   : > { %5331 = vst [vmem:[#allocation33_spill] sm:$0xff] %v4905_v23  ;;  %v3628_v59 = vpop.eup %3627  ;;  %v2265_v63 = vmul.f32 0.5, %v3626_v4  ;;  %v4908_v40 = vadd.f32 %v2063_v36, %v4578_v50  ;;  %v2065_v55 = vpop.f32.mrb[53].mxu1 }
 0x41d   : > { %v3630_v52 = vpop.eup %3629  ;;  %v2328_v11 = vadd.f32 0.5, %v2264_v32  ;;  %v2266_v42 = vmul.f32 0.5, %v3628_v59  ;;  %v4911_v62 = vadd.f32 %v2065_v55, %v4581_v24  ;;  %v2067_v44 = vpop.f32.mrb[54].mxu1 }
 0x41e   : > { %v2329_v8 = vadd.f32 0.5, %v2265_v63  ;;  %v2267_v22 = vmul.f32 0.5, %v3630_v52  ;;  %v2144_v0 = vmul.f32 0.5, %v4908_v40  ;;  %v4915_v47 = vadd.f32 %v2067_v44, %v4578_v50  ;;  %v2069_v49 = vpop.f32.mrb[55].mxu1 }
 0x41f   : > { %v4918_v4 = vmul.f32 %v2328_v11, %v4852_v28  ;;  %v2330_v36 = vadd.f32 0.5, %v2266_v42  ;;  %v2145_v23 = vmul.f32 0.5, %v4911_v62  ;;  %v4922_v32 = vadd.f32 %v2069_v49, %v4581_v24 }
 0x420   : > { %v4925_v55 = vmul.f32 %v2329_v8, %v4855_v61  ;;  %v2331_v59 = vadd.f32 0.5, %v2267_v22  ;;  %3639 = vtanh.f32 %v2144_v0  ;;  %v2146_v63 = vmul.f32 0.5, %v4915_v47 }
 0x421   : > { %5332 = vst [vmem:[#allocation36_spill] sm:$0xff] %v4918_v4  ;;  %v4929_v44 = vmul.f32 %v2330_v36, %v4859_v19  ;;  %3641 = vtanh.f32 %v2145_v23  ;;  %v2147_v28 = vmul.f32 0.5, %v4922_v32 }
 0x422   : > { %5333 = vst [vmem:[#allocation38_spill] sm:$0xff] %v4925_v55  ;;  %v3632_v52 = vpop.eup %3631  ;;  %v4933_v11 = vmul.f32 %v2331_v59, %v4866_v16  ;;  %3643 = vtanh.f32 %v2146_v63 }
 0x423   : > { %5334 = vst [vmem:[#allocation35_spill] sm:$0xff] %v4929_v44  ;;  %v3634_v42 = vpop.eup %3633  ;;  %v2268_v49 = vmul.f32 0.5, %v3632_v52  ;;  %3645 = vtanh.f32 %v2147_v28  ;;  %v2073_v61 = vpop.f32.mrb[56].mxu1 }
 0x424   : > { %5335 = vst [vmem:[#allocation37_spill] sm:$0xff] %v4933_v11  ;;  %v3636_v8 = vpop.eup %3635  ;;  %v2269_v22 = vmul.f32 0.5, %v3634_v42  ;;  %v4936_v0 = vadd.f32 %v2073_v61, %v4578_v50  ;;  %v2075_v4 = vpop.f32.mrb[57].mxu1 }
 0x425   : > { %v3638_v19 = vpop.eup %3637  ;;  %v2332_v36 = vadd.f32 0.5, %v2268_v49  ;;  %v2270_v23 = vmul.f32 0.5, %v3636_v8  ;;  %v4939_v44 = vadd.f32 %v2075_v4, %v4581_v24  ;;  %v2077_v55 = vpop.f32.mrb[58].mxu1 }
 0x426   : > { %v2333_v16 = vadd.f32 0.5, %v2269_v22  ;;  %v2271_v59 = vmul.f32 0.5, %v3638_v19  ;;  %v2148_v63 = vmul.f32 0.5, %v4936_v0  ;;  %v2078_v28 = vadd.f32 %v2077_v55, %v4578_v50  ;;  %v2079_v52 = vpop.f32.mrb[59].mxu1 }
 0x427   : > { %v4944_v42 = vmul.f32 %v2332_v36, %v4880_v25  ;;  %v2334_v61 = vadd.f32 0.5, %v2270_v23  ;;  %v2149_v11 = vmul.f32 0.5, %v4939_v44  ;;  %v2080_v49 = vadd.f32 %v2079_v52, %v4581_v24 }
 0x428   : > { %v4949_v8 = vmul.f32 %v2333_v16, %v4883_v29  ;;  %v2335_v4 = vadd.f32 0.5, %v2271_v59  ;;  %3647 = vtanh.f32 %v2148_v63  ;;  %v2150_v22 = vmul.f32 0.5, %v2078_v28 }
 0x429   : > { %5336 = vst [vmem:[#allocation40_spill] sm:$0xff] %v4944_v42  ;;  %v4952_v19 = vmul.f32 %v2334_v61, %v4887_v54  ;;  %3649 = vtanh.f32 %v2149_v11  ;;  %v2151_v55 = vmul.f32 0.5, %v2080_v49 }
 0x42a   : > { %5337 = vst [vmem:[#allocation42_spill] sm:$0xff] %v4949_v8  ;;  %v3640_v2 = vpop.eup %3639  ;;  %v4955_v25 = vmul.f32 %v2335_v4, %v4894_v31  ;;  %3651 = vtanh.f32 %v2150_v22 }
 0x42b   : > { %5338 = vst [vmem:[#allocation39_spill] sm:$0xff] %v4952_v19  ;;  %v3642_v36 = vpop.eup %3641  ;;  %v2272_v23 = vmul.f32 0.5, %v3640_v2  ;;  %3653 = vtanh.f32 %v2151_v55  ;;  %v2083_v52 = vpop.f32.mrb[60].mxu1 }
 0x42c   : > { %5339 = vst [vmem:[#allocation41_spill] sm:$0xff] %v4955_v25  ;;  %v3644_v42 = vpop.eup %3643  ;;  %v2273_v29 = vmul.f32 0.5, %v3642_v36  ;;  %v2084_v16 = vadd.f32 %v2083_v52, %v4578_v50  ;;  %v2085_v59 = vpop.f32.mrb[61].mxu1 }
 0x42d   : > { %v3646_v63 = vpop.eup %3645  ;;  %v2336_v8 = vadd.f32 0.5, %v2272_v23  ;;  %v2274_v54 = vmul.f32 0.5, %v3644_v42  ;;  %v2086_v11 = vadd.f32 %v2085_v59, %v4581_v24  ;;  %v2087_v61 = vpop.f32.mrb[62].mxu1 }
 0x42e   : > { %v2337_v19 = vadd.f32 0.5, %v2273_v29  ;;  %v2275_v7 = vmul.f32 0.5, %v3646_v63  ;;  %v2152_v31 = vmul.f32 0.5, %v2084_v16  ;;  %v2088_v4 = vadd.f32 %v2087_v61, %v4578_v50  ;;  %v2089_v22 = vpop.f32.mrb[63].mxu1 }
 0x42f   : > { %v4961_v2 = vmul.f32 %v2336_v8, %v4908_v40  ;;  %v2338_v55 = vadd.f32 0.5, %v2274_v54  ;;  %v2153_v36 = vmul.f32 0.5, %v2086_v11  ;;  %v2090_v52 = vadd.f32 %v2089_v22, %v4581_v24 }
 0x430   : > { %v4965_v25 = vmul.f32 %v2337_v19, %v4911_v62  ;;  %v2339_v42 = vadd.f32 0.5, %v2275_v7  ;;  %3655 = vtanh.f32 %v2152_v31  ;;  %v2154_v23 = vmul.f32 0.5, %v2088_v4 }
 0x431   : > { %v4968_v29 = vmul.f32 %v2338_v55, %v4915_v47  ;;  %3657 = vtanh.f32 %v2153_v36  ;;  %v2155_v59 = vmul.f32 0.5, %v2090_v52 }
 0x432   : > { %v3648_v50 = vpop.eup %3647  ;;  %v4971_v63 = vmul.f32 %v2339_v42, %v4922_v32  ;;  %3659 = vtanh.f32 %v2154_v23 }
 0x433   : > { %5340 = vst [vmem:[#allocation43_spill] sm:$0xff] %v4968_v29  ;;  %v3650_v40 = vpop.eup %3649  ;;  %v2276_v8 = vmul.f32 0.5, %v3648_v50  ;;  %3661 = vtanh.f32 %v2155_v59 }
 0x434   : > { %v3652_v24 = vpop.eup %3651  ;;  %v2277_v54 = vmul.f32 0.5, %v3650_v40 }
 0x435   : > { %v3654_v62 = vpop.eup %3653  ;;  %v2340_v19 = vadd.f32 0.5, %v2276_v8  ;;  %v2278_v7 = vmul.f32 0.5, %v3652_v24 }
 0x436   : > { %v2341_v61 = vadd.f32 0.5, %v2277_v54  ;;  %v2279_v31 = vmul.f32 0.5, %v3654_v62 }
 0x437   : > { %v4974_v47 = vmul.f32 %v2340_v19, %v4936_v0  ;;  %v2342_v22 = vadd.f32 0.5, %v2278_v7 }
 0x438   : > { %v4977_v55 = vmul.f32 %v2341_v61, %v4939_v44  ;;  %v2343_v32 = vadd.f32 0.5, %v2279_v31 }
 0x439   : > { %v4979_v36 = vmul.f32 %v2342_v22, %v2078_v28 }
 0x43a   : > { %v3656_v42 = vpop.eup %3655  ;;  %v4981_v23 = vmul.f32 %v2343_v32, %v2080_v49 }
 0x43b   : > { %v3658_v59 = vpop.eup %3657  ;;  %v2280_v50 = vmul.f32 0.5, %v3656_v42 }
 0x43c   : > { %v3660_v40 = vpop.eup %3659  ;;  %v2281_v8 = vmul.f32 0.5, %v3658_v59 }
 0x43d   : > { %v3662_v24 = vpop.eup %3661  ;;  %v2344_v54 = vadd.f32 0.5, %v2280_v50  ;;  %v2282_v62 = vmul.f32 0.5, %v3660_v40 }
 0x43e   : > { %v2345_v29 = vadd.f32 0.5, %v2281_v8  ;;  %v2283_v0 = vmul.f32 0.5, %v3662_v24 }
 0x43f   : > { %v4983_v19 = vmul.f32 %v2344_v54, %v2084_v16  ;;  %v2346_v7 = vadd.f32 0.5, %v2282_v62 }
 0x440   : > { %v4985_v44 = vmul.f32 %v2345_v29, %v2086_v11  ;;  %v2347_v61 = vadd.f32 0.5, %v2283_v0 }
 0x441   : > { %v4987_v28 = vmul.f32 %v2346_v7, %v2088_v4 }
 0x442   : > { %v4989_v31 = vmul.f32 %v2347_v61, %v2090_v52 }
 0x443   : > { %3775 = dma.done.wait [#allocation4 + $0x1], 4096 }
 0x444   : > { %3776 = vsyncadd [#allocation4 + $0x1], 4294963200  ;;  %v2415_v49 = vpack.c.bf16 %v4625_v43, %v4619_v41  ;;  %v2447_v22 = vld [vmem:[#allocation3 + $0x8] sm:$0xff]  ;;  %v2446_v32 = vld [vmem:[#allocation3] sm:$0xff]  ;;  %s3013_s29 = sshll.u32 %s3877_s28, 13  ;;  %s2762_s17 = sshll.u32 %s4508_s26, 4  ;;  %s5197_s17 = int_to_ptr.vmem [resolvable:$true] %s2762_s17 }
 0x445   : > { %v2449_v42 = vld [vmem:[#allocation3 + $0x18] sm:$0xff]  ;;  %2490 = vmatprep.subr.bf16.mxu1 %v2447_v22  ;;  %v2448_v16 = vld [vmem:[#allocation3 + $0x10] sm:$0xff]  ;;  %v2451_v11 = vld [vmem:[#allocation3 + $0x28] sm:$0xff]  ;;  %s5193_s22 = scalar_lea.hbm %s5252_s7, %s3013_s29  ;;  %s2748_s28 = scalar_lea.sflag [#allocation7], %s3995_s12 }
 0x446   : > { %2522 = vmatprep.mubr.bf16.mxu1 %v2415_v49  ;;  %2491 = vmatpush1.bf16.msra.mxu1 %v2446_v32  ;;  %v2450_v4 = vld [vmem:[#allocation3 + $0x20] sm:$0xff]  ;;  %v2453_v29 = vld [vmem:[#allocation3 + $0x38] sm:$0xff]  ;;  %v2452_v52 = vld [vmem:[#allocation3 + $0x30] sm:$0xff]  ;;  %s3721_s20 = scalar_lea.vmem %s5197_s17, 8192  ;;  %s3814_s16 = smov [#allocation10]  }
 0x447   : > { %2492 = vmatprep.subr.bf16.mxu1 %v2449_v42  ;;  %v2455_v59 = vld [vmem:[#allocation3 + $0x48] sm:$0xff]  ;;  %v2454_v41 = vld [vmem:[#allocation3 + $0x40] sm:$0xff]  ;;  %v2457_v43 = vld [vmem:[#allocation3 + $0x58] sm:$0xff]  ;;  %p3722_p4 = scmp.ne.s32.totalorder %s5197_s17, %s3721_s20  ;;  %s3725_s9 = sshll.u32 %s3814_s16, 4  ;;  %s3726_s9 = int_to_ptr.vmem [resolvable:$false] %s3725_s9 }
 0x448   : > { %v2456_v50 = vld [vmem:[#allocation3 + $0x50] sm:$0xff]  ;;  %v2459_v40 = vld [vmem:[#allocation3 + $0x68] sm:$0xff]  ;;  %v2458_v8 = vld [vmem:[#allocation3 + $0x60] sm:$0xff]  ;;  %s3727_s30 = scalar_lea.vmem %s3726_s9, 16384  ;;  %p3728_p10 = scmp.lt.s32.totalorder %s5197_s17, %s3726_s9 }
 0x449   : > { %v2461_v24 = vld [vmem:[#allocation3 + $0x78] sm:$0xff]  ;;  %v2460_v54 = vld [vmem:[#allocation3 + $0x70] sm:$0xff]  ;;  %v2463_v62 = vld [vmem:[#allocation3 + $0x88] sm:$0xff]  ;;  %p3723_p6 = pnand %p3722_p4, %p3947_p12  ;;  %p3729_p13 = scmp.lt.s32.totalorder %s3727_s30, %s3721_s20 }
 0x44a   : > { %2493 = vmatpush1.bf16.msra.mxu1 %v2448_v16  ;;  %v2462_v0 = vld [vmem:[#allocation3 + $0x80] sm:$0xff]  ;;  %v2465_v7 = vld [vmem:[#allocation3 + $0x98] sm:$0xff]  ;;  %v2464_v61 = vld [vmem:[#allocation3 + $0x90] sm:$0xff] }
 0x44b   : > { %2494 = vmatprep.subr.bf16.mxu1 %v2451_v11  ;;  %v2467_v49 = vld [vmem:[#allocation3 + $0xa8] sm:$0xff]  ;;  %v2466_v22 = vld [vmem:[#allocation3 + $0xa0] sm:$0xff]  ;;  %v2469_v32 = vld [vmem:[#allocation3 + $0xb8] sm:$0xff]  ;;  %p3724_p8 = pneg %p3723_p6  ;;  %p3730_p3 = por %p3729_p13, %p3728_p10 }
 0x44c   : > { %v2468_v42 = vld [vmem:[#allocation3 + $0xb0] sm:$0xff]  ;;  %v2471_v16 = vld [vmem:[#allocation3 + $0xc8] sm:$0xff]  ;;  %v2470_v11 = vld [vmem:[#allocation3 + $0xc0] sm:$0xff] }
 0x44d   : > { %p3731_p7 = pnand %p3730_p3, %p3724_p8 }
 0x44e   : > { %2495 = vmatpush1.bf16.msra.mxu1 %v2450_v4  ;;  %v2473_v4 = vld [vmem:[#allocation3 + $0xd8] sm:$0xff] }
 0x44f   : > { %2496 = vmatprep.subr.bf16.mxu1 %v2453_v29  ;;  %v2472_v29 = vld [vmem:[#allocation3 + $0xd0] sm:$0xff] }
 0x452   : > { %2497 = vmatpush1.bf16.msra.mxu1 %v2452_v52  ;;  %v2475_v52 = vld [vmem:[#allocation3 + $0xe8] sm:$0xff] }
 0x453   : > { %2498 = vmatprep.subr.bf16.mxu1 %v2455_v59  ;;  %v2474_v59 = vld [vmem:[#allocation3 + $0xe0] sm:$0xff] }
 0x456   : > { %2499 = vmatpush1.bf16.msra.mxu1 %v2454_v41  ;;  %v2477_v41 = vld [vmem:[#allocation3 + $0xf8] sm:$0xff] }
 0x457   : > { %2500 = vmatprep.subr.bf16.mxu1 %v2457_v43  ;;  %v2476_v43 = vld [vmem:[#allocation3 + $0xf0] sm:$0xff] }
 0x45a   : > { %2501 = vmatpush1.bf16.msra.mxu1 %v2456_v50  ;;  %v2414_v50 = vpack.c.bf16 %v4622_v10, %v4613_v46  ;;  %v2421_v46 = vpack.c.bf16 %v4709_v17, %v4701_v26  ;;  %v2420_v10 = vpack.c.bf16 %v4705_v34, %v4694_v27  ;;  %v2431_v27 = vpack.c.bf16 %v4849_v57, %v4841_v58  ;;  %v5341_v26 = vld [vmem:[#allocation25_spill] sm:$0xff]  ;;  %v5342_v34 = vld [vmem:[#allocation26_spill] sm:$0xff]  ;;  %v5354_v58 = vld [vmem:[#allocation35_spill] sm:$0xff] }
 0x45b   : > { %2502 = vmatprep.subr.bf16.mxu1 %v2459_v40  ;;  %v2417_v40 = vpack.c.bf16 %v4653_v60, %v4645_v56  ;;  %v2423_v56 = vpack.c.bf16 %v4737_v13, %v4729_v3  ;;  %v2424_v60 = vpack.c.bf16 %v4761_v9, %v4750_v38  ;;  %v2430_v17 = vpack.c.bf16 %v5342_v34, %v5341_v26  ;;  %v5344_v3 = vld [vmem:[#allocation29_spill] sm:$0xff]  ;;  %v5345_v13 = vld [vmem:[#allocation28_spill] sm:$0xff]  ;;  %v5346_v38 = vld [vmem:[#allocation27_spill] sm:$0xff] }
 0x45c   : > { %v5347_v9 = vld [vmem:[#allocation34_spill] sm:$0xff] }
 0x45e   : > { %2503 = vmatpush1.bf16.msra.mxu1 %v2458_v8  ;;  %v2416_v8 = vpack.c.bf16 %v4649_v30, %v4638_v6  ;;  %v2422_v6 = vpack.c.bf16 %v4733_v53, %v4722_v5  ;;  %v2425_v30 = vpack.c.bf16 %v4765_v37, %v4757_v33  ;;  %v5343_v5 = vld [vmem:[#allocation30_spill] sm:$0xff]  ;;  %v2432_v33 = vpack.c.bf16 %v5346_v38, %v5345_v13  ;;  %v5348_v37 = vld [vmem:[#allocation33_spill] sm:$0xff] }
 0x45f   : > { %2504 = vmatprep.subr.bf16.mxu1 %v2461_v24  ;;  %v2419_v24 = vpack.c.bf16 %v4681_v39, %v4673_v45  ;;  %v2426_v45 = vpack.c.bf16 %v4789_v14, %v4778_v12  ;;  %v2428_v39 = vpack.c.bf16 %v4817_v15, %v4806_v35  ;;  %v2433_v53 = vpack.c.bf16 %v5344_v3, %v5343_v5  ;;  %v5350_v14 = vld [vmem:[#allocation31_spill] sm:$0xff]  ;;  %v5351_v35 = vld [vmem:[#allocation38_spill] sm:$0xff] }
 0x460   : > { %v2435_v12 = vpack.c.bf16 %v5348_v37, %v5347_v9 }
 0x462   : > { %2505 = vmatpush1.bf16.msra.mxu1 %v2460_v54  ;;  %v2418_v54 = vpack.c.bf16 %v4677_v18, %v4666_v1  ;;  %v2427_v1 = vpack.c.bf16 %v4793_v20, %v4785_v48  ;;  %v2429_v18 = vpack.c.bf16 %v4821_v51, %v4813_v21  ;;  %v5349_v48 = vld [vmem:[#allocation32_spill] sm:$0xff]  ;;  %v5352_v21 = vld [vmem:[#allocation37_spill] sm:$0xff] }
 0x463   : > { %2506 = vmatprep.subr.bf16.mxu1 %v2463_v62  ;;  %v2434_v20 = vpack.c.bf16 %v5350_v14, %v5349_v48  ;;  %v2437_v15 = vpack.c.bf16 %v5352_v21, %v5351_v35  ;;  %v5353_v51 = vld [vmem:[#allocation36_spill] sm:$0xff]  ;;  %v5355_v62 = vld [vmem:[#allocation42_spill] sm:$0xff] }
 0x464   : > { %v2436_v57 = vpack.c.bf16 %v5354_v58, %v5353_v51 }
 0x466   : > { %2507 = vmatpush1.bf16.msra.mxu1 %v2462_v0  ;;  %v5356_v0 = vld [vmem:[#allocation41_spill] sm:$0xff] }
 0x467   : > { %2508 = vmatprep.subr.bf16.mxu1 %v2465_v7  ;;  %v2439_v7 = vpack.c.bf16 %v5356_v0, %v5355_v62 }
 0x46a   : > { %2509 = vmatpush1.bf16.msra.mxu1 %v2464_v61  ;;  %v5357_v61 = vld [vmem:[#allocation40_spill] sm:$0xff] }
 0x46b   : > { %2510 = vmatprep.subr.bf16.mxu1 %v2467_v49  ;;  %v5358_v49 = vld [vmem:[#allocation39_spill] sm:$0xff] }
 0x46e   : > { %2511 = vmatpush1.bf16.msra.mxu1 %v2466_v22  ;;  %v2438_v22 = vpack.c.bf16 %v5358_v49, %v5357_v61 }
 0x46f   : > { %2512 = vmatprep.subr.bf16.mxu1 %v2469_v32  ;;  %v2441_v32 = vpack.c.bf16 %v4971_v63, %v4965_v25  ;;  %v2444_v25 = vpack.c.bf16 %v4987_v28, %v4983_v19  ;;  %v5360_v63 = vld [vmem:[#allocation23_spill] sm:$0xff] }
 0x472   : > { %2513 = vmatpush1.bf16.msra.mxu1 %v2468_v42  ;;  %v5359_v42 = vld [vmem:[#allocation43_spill] sm:$0xff] }
 0x473   : > { %2514 = vmatprep.subr.bf16.mxu1 %v2471_v16  ;;  %v2440_v16 = vpack.c.bf16 %v5359_v42, %v4961_v2  ;;  %v2478_v2 = vld [vmem:[%s5251_s6] sm:$0x3] }
 0x476   : > { %2515 = vmatpush1.bf16.msra.mxu1 %v2470_v11  ;;  %v2443_v11 = vpack.c.bf16 %v4981_v23, %v4977_v55  ;;  %v5059_v55 = vrot.slane %v2478_v2, %v5360_v63 }
 0x477   : > { %2516 = vmatprep.subr.bf16.mxu1 %v2473_v4  ;;  %v2442_v4 = vpack.c.bf16 %v4979_v36, %v4974_v47  ;;  %v5361_v47 = vld [vmem:[#allocation24_spill] sm:$0xff] }
 0x478   : > { %v5062_v36 = vrot.slane %v2478_v2, %v5361_v47 }
 0x47a   : > { %2517 = vmatpush1.bf16.msra.mxu1 %v2472_v29  ;;  %v2445_v29 = vpack.c.bf16 %v4989_v31, %v4985_v44 }
 0x47b   : > { %2518 = vmatprep.subr.bf16.mxu1 %v2475_v52 }
 0x47e   : > { %2519 = vmatpush1.bf16.msra.mxu1 %v2474_v59 }
 0x47f   : > { %2520 = vmatprep.subr.bf16.mxu1 %v2477_v41 }
 0x482   : > { %2521 = vmatpush1.bf16.msra.mxu1 %v2476_v43 }
 0x485   : > { %2523 = vmatmul.mubr.bf16.vlgmr.msra.gmra.mrb[64].mxu1 %v2414_v50 }
 0x486   : > { %2532 = vmatprep.mubr.bf16.mxu1 %v2417_v40 }
 0x48d   : > { %2533 = vmatmul.mubr.bf16.gmra.mrb[68].mxu1 %v2416_v8 }
 0x48e   : > { %2542 = vmatprep.mubr.bf16.mxu1 %v2419_v24 }
 0x495   : > { %2543 = vmatmul.mubr.bf16.gmra.mrb[72].mxu1 %v2418_v54 }
 0x496   : > { %2552 = vmatprep.mubr.bf16.mxu1 %v2421_v46 }
 0x49d   : > { %2553 = vmatmul.mubr.bf16.gmra.mrb[76].mxu1 %v2420_v10 }
 0x49e   : > { %2562 = vmatprep.mubr.bf16.mxu1 %v2423_v56 }
 0x4a5   : > { %2563 = vmatmul.mubr.bf16.gmra.mrb[80].mxu1 %v2422_v6 }
 0x4a6   : > { %2572 = vmatprep.mubr.bf16.mxu1 %v2425_v30 }
 0x4ad   : > { %2573 = vmatmul.mubr.bf16.gmra.mrb[84].mxu1 %v2424_v60 }
 0x4ae   : > { %2582 = vmatprep.mubr.bf16.mxu1 %v2427_v1 }
 0x4b5   : > { %2583 = vmatmul.mubr.bf16.gmra.mrb[88].mxu1 %v2426_v45 }
 0x4b6   : > { %2592 = vmatprep.mubr.bf16.mxu1 %v2429_v18 }
 0x4bd   : > { %2593 = vmatmul.mubr.bf16.gmra.mrb[92].mxu1 %v2428_v39 }
 0x4be   : > { %2602 = vmatprep.mubr.bf16.mxu1 %v2431_v27 }
 0x4c5   : > { %2603 = vmatmul.mubr.bf16.gmra.mrb[96].mxu1 %v2430_v17 }
 0x4c6   : > { %2612 = vmatprep.mubr.bf16.mxu1 %v2433_v53 }
 0x4cd   : > { %2613 = vmatmul.mubr.bf16.gmra.mrb[100].mxu1 %v2432_v33 }
 0x4ce   : > { %2622 = vmatprep.mubr.bf16.mxu1 %v2435_v12 }
 0x4d5   : > { %2623 = vmatmul.mubr.bf16.gmra.mrb[104].mxu1 %v2434_v20 }
 0x4d6   : > { %2632 = vmatprep.mubr.bf16.mxu1 %v2437_v15 }
 0x4dd   : > { %2633 = vmatmul.mubr.bf16.gmra.mrb[108].mxu1 %v2436_v57 }
 0x4de   : > { %2642 = vmatprep.mubr.bf16.mxu1 %v2439_v7 }
 0x4e5   : > { %2643 = vmatmul.mubr.bf16.gmra.mrb[112].mxu1 %v2438_v22 }
 0x4e6   : > { %2652 = vmatprep.mubr.bf16.mxu1 %v2441_v32 }
 0x4ed   : > { %2653 = vmatmul.mubr.bf16.gmra.mrb[116].mxu1 %v2440_v16 }
 0x4ee   : > { %2662 = vmatprep.mubr.bf16.mxu1 %v2443_v11 }
 0x4f5   : > { %2663 = vmatmul.mubr.bf16.gmra.mrb[120].mxu1 %v2442_v4 }
 0x4f6   : > { %2672 = vmatprep.mubr.bf16.mxu1 %v2445_v29 }
 0x4fd   : > { %2673 = vmatmul.mubr.bf16.gmra.mrb[124].mxu1 %v2444_v25 }
 0x558   : > { %v2524_v23 = vpop.f32.mrb[64].mxu1 }
 0x559   : > { %v2525_v44 = vadd.f32 %v2524_v23, %v5059_v55  ;;  %v2526_v31 = vpop.f32.mrb[65].mxu1 }
 0x55a   : > { %v2527_v52 = vadd.f32 %v2526_v31, %v5062_v36  ;;  %v2528_v19 = vpop.f32.mrb[66].mxu1 }
 0x55b   : > { %2683 = vst [vmem:[%s4508_s26] sm:$0xff] %v2525_v44  ;;  %v2529_v28 = vadd.f32 %v2528_v19, %v5059_v55  ;;  %v2530_v59 = vpop.f32.mrb[67].mxu1 }
 0x55c   : > { %2684 = vst [vmem:[%s4508_s26 + $0x8] sm:$0xff] %v2527_v52  ;;  %v2531_v41 = vadd.f32 %v2530_v59, %v5062_v36 }
 0x55d   : > { %2685 = vst [vmem:[%s4508_s26 + $0x10] sm:$0xff] %v2529_v28 }
 0x55e   : > { %2686 = vst [vmem:[%s4508_s26 + $0x18] sm:$0xff] %v2531_v41 }
 0x560   : > { %v2534_v43 = vpop.f32.mrb[68].mxu1 }
 0x561   : > { %v2535_v50 = vadd.f32 %v2534_v43, %v5059_v55  ;;  %v2536_v40 = vpop.f32.mrb[69].mxu1 }
 0x562   : > { %v2537_v8 = vadd.f32 %v2536_v40, %v5062_v36  ;;  %v2538_v24 = vpop.f32.mrb[70].mxu1 }
 0x563   : > { %2687 = vst [vmem:[%s4508_s26 + $0x20] sm:$0xff] %v2535_v50  ;;  %v2539_v54 = vadd.f32 %v2538_v24, %v5059_v55  ;;  %v2540_v46 = vpop.f32.mrb[71].mxu1 }
 0x564   : > { %2688 = vst [vmem:[%s4508_s26 + $0x28] sm:$0xff] %v2537_v8  ;;  %v2541_v10 = vadd.f32 %v2540_v46, %v5062_v36 }
 0x565   : > { %2689 = vst [vmem:[%s4508_s26 + $0x30] sm:$0xff] %v2539_v54 }
 0x566   : > { %2690 = vst [vmem:[%s4508_s26 + $0x38] sm:$0xff] %v2541_v10 }
 0x568   : > { %v2544_v56 = vpop.f32.mrb[72].mxu1 }
 0x569   : > { %v2545_v6 = vadd.f32 %v2544_v56, %v5059_v55  ;;  %v2546_v30 = vpop.f32.mrb[73].mxu1 }
 0x56a   : > { %v2547_v60 = vadd.f32 %v2546_v30, %v5062_v36  ;;  %v2548_v1 = vpop.f32.mrb[74].mxu1 }
 0x56b   : > { %2691 = vst [vmem:[%s4508_s26 + $0x40] sm:$0xff] %v2545_v6  ;;  %v2549_v45 = vadd.f32 %v2548_v1, %v5059_v55  ;;  %v2550_v18 = vpop.f32.mrb[75].mxu1 }
 0x56c   : > { %2692 = vst [vmem:[%s4508_s26 + $0x48] sm:$0xff] %v2547_v60  ;;  %v2551_v39 = vadd.f32 %v2550_v18, %v5062_v36 }
 0x56d   : > { %2693 = vst [vmem:[%s4508_s26 + $0x50] sm:$0xff] %v2549_v45 }
 0x56e   : > { %2694 = vst [vmem:[%s4508_s26 + $0x58] sm:$0xff] %v2551_v39 }
 0x570   : > { %v2554_v27 = vpop.f32.mrb[76].mxu1 }
 0x571   : > { %v2555_v26 = vadd.f32 %v2554_v27, %v5059_v55  ;;  %v2556_v34 = vpop.f32.mrb[77].mxu1 }
 0x572   : > { %v2557_v17 = vadd.f32 %v2556_v34, %v5062_v36  ;;  %v2558_v5 = vpop.f32.mrb[78].mxu1 }
 0x573   : > { %2695 = vst [vmem:[%s4508_s26 + $0x60] sm:$0xff] %v2555_v26  ;;  %v2559_v3 = vadd.f32 %v2558_v5, %v5059_v55  ;;  %v2560_v53 = vpop.f32.mrb[79].mxu1 }
 0x574   : > { %2696 = vst [vmem:[%s4508_s26 + $0x68] sm:$0xff] %v2557_v17  ;;  %v2561_v13 = vadd.f32 %v2560_v53, %v5062_v36 }
 0x575   : > { %2697 = vst [vmem:[%s4508_s26 + $0x70] sm:$0xff] %v2559_v3 }
 0x576   : > { %2698 = vst [vmem:[%s4508_s26 + $0x78] sm:$0xff] %v2561_v13 }
 0x578   : > { %v2564_v38 = vpop.f32.mrb[80].mxu1 }
 0x579   : > { %v2565_v33 = vadd.f32 %v2564_v38, %v5059_v55  ;;  %v2566_v9 = vpop.f32.mrb[81].mxu1 }
 0x57a   : > { %v2567_v37 = vadd.f32 %v2566_v9, %v5062_v36  ;;  %v2568_v12 = vpop.f32.mrb[82].mxu1 }
 0x57b   : > { %2699 = vst [vmem:[%s4508_s26 + $0x80] sm:$0xff] %v2565_v33  ;;  %v2569_v48 = vadd.f32 %v2568_v12, %v5059_v55  ;;  %v2570_v14 = vpop.f32.mrb[83].mxu1 }
 0x57c   : > { %2700 = vst [vmem:[%s4508_s26 + $0x88] sm:$0xff] %v2567_v37  ;;  %v2571_v20 = vadd.f32 %v2570_v14, %v5062_v36 }
 0x57d   : > { %2701 = vst [vmem:[%s4508_s26 + $0x90] sm:$0xff] %v2569_v48 }
 0x57e   : > { %2702 = vst [vmem:[%s4508_s26 + $0x98] sm:$0xff] %v2571_v20 }
 0x580   : > { %v2574_v35 = vpop.f32.mrb[84].mxu1 }
 0x581   : > { %v2575_v21 = vadd.f32 %v2574_v35, %v5059_v55  ;;  %v2576_v15 = vpop.f32.mrb[85].mxu1 }
 0x582   : > { %v2577_v51 = vadd.f32 %v2576_v15, %v5062_v36  ;;  %v2578_v58 = vpop.f32.mrb[86].mxu1 }
 0x583   : > { %2703 = vst [vmem:[%s4508_s26 + $0xa0] sm:$0xff] %v2575_v21  ;;  %v2579_v57 = vadd.f32 %v2578_v58, %v5059_v55  ;;  %v2580_v62 = vpop.f32.mrb[87].mxu1 }
 0x584   : > { %2704 = vst [vmem:[%s4508_s26 + $0xa8] sm:$0xff] %v2577_v51  ;;  %v2581_v0 = vadd.f32 %v2580_v62, %v5062_v36 }
 0x585   : > { %2705 = vst [vmem:[%s4508_s26 + $0xb0] sm:$0xff] %v2579_v57 }
 0x586   : > { %2706 = vst [vmem:[%s4508_s26 + $0xb8] sm:$0xff] %v2581_v0 }
 0x588   : > { %v2584_v7 = vpop.f32.mrb[88].mxu1 }
 0x589   : > { %v2585_v61 = vadd.f32 %v2584_v7, %v5059_v55  ;;  %v2586_v49 = vpop.f32.mrb[89].mxu1 }
 0x58a   : > { %v2587_v22 = vadd.f32 %v2586_v49, %v5062_v36  ;;  %v2588_v32 = vpop.f32.mrb[90].mxu1 }
 0x58b   : > { %2707 = vst [vmem:[%s4508_s26 + $0xc0] sm:$0xff] %v2585_v61  ;;  %v2589_v42 = vadd.f32 %v2588_v32, %v5059_v55  ;;  %v2590_v16 = vpop.f32.mrb[91].mxu1 }
 0x58c   : > { %2708 = vst [vmem:[%s4508_s26 + $0xc8] sm:$0xff] %v2587_v22  ;;  %v2591_v11 = vadd.f32 %v2590_v16, %v5062_v36 }
 0x58d   : > { %2709 = vst [vmem:[%s4508_s26 + $0xd0] sm:$0xff] %v2589_v42 }
 0x58e   : > { %2710 = vst [vmem:[%s4508_s26 + $0xd8] sm:$0xff] %v2591_v11 }
 0x590   : > { %v2594_v4 = vpop.f32.mrb[92].mxu1 }
 0x591   : > { %v2595_v29 = vadd.f32 %v2594_v4, %v5059_v55  ;;  %v2596_v25 = vpop.f32.mrb[93].mxu1 }
 0x592   : > { %v2597_v2 = vadd.f32 %v2596_v25, %v5062_v36  ;;  %v2598_v63 = vpop.f32.mrb[94].mxu1 }
 0x593   : > { %2711 = vst [vmem:[%s4508_s26 + $0xe0] sm:$0xff] %v2595_v29  ;;  %v2599_v47 = vadd.f32 %v2598_v63, %v5059_v55  ;;  %v2600_v23 = vpop.f32.mrb[95].mxu1 }
 0x594   : > { %2712 = vst [vmem:[%s4508_s26 + $0xe8] sm:$0xff] %v2597_v2  ;;  %v2601_v44 = vadd.f32 %v2600_v23, %v5062_v36 }
 0x595   : > { %2713 = vst [vmem:[%s4508_s26 + $0xf0] sm:$0xff] %v2599_v47 }
 0x596   : > { %2714 = vst [vmem:[%s4508_s26 + $0xf8] sm:$0xff] %v2601_v44 }
 0x598   : > { %v2604_v31 = vpop.f32.mrb[96].mxu1 }
 0x599   : > { %v2605_v52 = vadd.f32 %v2604_v31, %v5059_v55  ;;  %v2606_v19 = vpop.f32.mrb[97].mxu1 }
 0x59a   : > { %v2607_v28 = vadd.f32 %v2606_v19, %v5062_v36  ;;  %v2608_v59 = vpop.f32.mrb[98].mxu1 }
 0x59b   : > { %2715 = vst [vmem:[%s4508_s26 + $0x100] sm:$0xff] %v2605_v52  ;;  %v2609_v41 = vadd.f32 %v2608_v59, %v5059_v55  ;;  %v2610_v43 = vpop.f32.mrb[99].mxu1 }
 0x59c   : > { %2716 = vst [vmem:[%s4508_s26 + $0x108] sm:$0xff] %v2607_v28  ;;  %v2611_v50 = vadd.f32 %v2610_v43, %v5062_v36 }
 0x59d   : > { %2717 = vst [vmem:[%s4508_s26 + $0x110] sm:$0xff] %v2609_v41 }
 0x59e   : > { %2718 = vst [vmem:[%s4508_s26 + $0x118] sm:$0xff] %v2611_v50 }
 0x5a0   : > { %v2614_v40 = vpop.f32.mrb[100].mxu1 }
 0x5a1   : > { %v2615_v8 = vadd.f32 %v2614_v40, %v5059_v55  ;;  %v2616_v24 = vpop.f32.mrb[101].mxu1 }
 0x5a2   : > { %v2617_v54 = vadd.f32 %v2616_v24, %v5062_v36  ;;  %v2618_v46 = vpop.f32.mrb[102].mxu1 }
 0x5a3   : > { %2719 = vst [vmem:[%s4508_s26 + $0x120] sm:$0xff] %v2615_v8  ;;  %v2619_v10 = vadd.f32 %v2618_v46, %v5059_v55  ;;  %v2620_v56 = vpop.f32.mrb[103].mxu1 }
 0x5a4   : > { %2720 = vst [vmem:[%s4508_s26 + $0x128] sm:$0xff] %v2617_v54  ;;  %v2621_v6 = vadd.f32 %v2620_v56, %v5062_v36 }
 0x5a5   : > { %2721 = vst [vmem:[%s4508_s26 + $0x130] sm:$0xff] %v2619_v10 }
 0x5a6   : > { %2722 = vst [vmem:[%s4508_s26 + $0x138] sm:$0xff] %v2621_v6 }
 0x5a8   : > { %v2624_v30 = vpop.f32.mrb[104].mxu1 }
 0x5a9   : > { %v2625_v60 = vadd.f32 %v2624_v30, %v5059_v55  ;;  %v2626_v1 = vpop.f32.mrb[105].mxu1 }
 0x5aa   : > { %v2627_v45 = vadd.f32 %v2626_v1, %v5062_v36  ;;  %v2628_v18 = vpop.f32.mrb[106].mxu1 }
 0x5ab   : > { %2723 = vst [vmem:[%s4508_s26 + $0x140] sm:$0xff] %v2625_v60  ;;  %v2629_v39 = vadd.f32 %v2628_v18, %v5059_v55  ;;  %v2630_v27 = vpop.f32.mrb[107].mxu1 }
 0x5ac   : > { %2724 = vst [vmem:[%s4508_s26 + $0x148] sm:$0xff] %v2627_v45  ;;  %v2631_v26 = vadd.f32 %v2630_v27, %v5062_v36 }
 0x5ad   : > { %2725 = vst [vmem:[%s4508_s26 + $0x150] sm:$0xff] %v2629_v39 }
 0x5ae   : > { %2726 = vst [vmem:[%s4508_s26 + $0x158] sm:$0xff] %v2631_v26 }
 0x5b0   : > { %v2634_v34 = vpop.f32.mrb[108].mxu1 }
 0x5b1   : > { %v2635_v17 = vadd.f32 %v2634_v34, %v5059_v55  ;;  %v2636_v5 = vpop.f32.mrb[109].mxu1 }
 0x5b2   : > { %v2637_v3 = vadd.f32 %v2636_v5, %v5062_v36  ;;  %v2638_v53 = vpop.f32.mrb[110].mxu1 }
 0x5b3   : > { %2727 = vst [vmem:[%s4508_s26 + $0x160] sm:$0xff] %v2635_v17  ;;  %v2639_v13 = vadd.f32 %v2638_v53, %v5059_v55  ;;  %v2640_v38 = vpop.f32.mrb[111].mxu1 }
 0x5b4   : > { %2728 = vst [vmem:[%s4508_s26 + $0x168] sm:$0xff] %v2637_v3  ;;  %v2641_v33 = vadd.f32 %v2640_v38, %v5062_v36 }
 0x5b5   : > { %2729 = vst [vmem:[%s4508_s26 + $0x170] sm:$0xff] %v2639_v13 }
 0x5b6   : > { %2730 = vst [vmem:[%s4508_s26 + $0x178] sm:$0xff] %v2641_v33 }
 0x5b8   : > { %v2644_v9 = vpop.f32.mrb[112].mxu1 }
 0x5b9   : > { %v2645_v37 = vadd.f32 %v2644_v9, %v5059_v55  ;;  %v2646_v12 = vpop.f32.mrb[113].mxu1 }
 0x5ba   : > { %v2647_v48 = vadd.f32 %v2646_v12, %v5062_v36  ;;  %v2648_v14 = vpop.f32.mrb[114].mxu1 }
 0x5bb   : > { %2731 = vst [vmem:[%s4508_s26 + $0x180] sm:$0xff] %v2645_v37  ;;  %v2649_v20 = vadd.f32 %v2648_v14, %v5059_v55  ;;  %v2650_v35 = vpop.f32.mrb[115].mxu1 }
 0x5bc   : > { %2732 = vst [vmem:[%s4508_s26 + $0x188] sm:$0xff] %v2647_v48  ;;  %v2651_v21 = vadd.f32 %v2650_v35, %v5062_v36 }
 0x5bd   : > { %2733 = vst [vmem:[%s4508_s26 + $0x190] sm:$0xff] %v2649_v20 }
 0x5be   : > { %2734 = vst [vmem:[%s4508_s26 + $0x198] sm:$0xff] %v2651_v21 }
 0x5c0   : > { %v2654_v15 = vpop.f32.mrb[116].mxu1 }
 0x5c1   : > { %v2655_v51 = vadd.f32 %v2654_v15, %v5059_v55  ;;  %v2656_v58 = vpop.f32.mrb[117].mxu1 }
 0x5c2   : > { %v2657_v57 = vadd.f32 %v2656_v58, %v5062_v36  ;;  %v2658_v62 = vpop.f32.mrb[118].mxu1 }
 0x5c3   : > { %2735 = vst [vmem:[%s4508_s26 + $0x1a0] sm:$0xff] %v2655_v51  ;;  %v2659_v0 = vadd.f32 %v2658_v62, %v5059_v55  ;;  %v2660_v7 = vpop.f32.mrb[119].mxu1 }
 0x5c4   : > { %2736 = vst [vmem:[%s4508_s26 + $0x1a8] sm:$0xff] %v2657_v57  ;;  %v2661_v61 = vadd.f32 %v2660_v7, %v5062_v36 }
 0x5c5   : > { %2737 = vst [vmem:[%s4508_s26 + $0x1b0] sm:$0xff] %v2659_v0 }
 0x5c6   : > { %2738 = vst [vmem:[%s4508_s26 + $0x1b8] sm:$0xff] %v2661_v61 }
 0x5c8   : > { %v2664_v49 = vpop.f32.mrb[120].mxu1 }
 0x5c9   : > { %v2665_v22 = vadd.f32 %v2664_v49, %v5059_v55  ;;  %v2666_v32 = vpop.f32.mrb[121].mxu1 }
 0x5ca   : > { %v2667_v42 = vadd.f32 %v2666_v32, %v5062_v36  ;;  %v2668_v16 = vpop.f32.mrb[122].mxu1 }
 0x5cb   : > { %2739 = vst [vmem:[%s4508_s26 + $0x1c0] sm:$0xff] %v2665_v22  ;;  %v2669_v11 = vadd.f32 %v2668_v16, %v5059_v55  ;;  %v2670_v4 = vpop.f32.mrb[123].mxu1 }
 0x5cc   : > { %2740 = vst [vmem:[%s4508_s26 + $0x1c8] sm:$0xff] %v2667_v42  ;;  %v2671_v29 = vadd.f32 %v2670_v4, %v5062_v36 }
 0x5cd   : > { %2741 = vst [vmem:[%s4508_s26 + $0x1d0] sm:$0xff] %v2669_v11 }
 0x5ce   : > { %2742 = vst [vmem:[%s4508_s26 + $0x1d8] sm:$0xff] %v2671_v29 }
 0x5d0   : > { %v2674_v25 = vpop.f32.mrb[124].mxu1 }
 0x5d1   : > { %v2675_v2 = vadd.f32 %v2674_v25, %v5059_v55  ;;  %v2676_v63 = vpop.f32.mrb[125].mxu1 }
 0x5d2   : > { %v2677_v47 = vadd.f32 %v2676_v63, %v5062_v36  ;;  %v2678_v23 = vpop.f32.mrb[126].mxu1 }
 0x5d3   : > { %2743 = vst [vmem:[%s4508_s26 + $0x1e0] sm:$0xff] %v2675_v2  ;;  %v2679_v44 = vadd.f32 %v2678_v23, %v5059_v55  ;;  %v2680_v31 = vpop.f32.mrb[127].mxu1 }
 0x5d4   : > { %2744 = vst [vmem:[%s4508_s26 + $0x1e8] sm:$0xff] %v2677_v47  ;;  %v2681_v52 = vadd.f32 %v2680_v31, %v5062_v36 }
 0x5d5   : > { %2745 = vst [vmem:[%s4508_s26 + $0x1f0] sm:$0xff] %v2679_v44 }
 0x5d6   : > { %2746 = vst [vmem:[%s4508_s26 + $0x1f8] sm:$0xff] %v2681_v52 }
 0x5d7   : > { %3734 = shalt.err (!%p3731_p7)
}
 0x5d8   : > { %s3735_s0 = scalar_lea.hbm %s5193_s22, 8192  ;;  %s3739_s26 = scalar_lea.hbm %s5252_s7, 16384 }
 0x5d9   : > { %p3736_p9 = scmp.ne.s32.totalorder %s5193_s22, %s3735_s0  ;;  %p3740_p5 = scmp.lt.u32.totalorder %s5193_s22, %s5252_s7 }
 0x5da   : > { %p3741_p11 = scmp.lt.u32.totalorder %s3739_s26, %s3735_s0  ;;  %p3743_p4 = scmp.lt.u32.totalorder %s3735_s0, %s5193_s22 }
 0x5db   : > { %p3737_p2 = pnand %p3736_p9, %p3947_p12 }
 0x5dc   : > { %p3742_p1 = por %p3741_p11, %p3740_p5 }
 0x5dd   : > { %p3738_p0 = pneg %p3737_p2 }
 0x5de   : > { %p3744_p6 = por %p3743_p4, %p3742_p1 }
 0x5e0   : > { %p3745_p8 = pnand %p3744_p6, %p3738_p0 }
 0x5e2   : > { %3748 = shalt.err (!%p3745_p8)
}
 0x5e3   : > { %s3815_s11 = smov 16  }
 0x5e4   : > { %3148 = dma.vmem_to_hbm [thread:$0]  (%p3947_p12), %s5197_s17, 8192, %s5193_s22, %s2748_s28, %s3804_s15, %s3804_s15, %s3815_s11  }
 0x5e5 PF: > { %s2777_s14 = sand.u32 1, %s3783_s24   ;;  %p5362_p10 = scmp.ne.s32.totalorder %s5268_s8, 0 }
 0x5e6   : > { %p5363_p13 = scmp.ge.s32.totalorder %s3795_s27, 2  ;;  %s2778_s29 = scalar_lea.sflag [#allocation7], %s2777_s14 }
 0x5e8   : > { %p3159_p3 = pnand %p5363_p13, %p5362_p10 }
 0x5ea   : > { %3778 = dma.done.wait (!%p3159_p3), %s2778_s29, 8192  }
 0x5eb   : > { %3780 = vsyncadd (!%p3159_p3), %s2778_s29, 4294959104  ;;  %s5364_s24 = sld [smem:[#allocation20_spill]]  ;;  %s5365_s25 = sld [smem:[#allocation21_spill]] }
 0x5ec   : > { %s5366_s26 = sld [smem:[#allocation22_spill]]  ;;  %p21_p7 = scmp.ge.s32.totalorder %s3912_s13, 4  }
 0x5ed   : > { %s5367_s27 = smov %s3912_s13 }
 0x5ee   :  { %23 = sbr.rel (!%p21_p7) target bundleno = 9 (0x9), region = 107 }
 0x5f5   :  { %2783 = vsyncpa [#allocation6], 1 }
 0x5f6   :  { %2785 = vsyncpa [#allocation6 + $0x1], 1 }
 0x5f7   :  { %2786 = vsyncpa [#allocation9], 1 }
 0x5f8   :  { %2787 = vsyncpa [#allocation7], 1 }
 0x5f9   :  { %2789 = vsyncpa [#allocation7 + $0x1], 1 }
 0x5fa   :  { %2790 = vsyncmov [#allocation4] }
 0x5fd   :  { %s2791_s27 = vpop.sfrf %2790 }
 0x5fe   :  { %p3008_p12 = scmp.ne.s32.totalorder %s2791_s27, 0 }
 0x600   :  { %2795 = shalt.err (%p3008_p12)  }
 0x601   :  { %2797 = vsyncmov [#allocation4 + $0x1] }
 0x604   :  { %s2798_s8 = vpop.sfrf %2797 }
 0x605   :  { %p3009_p9 = scmp.ne.s32.totalorder %s2798_s8, 0 }
 0x607   :  { %2802 = shalt.err (%p3009_p9)  }

</bundles_post_ra>
